<compile_context>
chip_gen: v5e
topology: v5e:2x2
jax: 0.10.0
libtpu: 0.0.40
codegen_flags: <defaults>
</compile_context>

<pallas_src>
import functools
import math

import jax
import jax.numpy as jnp
from jax.experimental import pallas as pl
from jax.experimental.pallas import tpu as pltpu

_N_LAYERS = 6


def _round_up(v, m):
    return ((v + m - 1) // m) * m


def _f32_precise_dot(x, w):
    """~fp32-accurate matmul built from native bf16 MXU passes.

    The MXU multiplies in bf16; a single pass on f32 operands silently rounds
    them (XLA DEFAULT precision, ~1e-3 rel. error).  Splitting each operand
    into bf16 hi + bf16 lo parts and summing three passes recovers ~f32
    accuracy.  Extra MXU work is free here (latency-bound kernel, <1% MXU).
    """
    xh = x.astype(jnp.bfloat16)
    xl = (x - xh.astype(jnp.float32)).astype(jnp.bfloat16)
    wh = w.astype(jnp.bfloat16)
    wl = (w - wh.astype(jnp.float32)).astype(jnp.bfloat16)
    acc = jnp.dot(xh, wl, preferred_element_type=jnp.float32)
    acc = acc + jnp.dot(xl, wh, preferred_element_type=jnp.float32)
    acc = acc + jnp.dot(xh, wh, preferred_element_type=jnp.float32)
    return acc


# ----------------------------- Pallas kernel ------------------------------ #
def _fused_decoder_kernel(x0, x1, x2, x3, x4, x5,
                          w0, w1, w2, w3, w4, w5,
                          b_ref, o_ref):
    """Single invocation: all 6 decoder layers, no grid, full-array VMEM refs.

      x_l   : (M, K_l)      f32  flattened activations (true K, no padding)
      w_l   : (K_l, Npad)   f32  W^T, lanes >= n_classes are zero
      b_ref : (6, 1, Npad)  f32  bias, lanes >= n_classes are zero
      o_ref : (6, M, Npad)  f32  output (lanes >= n_classes are bias-only junk)
    """
    xs = (x0, x1, x2, x3, x4, x5)
    ws = (w0, w1, w2, w3, w4, w5)
    for l in range(_N_LAYERS):  # static unroll; zero per-layer grid overhead
        o_ref[l] = _f32_precise_dot(xs[l][...], ws[l][...]) + b_ref[l]


# ----------------------------- jitted wrapper ------------------------------ #
@functools.partial(jax.jit, static_argnames=("n_classes",))
def _linear_decoder_forward(acts, wts, bias, *, n_classes):
    """x_l @ W_l^T + b_l for all 6 decoders in one Pallas call.

    acts : tuple of 6 activations (any trailing shape; leading dim = batch M)
    wts  : tuple of 6 (K_l, Npad) f32 transposed, lane-padded weights
    bias : (6, 1, Npad) f32
    returns tuple of 6 (M, n_classes) f32 predictions (sliced inside jit).
    """
    n_layers, _, npad = bias.shape
    assert n_layers == _N_LAYERS

    # .detach().view(-1, n_features) equivalent; reshape is a layout no-op.
    xs = tuple(
        jnp.reshape(jax.lax.stop_gradient(a), (a.shape[0], -1)).astype(jnp.float32)
        for a in acts
    )
    m = xs[0].shape[0]

    vmem = pl.BlockSpec(memory_space=pltpu.MemorySpace.VMEM)
    out = pl.pallas_call(
        _fused_decoder_kernel,
        out_shape=jax.ShapeDtypeStruct((n_layers, m, npad), jnp.float32),
        # No grid: everything (activations ~16 KB, weights ~1 MB, out ~6 KB)
        # is resident in VMEM as full-array blocks on every TPU generation.
        in_specs=[vmem] * (2 * n_layers + 1),
        out_specs=vmem,
    )(*xs, *wts, bias)

    # Per-layer slice back to n_classes lanes, done inside jit (one dispatch).
    return tuple(out[l, :, :n_classes] for l in range(n_layers))


# --------------------------- LinearDecoder port ---------------------------- #
class LinearDecoderPallas:
    """JAX/Pallas port of the PyTorch LinearDecoder module (forward only)."""

    def __init__(self, image_size, noise_dim, n_classes, nc, n_filters, key):
        self.n_classes = n_classes
        self.n_features = []
        ws, bs = [], []
        for layer in range(_N_LAYERS):
            n_features = nc if layer == 0 else n_filters * 2 ** (layer - 1)
            n_features *= (image_size // 2 ** layer) ** 2
            if layer == 5:
                n_features = noise_dim
            self.n_features.append(n_features)

            key, kw, kb = jax.random.split(key, 3)
            bound = 1.0 / math.sqrt(n_features)  # PyTorch nn.Linear default init
            ws.append(jax.random.uniform(
                kw, (n_classes, n_features), jnp.float32, -bound, bound))
            bs.append(jax.random.uniform(
                kb, (n_classes,), jnp.float32, -bound, bound))
        self.params = list(zip(ws, bs))  # f32 originals (reference / training)

        # One-time weight prep (hoisted out of the hot path), all f32:
        #   * transpose once,
        #   * lane-pad N=n_classes -> Npad=128 so weights/bias/output are
        #     lane-dense (unmasked lane stores; HBM footprint identical anyway
        #     because of (8,128)-tiled layouts),
        #   * keep each layer's TRUE K (no K padding, no stacking).
        npad = _round_up(n_classes, 128)
        self.npad = npad
        wt_list = []
        for w in ws:
            wt = jnp.zeros((w.shape[1], npad), jnp.float32).at[:, :n_classes].set(w.T)
            wt_list.append(jax.device_put(wt))
        self.wt_list = tuple(wt_list)
        bias = jnp.zeros((_N_LAYERS, 1, npad), jnp.float32)
        bias = bias.at[:, 0, :n_classes].set(jnp.stack(bs))
        self.bias = jax.device_put(bias)

    def __call__(self, intermediate_state_dict):
        acts = tuple(intermediate_state_dict.values())
        if len(acts) != _N_LAYERS:
            raise ValueError(f"expected {_N_LAYERS} activations, got {len(acts)}")
        # Guard against a silently reordered dict: feature counts are distinct,
        # so validating them catches wrong layer order before any compute.
        for l, (a, nf) in enumerate(zip(acts, self.n_features)):
            got = math.prod(a.shape[1:])
            if got != nf:
                raise ValueError(
                    f"activation {l} has {got} features, expected {nf}; "
                    "intermediate_state_dict must be in layer order")
        return list(_linear_decoder_forward(
            acts, self.wt_list, self.bias, n_classes=self.n_classes))


# --------------------------------- main ------------------------------------ #
if __name__ == "__main__":
    image_size = 16
    noise_dim = 32
    n_classes = 10
    nc = 4
    n_filters = 8
    B = 2

    key = jax.random.PRNGKey(0)
    key, k_params = jax.random.split(key)
    model = LinearDecoderPallas(
        image_size, noise_dim, n_classes, nc, n_filters, k_params
    )

    # Intermediate state dict with NCHW activations matching the module's
    # implied feature counts: 1024, 512, 256, 128, 64, 32.
    act_shapes = {
        "layer0": (B, nc, image_size, image_size),
        "layer1": (B, n_filters, image_size // 2, image_size // 2),
        "layer2": (B, n_filters * 2, image_size // 4, image_size // 4),
        "layer3": (B, n_filters * 4, image_size // 8, image_size // 8),
        "layer4": (B, n_filters * 8, image_size // 16, image_size // 16),
        "layer5": (B, noise_dim),
    }
    intermediate_state_dict = {}
    for name, shape in act_shapes.items():
        key, k = jax.random.split(key)
        intermediate_state_dict[name] = jax.random.normal(k, shape, jnp.float32)

    preds = model(intermediate_state_dict)
    preds = [jax.block_until_ready(p) for p in preds]

    # Check against an exact f32 reference (precision=HIGHEST so the reference
    # itself is not degraded by TPU's default one-pass bf16 matmul).  The
    # kernel's 3-pass f32 decomposition should match to ~1e-6.
    ok = True
    for (w, b), n_feat, acts, p in zip(
        model.params,
        model.n_features,
        intermediate_state_dict.values(),
        preds,
    ):
        ref = jnp.dot(
            jnp.reshape(acts, (-1, n_feat)), w.T,
            precision=jax.lax.Precision.HIGHEST,
        ) + b
        if p.shape != (B, n_classes):
            ok = False
        if not jnp.allclose(p, ref, atol=1e-4, rtol=1e-4):
            ok = False

    if ok:
        print("KERNEL_OK")
    else:
        print("MISMATCH")
</pallas_src>

<mosaic_0001>
module attributes {stable_mosaic.version = 11 : i64} {
  func.func @_fused_decoder_kernel(%arg0: memref<2x1024xf32, #tpu.memory_space<vmem>>, %arg1: memref<2x512xf32, #tpu.memory_space<vmem>>, %arg2: memref<2x256xf32, #tpu.memory_space<vmem>>, %arg3: memref<2x128xf32, #tpu.memory_space<vmem>>, %arg4: memref<2x64xf32, #tpu.memory_space<vmem>>, %arg5: memref<2x32xf32, #tpu.memory_space<vmem>>, %arg6: memref<1024x128xf32, #tpu.memory_space<vmem>>, %arg7: memref<512x128xf32, #tpu.memory_space<vmem>>, %arg8: memref<256x128xf32, #tpu.memory_space<vmem>>, %arg9: memref<128x128xf32, #tpu.memory_space<vmem>>, %arg10: memref<64x128xf32, #tpu.memory_space<vmem>>, %arg11: memref<32x128xf32, #tpu.memory_space<vmem>>, %arg12: memref<6x1x128xf32, #tpu.memory_space<vmem>>, %arg13: memref<6x2x128xf32, #tpu.memory_space<vmem>>) attributes {dimension_semantics = [], scalar_prefetch = 0 : i64, scratch_operands = 0 : i64, tpu.core_type = #tpu.core_type<tc>} {
    %c0 = arith.constant 0 : index
    %c0_0 = arith.constant 0 : index
    %0 = vector.load %arg0[%c0, %c0_0] : memref<2x1024xf32, #tpu.memory_space<vmem>>, vector<2x1024xf32>
    %c0_1 = arith.constant 0 : index
    %c0_2 = arith.constant 0 : index
    %1 = vector.load %arg6[%c0_1, %c0_2] : memref<1024x128xf32, #tpu.memory_space<vmem>>, vector<1024x128xf32>
    %2 = arith.truncf %0 : vector<2x1024xf32> to vector<2x1024xbf16>
    %3 = arith.extf %2 : vector<2x1024xbf16> to vector<2x1024xf32>
    %4 = arith.subf %0, %3 : vector<2x1024xf32>
    %5 = arith.truncf %4 : vector<2x1024xf32> to vector<2x1024xbf16>
    %6 = arith.truncf %1 : vector<1024x128xf32> to vector<1024x128xbf16>
    %7 = arith.extf %6 : vector<1024x128xbf16> to vector<1024x128xf32>
    %8 = arith.subf %1, %7 : vector<1024x128xf32>
    %9 = arith.truncf %8 : vector<1024x128xf32> to vector<1024x128xbf16>
    %cst = arith.constant dense<0.000000e+00> : vector<2x128xf32>
    %10 = tpu.matmul %2, %9, %cst {dimension_numbers = #tpu.dot_dimension_numbers<[1], [0], [0], [1], [0, 0, 1, 1], [], []>} : vector<2x1024xbf16>, vector<1024x128xbf16>, vector<2x128xf32> -> vector<2x128xf32>
    %cst_3 = arith.constant dense<0.000000e+00> : vector<2x128xf32>
    %11 = tpu.matmul %5, %6, %cst_3 {dimension_numbers = #tpu.dot_dimension_numbers<[1], [0], [0], [1], [0, 0, 1, 1], [], []>} : vector<2x1024xbf16>, vector<1024x128xbf16>, vector<2x128xf32> -> vector<2x128xf32>
    %12 = arith.addf %10, %11 : vector<2x128xf32>
    %cst_4 = arith.constant dense<0.000000e+00> : vector<2x128xf32>
    %13 = tpu.matmul %2, %6, %cst_4 {dimension_numbers = #tpu.dot_dimension_numbers<[1], [0], [0], [1], [0, 0, 1, 1], [], []>} : vector<2x1024xbf16>, vector<1024x128xbf16>, vector<2x128xf32> -> vector<2x128xf32>
    %14 = arith.addf %12, %13 : vector<2x128xf32>
    %c0_5 = arith.constant 0 : index
    %c0_6 = arith.constant 0 : index
    %c0_7 = arith.constant 0 : index
    %15 = vector.load %arg12[%c0_5, %c0_6, %c0_7] : memref<6x1x128xf32, #tpu.memory_space<vmem>>, vector<1x1x128xf32>
    %16 = vector.shape_cast %15 : vector<1x1x128xf32> to vector<1x128xf32>
    %17 = vector.broadcast %16 : vector<1x128xf32> to vector<2x128xf32>
    %18 = arith.addf %14, %17 : vector<2x128xf32>
    %c0_8 = arith.constant 0 : index
    %c0_9 = arith.constant 0 : index
    %c0_10 = arith.constant 0 : index
    %19 = vector.load %arg13[%c0_8, %c0_9, %c0_10] : memref<6x2x128xf32, #tpu.memory_space<vmem>>, vector<1x2x128xf32>
    %20 = vector.shape_cast %19 : vector<1x2x128xf32> to vector<2x128xf32>
    %21 = vector.shape_cast %18 : vector<2x128xf32> to vector<1x2x128xf32>
    tpu.vector_store %arg13[%c0_8, %c0_9, %c0_10], %21 {strides = array<i32>} : memref<6x2x128xf32, #tpu.memory_space<vmem>>, vector<1x2x128xf32>,
    %c0_11 = arith.constant 0 : index
    %c0_12 = arith.constant 0 : index
    %22 = vector.load %arg1[%c0_11, %c0_12] : memref<2x512xf32, #tpu.memory_space<vmem>>, vector<2x512xf32>
    %c0_13 = arith.constant 0 : index
    %c0_14 = arith.constant 0 : index
    %23 = vector.load %arg7[%c0_13, %c0_14] : memref<512x128xf32, #tpu.memory_space<vmem>>, vector<512x128xf32>
    %24 = arith.truncf %22 : vector<2x512xf32> to vector<2x512xbf16>
    %25 = arith.extf %24 : vector<2x512xbf16> to vector<2x512xf32>
    %26 = arith.subf %22, %25 : vector<2x512xf32>
    %27 = arith.truncf %26 : vector<2x512xf32> to vector<2x512xbf16>
    %28 = arith.truncf %23 : vector<512x128xf32> to vector<512x128xbf16>
    %29 = arith.extf %28 : vector<512x128xbf16> to vector<512x128xf32>
    %30 = arith.subf %23, %29 : vector<512x128xf32>
    %31 = arith.truncf %30 : vector<512x128xf32> to vector<512x128xbf16>
    %cst_15 = arith.constant dense<0.000000e+00> : vector<2x128xf32>
    %32 = tpu.matmul %24, %31, %cst_15 {dimension_numbers = #tpu.dot_dimension_numbers<[1], [0], [0], [1], [0, 0, 1, 1], [], []>} : vector<2x512xbf16>, vector<512x128xbf16>, vector<2x128xf32> -> vector<2x128xf32>
    %cst_16 = arith.constant dense<0.000000e+00> : vector<2x128xf32>
    %33 = tpu.matmul %27, %28, %cst_16 {dimension_numbers = #tpu.dot_dimension_numbers<[1], [0], [0], [1], [0, 0, 1, 1], [], []>} : vector<2x512xbf16>, vector<512x128xbf16>, vector<2x128xf32> -> vector<2x128xf32>
    %34 = arith.addf %32, %33 : vector<2x128xf32>
    %cst_17 = arith.constant dense<0.000000e+00> : vector<2x128xf32>
    %35 = tpu.matmul %24, %28, %cst_17 {dimension_numbers = #tpu.dot_dimension_numbers<[1], [0], [0], [1], [0, 0, 1, 1], [], []>} : vector<2x512xbf16>, vector<512x128xbf16>, vector<2x128xf32> -> vector<2x128xf32>
    %36 = arith.addf %34, %35 : vector<2x128xf32>
    %c1 = arith.constant 1 : index
    %c0_18 = arith.constant 0 : index
    %c0_19 = arith.constant 0 : index
    %37 = vector.load %arg12[%c1, %c0_18, %c0_19] : memref<6x1x128xf32, #tpu.memory_space<vmem>>, vector<1x1x128xf32>
    %38 = vector.shape_cast %37 : vector<1x1x128xf32> to vector<1x128xf32>
    %39 = vector.broadcast %38 : vector<1x128xf32> to vector<2x128xf32>
    %40 = arith.addf %36, %39 : vector<2x128xf32>
    %c1_20 = arith.constant 1 : index
    %c0_21 = arith.constant 0 : index
    %c0_22 = arith.constant 0 : index
    %41 = vector.load %arg13[%c1_20, %c0_21, %c0_22] : memref<6x2x128xf32, #tpu.memory_space<vmem>>, vector<1x2x128xf32>
    %42 = vector.shape_cast %41 : vector<1x2x128xf32> to vector<2x128xf32>
    %43 = vector.shape_cast %40 : vector<2x128xf32> to vector<1x2x128xf32>
    tpu.vector_store %arg13[%c1_20, %c0_21, %c0_22], %43 {strides = array<i32>} : memref<6x2x128xf32, #tpu.memory_space<vmem>>, vector<1x2x128xf32>,
    %c0_23 = arith.constant 0 : index
    %c0_24 = arith.constant 0 : index
    %44 = vector.load %arg2[%c0_23, %c0_24] : memref<2x256xf32, #tpu.memory_space<vmem>>, vector<2x256xf32>
    %c0_25 = arith.constant 0 : index
    %c0_26 = arith.constant 0 : index
    %45 = vector.load %arg8[%c0_25, %c0_26] : memref<256x128xf32, #tpu.memory_space<vmem>>, vector<256x128xf32>
    %46 = arith.truncf %44 : vector<2x256xf32> to vector<2x256xbf16>
    %47 = arith.extf %46 : vector<2x256xbf16> to vector<2x256xf32>
    %48 = arith.subf %44, %47 : vector<2x256xf32>
    %49 = arith.truncf %48 : vector<2x256xf32> to vector<2x256xbf16>
    %50 = arith.truncf %45 : vector<256x128xf32> to vector<256x128xbf16>
    %51 = arith.extf %50 : vector<256x128xbf16> to vector<256x128xf32>
    %52 = arith.subf %45, %51 : vector<256x128xf32>
    %53 = arith.truncf %52 : vector<256x128xf32> to vector<256x128xbf16>
    %cst_27 = arith.constant dense<0.000000e+00> : vector<2x128xf32>
    %54 = tpu.matmul %46, %53, %cst_27 {dimension_numbers = #tpu.dot_dimension_numbers<[1], [0], [0], [1], [0, 0, 1, 1], [], []>} : vector<2x256xbf16>, vector<256x128xbf16>, vector<2x128xf32> -> vector<2x128xf32>
    %cst_28 = arith.constant dense<0.000000e+00> : vector<2x128xf32>
    %55 = tpu.matmul %49, %50, %cst_28 {dimension_numbers = #tpu.dot_dimension_numbers<[1], [0], [0], [1], [0, 0, 1, 1], [], []>} : vector<2x256xbf16>, vector<256x128xbf16>, vector<2x128xf32> -> vector<2x128xf32>
    %56 = arith.addf %54, %55 : vector<2x128xf32>
    %cst_29 = arith.constant dense<0.000000e+00> : vector<2x128xf32>
    %57 = tpu.matmul %46, %50, %cst_29 {dimension_numbers = #tpu.dot_dimension_numbers<[1], [0], [0], [1], [0, 0, 1, 1], [], []>} : vector<2x256xbf16>, vector<256x128xbf16>, vector<2x128xf32> -> vector<2x128xf32>
    %58 = arith.addf %56, %57 : vector<2x128xf32>
    %c2 = arith.constant 2 : index
    %c0_30 = arith.constant 0 : index
    %c0_31 = arith.constant 0 : index
    %59 = vector.load %arg12[%c2, %c0_30, %c0_31] : memref<6x1x128xf32, #tpu.memory_space<vmem>>, vector<1x1x128xf32>
    %60 = vector.shape_cast %59 : vector<1x1x128xf32> to vector<1x128xf32>
    %61 = vector.broadcast %60 : vector<1x128xf32> to vector<2x128xf32>
    %62 = arith.addf %58, %61 : vector<2x128xf32>
    %c2_32 = arith.constant 2 : index
    %c0_33 = arith.constant 0 : index
    %c0_34 = arith.constant 0 : index
    %63 = vector.load %arg13[%c2_32, %c0_33, %c0_34] : memref<6x2x128xf32, #tpu.memory_space<vmem>>, vector<1x2x128xf32>
    %64 = vector.shape_cast %63 : vector<1x2x128xf32> to vector<2x128xf32>
    %65 = vector.shape_cast %62 : vector<2x128xf32> to vector<1x2x128xf32>
    tpu.vector_store %arg13[%c2_32, %c0_33, %c0_34], %65 {strides = array<i32>} : memref<6x2x128xf32, #tpu.memory_space<vmem>>, vector<1x2x128xf32>,
    %c0_35 = arith.constant 0 : index
    %c0_36 = arith.constant 0 : index
    %66 = vector.load %arg3[%c0_35, %c0_36] : memref<2x128xf32, #tpu.memory_space<vmem>>, vector<2x128xf32>
    %c0_37 = arith.constant 0 : index
    %c0_38 = arith.constant 0 : index
    %67 = vector.load %arg9[%c0_37, %c0_38] : memref<128x128xf32, #tpu.memory_space<vmem>>, vector<128x128xf32>
    %68 = arith.truncf %66 : vector<2x128xf32> to vector<2x128xbf16>
    %69 = arith.extf %68 : vector<2x128xbf16> to vector<2x128xf32>
    %70 = arith.subf %66, %69 : vector<2x128xf32>
    %71 = arith.truncf %70 : vector<2x128xf32> to vector<2x128xbf16>
    %72 = arith.truncf %67 : vector<128x128xf32> to vector<128x128xbf16>
    %73 = arith.extf %72 : vector<128x128xbf16> to vector<128x128xf32>
    %74 = arith.subf %67, %73 : vector<128x128xf32>
    %75 = arith.truncf %74 : vector<128x128xf32> to vector<128x128xbf16>
    %cst_39 = arith.constant dense<0.000000e+00> : vector<2x128xf32>
    %76 = tpu.matmul %68, %75, %cst_39 {dimension_numbers = #tpu.dot_dimension_numbers<[1], [0], [0], [1], [0, 0, 1, 1], [], []>} : vector<2x128xbf16>, vector<128x128xbf16>, vector<2x128xf32> -> vector<2x128xf32>
    %cst_40 = arith.constant dense<0.000000e+00> : vector<2x128xf32>
    %77 = tpu.matmul %71, %72, %cst_40 {dimension_numbers = #tpu.dot_dimension_numbers<[1], [0], [0], [1], [0, 0, 1, 1], [], []>} : vector<2x128xbf16>, vector<128x128xbf16>, vector<2x128xf32> -> vector<2x128xf32>
    %78 = arith.addf %76, %77 : vector<2x128xf32>
    %cst_41 = arith.constant dense<0.000000e+00> : vector<2x128xf32>
    %79 = tpu.matmul %68, %72, %cst_41 {dimension_numbers = #tpu.dot_dimension_numbers<[1], [0], [0], [1], [0, 0, 1, 1], [], []>} : vector<2x128xbf16>, vector<128x128xbf16>, vector<2x128xf32> -> vector<2x128xf32>
    %80 = arith.addf %78, %79 : vector<2x128xf32>
    %c3 = arith.constant 3 : index
    %c0_42 = arith.constant 0 : index
    %c0_43 = arith.constant 0 : index
    %81 = vector.load %arg12[%c3, %c0_42, %c0_43] : memref<6x1x128xf32, #tpu.memory_space<vmem>>, vector<1x1x128xf32>
    %82 = vector.shape_cast %81 : vector<1x1x128xf32> to vector<1x128xf32>
    %83 = vector.broadcast %82 : vector<1x128xf32> to vector<2x128xf32>
    %84 = arith.addf %80, %83 : vector<2x128xf32>
    %c3_44 = arith.constant 3 : index
    %c0_45 = arith.constant 0 : index
    %c0_46 = arith.constant 0 : index
    %85 = vector.load %arg13[%c3_44, %c0_45, %c0_46] : memref<6x2x128xf32, #tpu.memory_space<vmem>>, vector<1x2x128xf32>
    %86 = vector.shape_cast %85 : vector<1x2x128xf32> to vector<2x128xf32>
    %87 = vector.shape_cast %84 : vector<2x128xf32> to vector<1x2x128xf32>
    tpu.vector_store %arg13[%c3_44, %c0_45, %c0_46], %87 {strides = array<i32>} : memref<6x2x128xf32, #tpu.memory_space<vmem>>, vector<1x2x128xf32>,
    %c0_47 = arith.constant 0 : index
    %c0_48 = arith.constant 0 : index
    %88 = vector.load %arg4[%c0_47, %c0_48] : memref<2x64xf32, #tpu.memory_space<vmem>>, vector<2x64xf32>
    %c0_49 = arith.constant 0 : index
    %c0_50 = arith.constant 0 : index
    %89 = vector.load %arg10[%c0_49, %c0_50] : memref<64x128xf32, #tpu.memory_space<vmem>>, vector<64x128xf32>
    %90 = arith.truncf %88 : vector<2x64xf32> to vector<2x64xbf16>
    %91 = arith.extf %90 : vector<2x64xbf16> to vector<2x64xf32>
    %92 = arith.subf %88, %91 : vector<2x64xf32>
    %93 = arith.truncf %92 : vector<2x64xf32> to vector<2x64xbf16>
    %94 = arith.truncf %89 : vector<64x128xf32> to vector<64x128xbf16>
    %95 = arith.extf %94 : vector<64x128xbf16> to vector<64x128xf32>
    %96 = arith.subf %89, %95 : vector<64x128xf32>
    %97 = arith.truncf %96 : vector<64x128xf32> to vector<64x128xbf16>
    %cst_51 = arith.constant dense<0.000000e+00> : vector<2x128xf32>
    %98 = tpu.matmul %90, %97, %cst_51 {dimension_numbers = #tpu.dot_dimension_numbers<[1], [0], [0], [1], [0, 0, 1, 1], [], []>} : vector<2x64xbf16>, vector<64x128xbf16>, vector<2x128xf32> -> vector<2x128xf32>
    %cst_52 = arith.constant dense<0.000000e+00> : vector<2x128xf32>
    %99 = tpu.matmul %93, %94, %cst_52 {dimension_numbers = #tpu.dot_dimension_numbers<[1], [0], [0], [1], [0, 0, 1, 1], [], []>} : vector<2x64xbf16>, vector<64x128xbf16>, vector<2x128xf32> -> vector<2x128xf32>
    %100 = arith.addf %98, %99 : vector<2x128xf32>
    %cst_53 = arith.constant dense<0.000000e+00> : vector<2x128xf32>
    %101 = tpu.matmul %90, %94, %cst_53 {dimension_numbers = #tpu.dot_dimension_numbers<[1], [0], [0], [1], [0, 0, 1, 1], [], []>} : vector<2x64xbf16>, vector<64x128xbf16>, vector<2x128xf32> -> vector<2x128xf32>
    %102 = arith.addf %100, %101 : vector<2x128xf32>
    %c4 = arith.constant 4 : index
    %c0_54 = arith.constant 0 : index
    %c0_55 = arith.constant 0 : index
    %103 = vector.load %arg12[%c4, %c0_54, %c0_55] : memref<6x1x128xf32, #tpu.memory_space<vmem>>, vector<1x1x128xf32>
    %104 = vector.shape_cast %103 : vector<1x1x128xf32> to vector<1x128xf32>
    %105 = vector.broadcast %104 : vector<1x128xf32> to vector<2x128xf32>
    %106 = arith.addf %102, %105 : vector<2x128xf32>
    %c4_56 = arith.constant 4 : index
    %c0_57 = arith.constant 0 : index
    %c0_58 = arith.constant 0 : index
    %107 = vector.load %arg13[%c4_56, %c0_57, %c0_58] : memref<6x2x128xf32, #tpu.memory_space<vmem>>, vector<1x2x128xf32>
    %108 = vector.shape_cast %107 : vector<1x2x128xf32> to vector<2x128xf32>
    %109 = vector.shape_cast %106 : vector<2x128xf32> to vector<1x2x128xf32>
    tpu.vector_store %arg13[%c4_56, %c0_57, %c0_58], %109 {strides = array<i32>} : memref<6x2x128xf32, #tpu.memory_space<vmem>>, vector<1x2x128xf32>,
    %c0_59 = arith.constant 0 : index
    %c0_60 = arith.constant 0 : index
    %110 = vector.load %arg5[%c0_59, %c0_60] : memref<2x32xf32, #tpu.memory_space<vmem>>, vector<2x32xf32>
    %c0_61 = arith.constant 0 : index
    %c0_62 = arith.constant 0 : index
    %111 = vector.load %arg11[%c0_61, %c0_62] : memref<32x128xf32, #tpu.memory_space<vmem>>, vector<32x128xf32>
    %112 = arith.truncf %110 : vector<2x32xf32> to vector<2x32xbf16>
    %113 = arith.extf %112 : vector<2x32xbf16> to vector<2x32xf32>
    %114 = arith.subf %110, %113 : vector<2x32xf32>
    %115 = arith.truncf %114 : vector<2x32xf32> to vector<2x32xbf16>
    %116 = arith.truncf %111 : vector<32x128xf32> to vector<32x128xbf16>
    %117 = arith.extf %116 : vector<32x128xbf16> to vector<32x128xf32>
    %118 = arith.subf %111, %117 : vector<32x128xf32>
    %119 = arith.truncf %118 : vector<32x128xf32> to vector<32x128xbf16>
    %cst_63 = arith.constant dense<0.000000e+00> : vector<2x128xf32>
    %120 = tpu.matmul %112, %119, %cst_63 {dimension_numbers = #tpu.dot_dimension_numbers<[1], [0], [0], [1], [0, 0, 1, 1], [], []>} : vector<2x32xbf16>, vector<32x128xbf16>, vector<2x128xf32> -> vector<2x128xf32>
    %cst_64 = arith.constant dense<0.000000e+00> : vector<2x128xf32>
    %121 = tpu.matmul %115, %116, %cst_64 {dimension_numbers = #tpu.dot_dimension_numbers<[1], [0], [0], [1], [0, 0, 1, 1], [], []>} : vector<2x32xbf16>, vector<32x128xbf16>, vector<2x128xf32> -> vector<2x128xf32>
    %122 = arith.addf %120, %121 : vector<2x128xf32>
    %cst_65 = arith.constant dense<0.000000e+00> : vector<2x128xf32>
    %123 = tpu.matmul %112, %116, %cst_65 {dimension_numbers = #tpu.dot_dimension_numbers<[1], [0], [0], [1], [0, 0, 1, 1], [], []>} : vector<2x32xbf16>, vector<32x128xbf16>, vector<2x128xf32> -> vector<2x128xf32>
    %124 = arith.addf %122, %123 : vector<2x128xf32>
    %c5 = arith.constant 5 : index
    %c0_66 = arith.constant 0 : index
    %c0_67 = arith.constant 0 : index
    %125 = vector.load %arg12[%c5, %c0_66, %c0_67] : memref<6x1x128xf32, #tpu.memory_space<vmem>>, vector<1x1x128xf32>
    %126 = vector.shape_cast %125 : vector<1x1x128xf32> to vector<1x128xf32>
    %127 = vector.broadcast %126 : vector<1x128xf32> to vector<2x128xf32>
    %128 = arith.addf %124, %127 : vector<2x128xf32>
    %c5_68 = arith.constant 5 : index
    %c0_69 = arith.constant 0 : index
    %c0_70 = arith.constant 0 : index
    %129 = vector.load %arg13[%c5_68, %c0_69, %c0_70] : memref<6x2x128xf32, #tpu.memory_space<vmem>>, vector<1x2x128xf32>
    %130 = vector.shape_cast %129 : vector<1x2x128xf32> to vector<2x128xf32>
    %131 = vector.shape_cast %128 : vector<2x128xf32> to vector<1x2x128xf32>
    tpu.vector_store %arg13[%c5_68, %c0_69, %c0_70], %131 {strides = array<i32>} : memref<6x2x128xf32, #tpu.memory_space<vmem>>, vector<1x2x128xf32>,
    return
  }
}

</mosaic_0001>

<bundles_post_ra>
// kernel: _linear_decoder_forward.1
= control target key start
LH: loop header
LB: loop body
LE: loop exit
PB: predicated region body
PF: predicated region fallthrough
CT: control target
= control target key end

     0   :  { %18 = vsyncpa [#allocation3], 0  ;;  %s6060_s0 = inlined_call_operand.vmem [shape: f32[2,1024], index: 0, kind: input, shape index: {}]   ;;  %s6061_s1 = inlined_call_operand.vmem [shape: f32[2,512], index: 1, kind: input, shape index: {}]   ;;  %s6062_s2 = inlined_call_operand.vmem [shape: f32[2,256], index: 2, kind: input, shape index: {}]   ;;  %s6063_s3 = inlined_call_operand.vmem [shape: f32[2,128], index: 3, kind: input, shape index: {}]   ;;  %s6064_s4 = inlined_call_operand.vmem [shape: f32[2,64], index: 4, kind: input, shape index: {}]   ;;  %s6065_s5 = inlined_call_operand.vmem [shape: f32[2,32], index: 5, kind: input, shape index: {}]   ;;  %s6066_s6 = inlined_call_operand.hbm [shape: f32[1024,128], index: 6, kind: input, shape index: {}]   ;;  %s6067_s7 = inlined_call_operand.hbm [shape: f32[512,128], index: 7, kind: input, shape index: {}]   ;;  %s6068_s8 = inlined_call_operand.vmem [shape: f32[256,128], index: 8, kind: input, shape index: {}]   ;;  %s6069_s9 = inlined_call_operand.vmem [shape: f32[128,128], index: 9, kind: input, shape index: {}]   ;;  %s6070_s10 = inlined_call_operand.vmem [shape: f32[64,128], index: 10, kind: input, shape index: {}]   ;;  %s6071_s11 = inlined_call_operand.vmem [shape: f32[32,128], index: 11, kind: input, shape index: {}]   ;;  %s6072_s12 = inlined_call_operand.vmem [shape: f32[6,1,128], index: 12, kind: input, shape index: {}]   ;;  %s6073_s13 = inlined_call_operand.vmem [shape: f32[6,2,128], index: 13, kind: output, shape index: {}]  }
   0x1   :  { %s36_s27 = sshll.u32 %s6066_s6, 4  ;;  %s37_s27 = int_to_ptr.hbm [resolvable:$true] %s36_s27 }
   0x2   :  { %19 = vsyncpa [#allocation5], 0  ;;  %s3062_s28 = smov [#allocation2]   ;;  %s49_s15 = sshll.u32 %s6067_s7, 4  ;;  %s50_s15 = int_to_ptr.hbm [resolvable:$true] %s49_s15 }
   0x3   :  { %s38_s29 = sshll.u32 %s3062_s28, 4  ;;  %s3063_s16 = smov 128   ;;  %s39_s29 = int_to_ptr.vmem [resolvable:$true] %s38_s29 }
   0x4   :  { %s3064_s17 = smov 8   ;;  %s3065_s18 = smov [#allocation4]  }
   0x5   :  { %44 = dma.hbm_to_vmem [thread:$0]  %s37_s27, 16384, %s39_s29, [#allocation3], %s3063_s16, %s3063_s16, %s3064_s17  }
   0x6   :  { %s51_s19 = sshll.u32 %s3065_s18, 4  ;;  %s52_s19 = int_to_ptr.vmem [resolvable:$true] %s51_s19 }
   0x7   :  { %57 = dma.hbm_to_vmem [thread:$0]  %s50_s15, 8192, %s52_s19, [#allocation5], %s3063_s16, %s3063_s16, %s3064_s17  }
   0x8   :  { %3058 = dma.done.wait [#allocation3], 16384  }
   0x9   :  { %3059 = vsyncadd [#allocation3], 4294950912 }
   0xa   :  { %3060 = dma.done.wait [#allocation5], 8192  }
   0xb   :  { %3061 = vsyncadd [#allocation5], 4294959104  ;;  %v93_v0 = vld [vmem:[#allocation2 + $0x70] sm:$0xff]  ;;  %v94_v1 = vld [vmem:[#allocation2 + $0x78] sm:$0xff]  ;;  %vm254_vm0 = vcmask 1041408   ;;  %vm256_vm1 = vcmask 1045508  }
   0xc   :  { %v109_v2 = vld [vmem:[#allocation2 + $0xf0] sm:$0xff]  ;;  %v310_v3 = vpack.c.bf16 %v93_v0, %v93_v0  ;;  %v311_v4 = vpack.c.bf16 %v94_v1, %v94_v1  ;;  %v110_v5 = vld [vmem:[#allocation2 + $0xf8] sm:$0xff]  ;;  %v91_v26 = vld [vmem:[#allocation2 + $0x60] sm:$0xff]  ;;  %vm258_vm2 = vcmask 1043456   ;;  %vm2773_vm3 = vcmask 523264  }
   0xd   :  { %v326_v6 = vpack.c.bf16 %v109_v2, %v109_v2  ;;  %v125_v7 = vld [vmem:[#allocation2 + $0x170] sm:$0xff]  ;;  %v126_v8 = vld [vmem:[#allocation2 + $0x178] sm:$0xff]  ;;  %v327_v9 = vpack.c.bf16 %v110_v5, %v110_v5  ;;  %v92_v27 = vld [vmem:[#allocation2 + $0x68] sm:$0xff]  ;;  %v3160_v39 = vpack.c.bf16 %v91_v26, %v91_v26  ;;  %vm2863_vm4 = vcmask 261120  }
   0xe   :  { %v342_v10 = vpack.c.bf16 %v125_v7, %v125_v7  ;;  %v343_v11 = vpack.c.bf16 %v126_v8, %v126_v8  ;;  %v438_v12 = vunpack.c.l.bf16 %v310_v3  ;;  %v439_v13 = vunpack.c.l.bf16 %v311_v4  ;;  %v141_v20 = vld [vmem:[#allocation2 + $0x1f0] sm:$0xff]  ;;  %v142_v25 = vld [vmem:[#allocation2 + $0x1f8] sm:$0xff]  ;;  %v107_v32 = vld [vmem:[#allocation2 + $0xe0] sm:$0xff] }
   0xf   :  { %v886_v14 = vunpack.c.l.b16 %v310_v3  ;;  %v887_v15 = vunpack.c.l.b16 %v311_v4  ;;  %v454_v16 = vunpack.c.l.bf16 %v326_v6  ;;  %v455_v17 = vunpack.c.l.bf16 %v327_v9  ;;  %v108_v41 = vld [vmem:[#allocation2 + $0xe8] sm:$0xff]  ;;  %v123_v48 = vld [vmem:[#allocation2 + $0x160] sm:$0xff]  ;;  %v89_v56 = vld [vmem:[#allocation2 + $0x50] sm:$0xff] }
  0x10   :  { %v902_v18 = vunpack.c.l.b16 %v326_v6  ;;  %v903_v19 = vunpack.c.l.b16 %v327_v9  ;;  %v3142_v21 = vsub.f32 %v93_v0, %v438_v12  ;;  %v3144_v22 = vsub.f32 %v94_v1, %v439_v13  ;;  %v124_v49 = vld [vmem:[#allocation2 + $0x168] sm:$0xff]  ;;  %v139_v54 = vld [vmem:[#allocation2 + $0x1e0] sm:$0xff]  ;;  %v90_v60 = vld [vmem:[#allocation2 + $0x58] sm:$0xff] }
  0x11   :  { %v3146_v23 = vpack.c.b16 %v887_v15, %v886_v14  ;;  %v470_v24 = vunpack.c.l.bf16 %v342_v10  ;;  %v3148_v28 = vsub.f32 %v109_v2, %v454_v16  ;;  %v3150_v29 = vsub.f32 %v110_v5, %v455_v17  ;;  %v140_v55 = vld [vmem:[#allocation2 + $0x1e8] sm:$0xff]  ;;  %v106_v9 = vld [vmem:[#allocation2 + $0xd8] sm:$0xff]  ;;  %v137_v14 = vld [vmem:[#allocation2 + $0x1d0] sm:$0xff] }
  0x12   :  { %v3152_v30 = vpack.c.b16 %v903_v19, %v902_v18  ;;  %v471_v31 = vunpack.c.l.bf16 %v343_v11  ;;  %v918_v34 = vunpack.c.l.b16 %v342_v10  ;;  %v919_v35 = vunpack.c.l.b16 %v343_v11  ;;  %v121_v10 = vld [vmem:[#allocation2 + $0x150] sm:$0xff]  ;;  %v122_v11 = vld [vmem:[#allocation2 + $0x158] sm:$0xff] }
  0x13   :  { %6395 = vst [vmem:[#allocation8_spill] sm:$0xff] %v3146_v23  ;;  %1128 = vmatpush.bf16.msra.mxu0 %v3146_v23  ;;  %v3155_v33 = vsub.f32 %v125_v7, %v470_v24  ;;  %v358_v36 = vpack.c.bf16 %v141_v20, %v141_v20  ;;  %v359_v38 = vpack.c.bf16 %v142_v25, %v142_v25  ;;  %v884_v51 = vunpack.c.l.b16 %v3160_v39  ;;  %v105_v7 = vld [vmem:[#allocation2 + $0xd0] sm:$0xff]  ;;  %v138_v19 = vld [vmem:[#allocation2 + $0x1d8] sm:$0xff] }
  0x14   :  { %6396 = vst [vmem:[#allocation9_spill] sm:$0xff] %v3152_v30  ;;  %1141 = vmatpush.bf16.msra.mxu1 %v3152_v30  ;;  %v3158_v37 = vsub.f32 %v126_v8, %v471_v31  ;;  %v3162_v40 = vpack.c.bf16 %v92_v27, %v92_v27  ;;  %v3164_v42 = vpack.c.b16 %v919_v35, %v918_v34  ;;  %v88_v35 = vld [vmem:[#allocation2 + $0x48] sm:$0xff]  ;;  %v97_v23 = vld [vmem:[#allocation2 + $0x90] sm:$0xff] }
  0x15   :  { %v486_v43 = vunpack.c.l.bf16 %v358_v36  ;;  %v934_v44 = vunpack.c.l.b16 %v358_v36  ;;  %v3166_v45 = vpack.c.bf16 %v107_v32, %v107_v32  ;;  %v487_v46 = vunpack.c.l.bf16 %v359_v38 }
  0x16   :  { %6397 = vst [vmem:[#allocation10_spill] sm:$0xff] %v3164_v42  ;;  %v935_v47 = vunpack.c.l.b16 %v359_v38  ;;  %1154 = vmatpush.bf16.msra.mxu2 %v3164_v42  ;;  %v885_v52 = vunpack.c.l.b16 %v3162_v40  ;;  %v3173_v53 = vpack.c.bf16 %v108_v41, %v108_v41  ;;  %v3183_v63 = vpack.c.bf16 %v123_v48, %v123_v48  ;;  %v103_v38 = vld [vmem:[#allocation2 + $0xc0] sm:$0xff] }
  0x17   :  { %v3169_v50 = vsub.f32 %v141_v20, %v486_v43  ;;  %v3175_v57 = vsub.f32 %v142_v25, %v487_v46  ;;  %v900_v59 = vunpack.c.l.b16 %v3166_v45  ;;  %v3186_v0 = vpack.c.bf16 %v124_v49, %v124_v49  ;;  %v87_v20 = vld [vmem:[#allocation2 + $0x40] sm:$0xff] }
  0x18   :  { %v3177_v58 = vpack.c.b16 %v935_v47, %v934_v44  ;;  %v3180_v61 = vpack.c.b16 %v885_v52, %v884_v51  ;;  %v901_v62 = vunpack.c.l.b16 %v3173_v53  ;;  %v3188_v1 = vpack.c.bf16 %v139_v54, %v139_v54  ;;  %v104_v51 = vld [vmem:[#allocation2 + $0xc8] sm:$0xff] }
  0x19   :  { %v3190_v2 = vpack.c.bf16 %v140_v55, %v140_v55  ;;  %v3192_v3 = vpack.c.bf16 %v89_v56, %v89_v56  ;;  %v916_v5 = vunpack.c.l.b16 %v3183_v63  ;;  %v3198_v6 = vpack.c.bf16 %v90_v60, %v90_v60  ;;  %v119_v56 = vld [vmem:[#allocation2 + $0x140] sm:$0xff] }
  0x1a   :  { %6398 = vst [vmem:[#allocation11_spill] sm:$0xff] %v3177_v58  ;;  %1167 = vmatpush.bf16.msra.mxu3 %v3177_v58  ;;  %1129 = vmatpush.bf16.msra.mxu0 %v3180_v61  ;;  %v3195_v4 = vpack.c.b16 %v901_v62, %v900_v59  ;;  %v917_v8 = vunpack.c.l.b16 %v3186_v0  ;;  %v932_v12 = vunpack.c.l.b16 %v3188_v1  ;;  %v3208_v18 = vpack.c.bf16 %v105_v7, %v105_v7  ;;  %v120_v59 = vld [vmem:[#allocation2 + $0x148] sm:$0xff]  ;;  %v135_v60 = vld [vmem:[#allocation2 + $0x1c0] sm:$0xff] }
  0x1b   :  { %6399 = vst [vmem:[#allocation12_spill] sm:$0xff] %v3180_v61  ;;  %v933_v13 = vunpack.c.l.b16 %v3190_v2  ;;  %v882_v16 = vunpack.c.l.b16 %v3192_v3  ;;  %v883_v17 = vunpack.c.l.b16 %v3198_v6  ;;  %v3212_v25 = vpack.c.bf16 %v106_v9, %v106_v9  ;;  %v136_v7 = vld [vmem:[#allocation2 + $0x1c8] sm:$0xff] }
  0x1c   :  { %6400 = vst [vmem:[#allocation13_spill] sm:$0xff] %v3190_v2  ;;  %1142 = vmatpush.bf16.msra.mxu1 %v3195_v4  ;;  %v3204_v15 = vpack.c.b16 %v917_v8, %v916_v5  ;;  %v3214_v26 = vpack.c.bf16 %v121_v10, %v121_v10  ;;  %v3216_v27 = vpack.c.bf16 %v122_v11, %v122_v11  ;;  %v898_v32 = vunpack.c.l.b16 %v3208_v18  ;;  %v85_v8 = vld [vmem:[#allocation2 + $0x30] sm:$0xff]  ;;  %v155_v2 = vld [vmem:[#allocation2 + $0x260] sm:$0xff] }
  0x1d   :  { %6401 = vst [vmem:[#allocation14_spill] sm:$0xff] %v3192_v3  ;;  %v3210_v24 = vpack.c.b16 %v933_v13, %v932_v12  ;;  %v3219_v31 = vpack.c.b16 %v883_v17, %v882_v16  ;;  %v3222_v34 = vpack.c.bf16 %v137_v14, %v137_v14  ;;  %v899_v36 = vunpack.c.l.b16 %v3212_v25  ;;  %v205_v3 = vld [vmem:[#allocation2 + $0x3f0] sm:$0xff] }
  0x1e   :  { %6402 = vst [vmem:[#allocation15_spill] sm:$0xff] %v3195_v4  ;;  %1155 = vmatpush.bf16.msra.mxu2 %v3204_v15  ;;  %v914_v41 = vunpack.c.l.b16 %v3214_v26  ;;  %v915_v43 = vunpack.c.l.b16 %v3216_v27  ;;  %v3229_v44 = vpack.c.bf16 %v138_v19, %v138_v19  ;;  %v3234_v48 = vpack.c.bf16 %v87_v20, %v87_v20  ;;  %v86_v20 = vld [vmem:[#allocation2 + $0x38] sm:$0xff]  ;;  %v81_v4 = vld [vmem:[#allocation2 + $0x10] sm:$0xff] }
  0x1f   :  { %6403 = vst [vmem:[#allocation16_spill] sm:$0xff] %v3198_v6  ;;  %1168 = vmatpush.bf16.msra.mxu3 %v3210_v24  ;;  %1130 = vmatpush.bf16.msra.mxu0 %v3219_v31  ;;  %v3231_v46 = vpack.c.b16 %v899_v36, %v898_v32  ;;  %v930_v47 = vunpack.c.l.b16 %v3222_v34  ;;  %v3236_v49 = vpack.c.bf16 %v88_v35, %v88_v35 }
  0x20   :  { %6404 = vst [vmem:[#allocation17_spill] sm:$0xff] %v3204_v15  ;;  %v3238_v52 = vpack.c.b16 %v915_v43, %v914_v41  ;;  %v931_v54 = vunpack.c.l.b16 %v3229_v44  ;;  %v3241_v55 = vpack.c.bf16 %v103_v38, %v103_v38  ;;  %v880_v62 = vunpack.c.l.b16 %v3234_v48  ;;  %v101_v43 = vld [vmem:[#allocation2 + $0xb0] sm:$0xff] }
  0x21   :  { %6405 = vst [vmem:[#allocation18_spill] sm:$0xff] %v3208_v18  ;;  %1143 = vmatpush.bf16.msra.mxu1 %v3231_v46  ;;  %v881_v5 = vunpack.c.l.b16 %v3236_v49  ;;  %v3249_v10 = vpack.c.bf16 %v104_v51, %v104_v51  ;;  %v3254_v13 = vpack.c.bf16 %v119_v56, %v119_v56  ;;  %v3256_v14 = vpack.c.bf16 %v120_v59, %v120_v59  ;;  %v117_v51 = vld [vmem:[#allocation2 + $0x130] sm:$0xff] }
  0x22   :  { %6406 = vst [vmem:[#allocation19_spill] sm:$0xff] %v3210_v24  ;;  %1156 = vmatpush.bf16.msra.mxu2 %v3238_v52  ;;  %v3247_v9 = vpack.c.b16 %v931_v54, %v930_v47  ;;  %v896_v11 = vunpack.c.l.b16 %v3241_v55  ;;  %v3258_v16 = vpack.c.bf16 %v135_v60, %v135_v60  ;;  %v3262_v19 = vpack.c.bf16 %v136_v7, %v136_v7  ;;  %v102_v47 = vld [vmem:[#allocation2 + $0xb8] sm:$0xff] }
  0x23   :  { %6407 = vst [vmem:[#allocation20_spill] sm:$0xff] %v3212_v25  ;;  %v3252_v12 = vpack.c.b16 %v881_v5, %v880_v62  ;;  %v897_v17 = vunpack.c.l.b16 %v3249_v10  ;;  %v3264_v32 = vpack.c.bf16 %v85_v8, %v85_v8  ;;  %v912_v38 = vunpack.c.l.b16 %v3254_v13  ;;  %v118_v62 = vld [vmem:[#allocation2 + $0x138] sm:$0xff]  ;;  %v133_v5 = vld [vmem:[#allocation2 + $0x1b0] sm:$0xff] }
  0x24   :  { %6408 = vst [vmem:[#allocation21_spill] sm:$0xff] %v3214_v26  ;;  %1169 = vmatpush.bf16.msra.mxu3 %v3247_v9  ;;  %v913_v41 = vunpack.c.l.b16 %v3256_v14  ;;  %v928_v60 = vunpack.c.l.b16 %v3258_v16  ;;  %v929_v8 = vunpack.c.l.b16 %v3262_v19  ;;  %v3280_v36 = vpack.c.bf16 %v86_v20, %v86_v20 }
  0x25   :  { %6409 = vst [vmem:[#allocation22_spill] sm:$0xff] %v3216_v27  ;;  %1131 = vmatpush.bf16.msra.mxu0 %v3252_v12  ;;  %v3273_v59 = vpack.c.b16 %v897_v17, %v896_v11  ;;  %v878_v35 = vunpack.c.l.b16 %v3264_v32  ;;  %v3284_v54 = vpack.c.bf16 %v101_v43, %v101_v43  ;;  %v3286_v56 = vpack.c.bf16 %v102_v47, %v102_v47  ;;  %v84_v17 = vld [vmem:[#allocation2 + $0x28] sm:$0xff] }
  0x26   :  { %6410 = vst [vmem:[#allocation23_spill] sm:$0xff] %v3219_v31  ;;  %v3277_v7 = vpack.c.b16 %v913_v41, %v912_v38  ;;  %v3288_v11 = vpack.c.bf16 %v117_v51, %v117_v51  ;;  %v3292_v38 = vpack.c.b16 %v929_v8, %v928_v60  ;;  %v879_v41 = vunpack.c.l.b16 %v3280_v36 }
  0x27   :  { %6411 = vst [vmem:[#allocation24_spill] sm:$0xff] %v3222_v34  ;;  %1144 = vmatpush.bf16.msra.mxu1 %v3273_v59  ;;  %v3295_v20 = vpack.c.bf16 %v118_v62, %v118_v62  ;;  %v894_v51 = vunpack.c.l.b16 %v3284_v54  ;;  %v3310_v31 = vpack.c.bf16 %v133_v5, %v133_v5  ;;  %v3317_v60 = vpack.c.bf16 %v84_v17, %v84_v17  ;;  %v79_v34 = vld [vmem:[#allocation2] sm:$0xff] }
  0x28   :  { %6412 = vst [vmem:[#allocation25_spill] sm:$0xff] %v3229_v44  ;;  %1157 = vmatpush.bf16.msra.mxu2 %v3277_v7  ;;  %1170 = vmatpush.bf16.msra.mxu3 %v3292_v38  ;;  %v3304_v62 = vpack.c.b16 %v879_v41, %v878_v35  ;;  %v132_v41 = vld [vmem:[#allocation2 + $0x1a8] sm:$0xff]  ;;  %v3409_v27 = vpack.c.bf16 %v79_v34, %v79_v34 }
  0x29   :  { %6413 = vst [vmem:[#allocation26_spill] sm:$0xff] %v3231_v46  ;;  %v910_v46 = vunpack.c.l.b16 %v3288_v11  ;;  %v911_v47 = vunpack.c.l.b16 %v3295_v20 }
  0x2a   :  { %6414 = vst [vmem:[#allocation27_spill] sm:$0xff] %v3234_v48  ;;  %1132 = vmatpush.bf16.msra.mxu0 %v3304_v62 }
  0x2b   :  { %6415 = vst [vmem:[#allocation28_spill] sm:$0xff] %v3236_v49  ;;  %v3326_v5 = vpack.c.b16 %v911_v47, %v910_v46  ;;  %v877_v47 = vunpack.c.l.b16 %v3317_v60  ;;  %v82_v46 = vld [vmem:[#allocation2 + $0x18] sm:$0xff] }
  0x2c   :  { %6416 = vst [vmem:[#allocation29_spill] sm:$0xff] %v3238_v52  ;;  %v99_v52 = vld [vmem:[#allocation2 + $0xa0] sm:$0xff] }
  0x2d   :  { %6417 = vst [vmem:[#allocation30_spill] sm:$0xff] %v3241_v55  ;;  %v3319_v8 = vpack.c.bf16 %v99_v52, %v99_v52  ;;  %1158 = vmatpush.bf16.msra.mxu2 %v3326_v5 }
  0x2e   :  { %6418 = vst [vmem:[#allocation31_spill] sm:$0xff] %v3247_v9  ;;  %v895_v9 = vunpack.c.l.b16 %v3286_v56 }
  0x2f   :  { %6419 = vst [vmem:[#allocation32_spill] sm:$0xff] %v3249_v10 }
  0x30   :  { %6420 = vst [vmem:[#allocation33_spill] sm:$0xff] %v3252_v12  ;;  %v83_v12 = vld [vmem:[#allocation2 + $0x20] sm:$0xff]  ;;  %v3307_v43 = vpack.c.b16 %v895_v9, %v894_v51  ;;  %v3349_v9 = vpack.c.bf16 %v132_v41, %v132_v41 }
  0x31   :  { %6421 = vst [vmem:[#allocation34_spill] sm:$0xff] %v3254_v13  ;;  %v3315_v15 = vpack.c.bf16 %v83_v12, %v83_v12  ;;  %v115_v51 = vld [vmem:[#allocation2 + $0x120] sm:$0xff]  ;;  %v130_v13 = vld [vmem:[#allocation2 + $0x198] sm:$0xff] }
  0x32   :  { %6422 = vst [vmem:[#allocation35_spill] sm:$0xff] %v3256_v14  ;;  %1145 = vmatpush.bf16.msra.mxu1 %v3307_v43  ;;  %v3341_v61 = vpack.c.bf16 %v115_v51, %v115_v51  ;;  %v925_v44 = vunpack.c.l.b16 %v3349_v9 }
  0x33   :  { %6423 = vst [vmem:[#allocation36_spill] sm:$0xff] %v3258_v16  ;;  %v3406_v16 = vpack.c.bf16 %v130_v13, %v130_v13 }
  0x34   :  { %6424 = vst [vmem:[#allocation37_spill] sm:$0xff] %v3262_v19 }
  0x35   :  { %6425 = vst [vmem:[#allocation38_spill] sm:$0xff] %v3264_v32 }
  0x36   :  { %6426 = vst [vmem:[#allocation39_spill] sm:$0xff] %v3273_v59  ;;  %v134_v59 = vld [vmem:[#allocation2 + $0x1b8] sm:$0xff] }
  0x37   :  { %6427 = vst [vmem:[#allocation40_spill] sm:$0xff] %v3277_v7  ;;  %v100_v7 = vld [vmem:[#allocation2 + $0xa8] sm:$0xff]  ;;  %v3312_v24 = vpack.c.bf16 %v134_v59, %v134_v59  ;;  %v926_v59 = vunpack.c.l.b16 %v3310_v31 }
  0x38   :  { %6428 = vst [vmem:[#allocation41_spill] sm:$0xff] %v3280_v36  ;;  %v3321_v35 = vpack.c.bf16 %v100_v7, %v100_v7  ;;  %v876_v7 = vunpack.c.l.b16 %v3315_v15 }
  0x39   :  { %6429 = vst [vmem:[#allocation42_spill] sm:$0xff] %v3284_v54  ;;  %v927_v52 = vunpack.c.l.b16 %v3312_v24  ;;  %v157_v54 = vld [vmem:[#allocation2 + $0x270] sm:$0xff] }
  0x3a   :  { %6430 = vst [vmem:[#allocation43_spill] sm:$0xff] %v3286_v56  ;;  %v893_v17 = vunpack.c.l.b16 %v3321_v35  ;;  %v3345_v42 = vpack.c.b16 %v877_v47, %v876_v7  ;;  %v113_v7 = vld [vmem:[#allocation2 + $0x110] sm:$0xff] }
  0x3b   :  { %6431 = vst [vmem:[#allocation44_spill] sm:$0xff] %v3288_v11  ;;  %v3338_v12 = vpack.c.b16 %v927_v52, %v926_v59  ;;  %v98_v52 = vld [vmem:[#allocation2 + $0x98] sm:$0xff]  ;;  %v3382_v55 = vpack.c.bf16 %v113_v7, %v113_v7 }
  0x3c   :  { %6432 = vst [vmem:[#allocation45_spill] sm:$0xff] %v3292_v38  ;;  %v131_v38 = vld [vmem:[#allocation2 + $0x1a0] sm:$0xff]  ;;  %1133 = vmatpush.bf16.msra.mxu0 %v3345_v42  ;;  %v3380_v10 = vpack.c.bf16 %v98_v52, %v98_v52 }
  0x3d   :  { %6433 = vst [vmem:[#allocation46_spill] sm:$0xff] %v3295_v20  ;;  %v3347_v30 = vpack.c.bf16 %v131_v38, %v131_v38  ;;  %1171 = vmatpush.bf16.msra.mxu3 %v3338_v12  ;;  %v3362_v38 = vld [vmem:[%s6060_s0] sm:$0xff] }
  0x3e   :  { %6434 = vst [vmem:[#allocation47_spill] sm:$0xff] %v3304_v62  ;;  %v116_v62 = vld [vmem:[#allocation2 + $0x128] sm:$0xff]  ;;  %v891_v7 = vunpack.c.l.b16 %v3380_v10 }
  0x3f   :  { %6435 = vst [vmem:[#allocation48_spill] sm:$0xff] %v3307_v43  ;;  %v892_v43 = vunpack.c.l.b16 %v3319_v8  ;;  %v3343_v58 = vpack.c.bf16 %v116_v62, %v116_v62  ;;  %v908_v62 = vunpack.c.l.b16 %v3341_v61 }
  0x40   :  { %6436 = vst [vmem:[#allocation49_spill] sm:$0xff] %v3310_v31 }
  0x41   :  { %6437 = vst [vmem:[#allocation50_spill] sm:$0xff] %v3312_v24  ;;  %v3356_v51 = vpack.c.b16 %v893_v17, %v892_v43  ;;  %v909_v47 = vunpack.c.l.b16 %v3343_v58  ;;  %v924_v43 = vunpack.c.l.b16 %v3347_v30  ;;  %v114_v17 = vld [vmem:[#allocation2 + $0x118] sm:$0xff] }
  0x42   :  { %6438 = vst [vmem:[#allocation51_spill] sm:$0xff] %v3315_v15 }
  0x43   :  { %6439 = vst [vmem:[#allocation52_spill] sm:$0xff] %v3317_v60  ;;  %1146 = vmatpush.bf16.msra.mxu1 %v3356_v51  ;;  %v3376_v41 = vpack.c.b16 %v909_v47, %v908_v62  ;;  %v3385_v48 = vpack.c.b16 %v925_v44, %v924_v43  ;;  %v80_v47 = vld [vmem:[#allocation2 + $0x8] sm:$0xff]  ;;  %v95_v44 = vld [vmem:[#allocation2 + $0x80] sm:$0xff]  ;;  %v906_v62 = vunpack.c.l.b16 %v3382_v55 }
  0x44   :  { %6440 = vst [vmem:[#allocation53_spill] sm:$0xff] %v3319_v8  ;;  %v96_v43 = vld [vmem:[#allocation2 + $0x88] sm:$0xff]  ;;  %v3411_v49 = vpack.c.bf16 %v80_v47, %v80_v47 }
  0x45   :  { %6441 = vst [vmem:[#allocation54_spill] sm:$0xff] %v3321_v35  ;;  %1159 = vmatpush.bf16.msra.mxu2 %v3376_v41  ;;  %1172 = vmatpush.bf16.msra.mxu3 %v3385_v48 }
  0x46   :  { %6442 = vst [vmem:[#allocation55_spill] sm:$0xff] %v3326_v5  ;;  %v3351_v5 = vpack.c.bf16 %v81_v4, %v81_v4 }
  0x47   :  { %6443 = vst [vmem:[#allocation56_spill] sm:$0xff] %v3338_v12  ;;  %v3373_v12 = vpack.c.bf16 %v82_v46, %v82_v46  ;;  %v129_v46 = vld [vmem:[#allocation2 + $0x190] sm:$0xff] }
  0x48   :  { %6444 = vst [vmem:[#allocation57_spill] sm:$0xff] %v3345_v42  ;;  %v874_v4 = vunpack.c.l.b16 %v3351_v5  ;;  %v3378_v42 = vpack.c.bf16 %v97_v23, %v97_v23  ;;  %v3404_v19 = vpack.c.bf16 %v129_v46, %v129_v46 }
  0x49   :  { %6445 = vst [vmem:[#allocation58_spill] sm:$0xff] %v3356_v51  ;;  %v875_v59 = vunpack.c.l.b16 %v3373_v12  ;;  %v3388_v51 = vpack.c.bf16 %v114_v17, %v114_v17  ;;  %v3413_v17 = vpack.c.bf16 %v95_v44, %v95_v44  ;;  %v923_v44 = vunpack.c.l.b16 %v3406_v16 }
  0x4a   :  { %209 = vst [vmem:[#allocation1] ss:$4 sm:$0xff] %v3362_v38  ;;  %v890_v52 = vunpack.c.l.b16 %v3378_v42  ;;  %v922_v13 = vunpack.c.l.b16 %v3404_v19 }
  0x4b   :  { %6446 = vst [vmem:[#allocation59_spill] sm:$0xff] %v3373_v12  ;;  %v3398_v14 = vpack.c.b16 %v875_v59, %v874_v4  ;;  %v3415_v59 = vpack.c.bf16 %v96_v43, %v96_v43  ;;  %v872_v43 = vunpack.c.l.b16 %v3409_v27  ;;  %v128_v4 = vld [vmem:[#allocation2 + $0x188] sm:$0xff] }
  0x4c   :  { %6447 = vst [vmem:[#allocation60_spill] sm:$0xff] %v3376_v41  ;;  %v3401_v23 = vpack.c.b16 %v891_v7, %v890_v52  ;;  %v907_v41 = vunpack.c.l.b16 %v3388_v51  ;;  %v111_v7 = vld [vmem:[#allocation2 + $0x100] sm:$0xff]  ;;  %v3432_v34 = vpack.c.b16 %v923_v44, %v922_v13  ;;  %v3443_v52 = vpack.c.bf16 %v128_v4, %v128_v4  ;;  %v174_v44 = vld [vmem:[#allocation2 + $0x2f8] sm:$0xff] }
  0x4d   :  { %6448 = vst [vmem:[#allocation61_spill] sm:$0xff] %v3378_v42  ;;  %1134 = vmatpush.bf16.msra.mxu0 %v3398_v14  ;;  %v889_v47 = vunpack.c.l.b16 %v3415_v59  ;;  %v3435_v20 = vpack.c.bf16 %v111_v7, %v111_v7  ;;  %v391_v32 = vpack.c.bf16 %v174_v44, %v174_v44 }
  0x4e   :  { %6449 = vst [vmem:[#allocation62_spill] sm:$0xff] %v3380_v10  ;;  %1147 = vmatpush.bf16.msra.mxu1 %v3401_v23  ;;  %v3420_v46 = vpack.c.b16 %v907_v41, %v906_v62  ;;  %v873_v62 = vunpack.c.l.b16 %v3411_v49  ;;  %v158_v41 = vld [vmem:[#allocation2 + $0x278] sm:$0xff]  ;;  %1173 = vmatpush.bf16.msra.mxu3 %v3432_v34 }
  0x4f   :  { %6450 = vst [vmem:[#allocation63_spill] sm:$0xff] %v3382_v55  ;;  %v904_v7 = vunpack.c.l.b16 %v3435_v20  ;;  %v519_v25 = vunpack.c.l.bf16 %v391_v32  ;;  %v967_v6 = vunpack.c.l.b16 %v391_v32 }
  0x50   :  { %6451 = vst [vmem:[#allocation64_spill] sm:$0xff] %v3385_v48  ;;  %v127_v48 = vld [vmem:[#allocation2 + $0x180] sm:$0xff]  ;;  %1160 = vmatpush.bf16.msra.mxu2 %v3420_v46  ;;  %v3439_v56 = vpack.c.b16 %v873_v62, %v872_v43  ;;  %v189_v43 = vld [vmem:[#allocation2 + $0x370] sm:$0xff] }
  0x51   :  { %6452 = vst [vmem:[#allocation65_spill] sm:$0xff] %v3388_v51  ;;  %v3441_v36 = vpack.c.bf16 %v127_v48, %v127_v48  ;;  %v190_v48 = vld [vmem:[#allocation2 + $0x378] sm:$0xff]  ;;  %v406_v8 = vpack.c.bf16 %v189_v43, %v189_v43 }
  0x52   :  { %6453 = vst [vmem:[#allocation66_spill] sm:$0xff] %v3398_v14  ;;  %v112_v14 = vld [vmem:[#allocation2 + $0x108] sm:$0xff]  ;;  %1135 = vmatpush.bf16.msra.mxu0 %v3439_v56 }
  0x53   :  { %6454 = vst [vmem:[#allocation67_spill] sm:$0xff] %v3401_v23  ;;  %v888_v23 = vunpack.c.l.b16 %v3413_v17  ;;  %v3437_v11 = vpack.c.bf16 %v112_v14, %v112_v14  ;;  %v173_v14 = vld [vmem:[#allocation2 + $0x2f0] sm:$0xff]  ;;  %v920_v24 = vunpack.c.l.b16 %v3441_v36 }
  0x54   :  { %6455 = vst [vmem:[#allocation68_spill] sm:$0xff] %v3404_v19  ;;  %v390_v15 = vpack.c.bf16 %v173_v14, %v173_v14 }
  0x55   :  { %6456 = vst [vmem:[#allocation69_spill] sm:$0xff] %v3406_v16  ;;  %v3448_v13 = vpack.c.b16 %v889_v47, %v888_v23  ;;  %v905_v62 = vunpack.c.l.b16 %v3437_v11  ;;  %v921_v23 = vunpack.c.l.b16 %v3443_v52  ;;  %v375_v47 = vpack.c.bf16 %v158_v41, %v158_v41 }
  0x56   :  { %6457 = vst [vmem:[#allocation70_spill] sm:$0xff] %v3409_v27  ;;  %v966_v18 = vunpack.c.l.b16 %v390_v15  ;;  %v3653_v27 = vld [vmem:[#allocation2 + $0x3c0] sm:$0xff] }
  0x57   :  { %6458 = vst [vmem:[#allocation71_spill] sm:$0xff] %v3411_v49  ;;  %1148 = vmatpush.bf16.msra.mxu1 %v3448_v13  ;;  %v3458_v60 = vpack.c.b16 %v905_v62, %v904_v7  ;;  %v3460_v4 = vpack.c.b16 %v921_v23, %v920_v24  ;;  %v951_v26 = vunpack.c.l.b16 %v375_v47  ;;  %v407_v24 = vpack.c.bf16 %v190_v48, %v190_v48 }
  0x58   :  { %6459 = vst [vmem:[#allocation72_spill] sm:$0xff] %v3413_v17  ;;  %v534_v23 = vunpack.c.l.bf16 %v406_v8  ;;  %v3660_v17 = vld [vmem:[#allocation2 + $0x3c8] sm:$0xff] }
  0x59   :  { %6460 = vst [vmem:[#allocation73_spill] sm:$0xff] %v3415_v59  ;;  %1161 = vmatpush.bf16.msra.mxu2 %v3458_v60  ;;  %1174 = vmatpush.bf16.msra.mxu3 %v3460_v4  ;;  %v535_v32 = vunpack.c.l.bf16 %v407_v24 }
  0x5a   :  { %6461 = vst [vmem:[#allocation74_spill] sm:$0xff] %v3420_v46  ;;  %v374_v46 = vpack.c.bf16 %v157_v54, %v157_v54 }
  0x5b   :  { %6462 = vst [vmem:[#allocation75_spill] sm:$0xff] %v3432_v34 }
  0x5c   :  { %6463 = vst [vmem:[#allocation76_spill] sm:$0xff] %v3435_v20  ;;  %v502_v31 = vunpack.c.l.bf16 %v374_v46  ;;  %v950_v34 = vunpack.c.l.b16 %v374_v46  ;;  %v206_v46 = vld [vmem:[#allocation2 + $0x3f8] sm:$0xff] }
  0x5d   :  { %6464 = vst [vmem:[#allocation77_spill] sm:$0xff] %v3437_v11 }
  0x5e   :  { %6465 = vst [vmem:[#allocation78_spill] sm:$0xff] %v3439_v56  ;;  %v503_v56 = vunpack.c.l.bf16 %v375_v47  ;;  %v3462_v35 = vsub.f32 %v157_v54, %v502_v31  ;;  %v3468_v62 = vpack.c.b16 %v951_v26, %v950_v34  ;;  %v156_v31 = vld [vmem:[#allocation2 + $0x268] sm:$0xff]  ;;  %v171_v54 = vld [vmem:[#allocation2 + $0x2e0] sm:$0xff]  ;;  %v422_v26 = vpack.c.bf16 %v205_v3, %v205_v3 }
  0x5f   :  { %6466 = vst [vmem:[#allocation79_spill] sm:$0xff] %v3441_v36  ;;  %v423_v34 = vpack.c.bf16 %v206_v46, %v206_v46 }
  0x60   :  { %6467 = vst [vmem:[#allocation80_spill] sm:$0xff] %v3443_v52  ;;  %v3466_v7 = vsub.f32 %v158_v41, %v503_v56  ;;  %1180 = vmatpush.bf16.msrb.mxu0 %v3468_v62  ;;  %v983_v56 = vunpack.c.l.b16 %v407_v24  ;;  %v3480_v41 = vpack.c.bf16 %v155_v2, %v155_v2  ;;  %v3494_v2 = vld [vmem:[#allocation2 + $0x368] sm:$0xff] }
  0x61   :  { %6468 = vst [vmem:[#allocation81_spill] sm:$0xff] %v3448_v13  ;;  %v518_v13 = vunpack.c.l.bf16 %v390_v15  ;;  %v982_v15 = vunpack.c.l.b16 %v406_v8  ;;  %v550_v8 = vunpack.c.l.bf16 %v422_v26  ;;  %v551_v24 = vunpack.c.l.bf16 %v423_v34 }
  0x62   :  { %6469 = vst [vmem:[#allocation82_spill] sm:$0xff] %v3458_v60  ;;  %v3472_v60 = vsub.f32 %v174_v44, %v519_v25  ;;  %v3484_v25 = vpack.c.bf16 %v171_v54, %v171_v54 }
  0x63   :  { %6470 = vst [vmem:[#allocation83_spill] sm:$0xff] %v3460_v4  ;;  %v3470_v47 = vsub.f32 %v173_v14, %v518_v13  ;;  %v3477_v4 = vsub.f32 %v189_v43, %v534_v23  ;;  %v172_v13 = vld [vmem:[#allocation2 + $0x2e8] sm:$0xff]  ;;  %v998_v14 = vunpack.c.l.b16 %v422_v26  ;;  %v999_v23 = vunpack.c.l.b16 %v423_v34  ;;  %v3507_v26 = vld [vmem:[#allocation2 + $0x250] sm:$0xff] }
  0x64   :  { %6471 = vst [vmem:[#allocation84_spill] sm:$0xff] %v3462_v35  ;;  %v3474_v35 = vpack.c.b16 %v967_v6, %v966_v18  ;;  %v3486_v6 = vsub.f32 %v190_v48, %v535_v32  ;;  %v3488_v18 = vpack.c.b16 %v983_v56, %v982_v15  ;;  %v948_v48 = vunpack.c.l.b16 %v3480_v41  ;;  %v3503_v32 = vld [vmem:[#allocation2 + $0x3e0] sm:$0xff]  ;;  %v3505_v56 = vld [vmem:[#allocation2 + $0x3e8] sm:$0xff] }
  0x65   :  { %6472 = vst [vmem:[#allocation85_spill] sm:$0xff] %v3466_v7  ;;  %v3482_v7 = vpack.c.bf16 %v156_v31, %v156_v31  ;;  %v3497_v31 = vsub.f32 %v205_v3, %v550_v8  ;;  %v3501_v15 = vpack.c.bf16 %v172_v13, %v172_v13  ;;  %v3510_v43 = vsub.f32 %v206_v46, %v551_v24  ;;  %v3515_v8 = vld [vmem:[#allocation2 + $0x258] sm:$0xff] }
  0x66   :  { %6473 = vst [vmem:[#allocation86_spill] sm:$0xff] %v3468_v62  ;;  %1193 = vmatpush.bf16.msrb.mxu1 %v3474_v35  ;;  %1206 = vmatpush.bf16.msrb.mxu2 %v3488_v18  ;;  %v3512_v44 = vpack.c.b16 %v999_v23, %v998_v14  ;;  %v964_v3 = vunpack.c.l.b16 %v3484_v25  ;;  %v3528_v46 = vpack.c.bf16 %v3494_v2, %v3494_v2 }
  0x67   :  { %6474 = vst [vmem:[#allocation87_spill] sm:$0xff] %v3470_v47  ;;  %v949_v54 = vunpack.c.l.b16 %v3482_v7  ;;  %v965_v62 = vunpack.c.l.b16 %v3501_v15  ;;  %v3532_v14 = vpack.c.bf16 %v3503_v32, %v3503_v32  ;;  %v3536_v24 = vpack.c.bf16 %v3505_v56, %v3505_v56 }
  0x68   :  { %6475 = vst [vmem:[#allocation88_spill] sm:$0xff] %v3472_v60  ;;  %1219 = vmatpush.bf16.msrb.mxu3 %v3512_v44  ;;  %v3540_v23 = vpack.c.bf16 %v3507_v26, %v3507_v26  ;;  %v3549_v34 = vpack.c.bf16 %v3515_v8, %v3515_v8 }
  0x69   :  { %6476 = vst [vmem:[#allocation89_spill] sm:$0xff] %v3474_v35  ;;  %v3492_v35 = vld [vmem:[#allocation2 + $0x360] sm:$0xff]  ;;  %v3518_v13 = vpack.c.b16 %v949_v54, %v948_v48  ;;  %v3544_v54 = vpack.c.b16 %v965_v62, %v964_v3  ;;  %v981_v3 = vunpack.c.l.b16 %v3528_v46  ;;  %v996_v48 = vunpack.c.l.b16 %v3532_v14 }
  0x6a   :  { %6477 = vst [vmem:[#allocation90_spill] sm:$0xff] %v3477_v4  ;;  %v997_v62 = vunpack.c.l.b16 %v3536_v24  ;;  %v947_v4 = vunpack.c.l.b16 %v3549_v34 }
  0x6b   :  { %6478 = vst [vmem:[#allocation91_spill] sm:$0xff] %v3480_v41  ;;  %1181 = vmatpush.bf16.msrb.mxu0 %v3518_v13  ;;  %1194 = vmatpush.bf16.msrb.mxu1 %v3544_v54 }
  0x6c   :  { %6479 = vst [vmem:[#allocation92_spill] sm:$0xff] %v3482_v7 }
  0x6d   :  { %6480 = vst [vmem:[#allocation93_spill] sm:$0xff] %v3484_v25 }
  0x6e   :  { %6481 = vst [vmem:[#allocation94_spill] sm:$0xff] %v3486_v6  ;;  %v946_v6 = vunpack.c.l.b16 %v3540_v23 }
  0x6f   :  { %6482 = vst [vmem:[#allocation95_spill] sm:$0xff] %v3488_v18 }
  0x70   :  { %6483 = vst [vmem:[#allocation96_spill] sm:$0xff] %v3492_v35 }
  0x71   :  { %6484 = vst [vmem:[#allocation97_spill] sm:$0xff] %v3494_v2  ;;  %v3584_v2 = vpack.c.b16 %v997_v62, %v996_v48  ;;  %v3602_v48 = vpack.c.b16 %v947_v4, %v946_v6  ;;  %v3618_v6 = vld [vmem:[#allocation2 + $0x2c0] sm:$0xff] }
  0x72   :  { %6485 = vst [vmem:[#allocation98_spill] sm:$0xff] %v3497_v31  ;;  %v3523_v31 = vpack.c.bf16 %v3492_v35, %v3492_v35 }
  0x73   :  { %6486 = vst [vmem:[#allocation99_spill] sm:$0xff] %v3501_v15  ;;  %1220 = vmatpush.bf16.msrb.mxu3 %v3584_v2  ;;  %1182 = vmatpush.bf16.msrb.mxu0 %v3602_v48 }
  0x74   :  { %6487 = vst [vmem:[#allocation100_spill] sm:$0xff] %v3503_v32  ;;  %v980_v18 = vunpack.c.l.b16 %v3523_v31  ;;  %v3564_v32 = vld [vmem:[#allocation2 + $0x350] sm:$0xff] }
  0x75   :  { %6488 = vst [vmem:[#allocation101_spill] sm:$0xff] %v3505_v56  ;;  %v3556_v56 = vld [vmem:[%s6060_s0 + $0x8] sm:$0xff] }
  0x76   :  { %6489 = vst [vmem:[#allocation102_spill] sm:$0xff] %v3507_v26  ;;  %v3574_v26 = vld [vmem:[#allocation2 + $0x3d0] sm:$0xff] }
  0x77   :  { %6490 = vst [vmem:[#allocation103_spill] sm:$0xff] %v3510_v43  ;;  %v3576_v43 = vpack.c.b16 %v981_v3, %v980_v18  ;;  %v3598_v3 = vld [vmem:[#allocation2 + $0x3d8] sm:$0xff] }
  0x78   :  { %6491 = vst [vmem:[#allocation104_spill] sm:$0xff] %v3512_v44  ;;  %v3551_v44 = vld [vmem:[#allocation2 + $0x2d0] sm:$0xff] }
  0x79   :  { %6492 = vst [vmem:[#allocation105_spill] sm:$0xff] %v3515_v8  ;;  %v3566_v8 = vld [vmem:[#allocation2 + $0x358] sm:$0xff]  ;;  %v3582_v60 = vpack.c.bf16 %v3551_v44, %v3551_v44  ;;  %1207 = vmatpush.bf16.msrb.mxu2 %v3576_v43 }
  0x7a   :  { %6493 = vst [vmem:[#allocation106_spill] sm:$0xff] %v3518_v13  ;;  %v3562_v13 = vld [vmem:[#allocation2 + $0x2d8] sm:$0xff]  ;;  %v3596_v18 = vpack.c.bf16 %v3566_v8, %v3566_v8 }
  0x7b   :  { %6494 = vst [vmem:[#allocation107_spill] sm:$0xff] %v3523_v31  ;;  %v3588_v35 = vpack.c.bf16 %v3562_v13, %v3562_v13  ;;  %v962_v62 = vunpack.c.l.b16 %v3582_v60  ;;  %v213_v31 = vld.sshfl [vmem:[#allocation1 + $0x8] sm:$0xff pattern:$0x73625140] }
  0x7c   :  { %6495 = vst [vmem:[#allocation108_spill] sm:$0xff] %v3528_v46  ;;  %v979_v19 = vunpack.c.l.b16 %v3596_v18  ;;  %v3790_v46 = vld [vmem:[#allocation2 + $0x2a0] sm:$0xff] }
  0x7d   :  { %6496 = vst [vmem:[#allocation109_spill] sm:$0xff] %v3532_v14  ;;  %v963_v4 = vunpack.c.l.b16 %v3588_v35 }
  0x7e   :  { %6497 = vst [vmem:[#allocation110_spill] sm:$0xff] %v3536_v24 }
  0x7f   :  { %6498 = vst [vmem:[#allocation111_spill] sm:$0xff] %v3540_v23  ;;  %v3628_v51 = vpack.c.b16 %v963_v4, %v962_v62  ;;  %v3647_v62 = vpack.c.bf16 %v3618_v6, %v3618_v6  ;;  %v3649_v4 = vld [vmem:[#allocation2 + $0x340] sm:$0xff] }
  0x80   :  { %6499 = vst [vmem:[#allocation112_spill] sm:$0xff] %v3544_v54  ;;  %v3592_v54 = vpack.c.bf16 %v3564_v32, %v3564_v32  ;;  %v3677_v11 = vpack.c.bf16 %v3649_v4, %v3649_v4 }
  0x81   :  { %6500 = vst [vmem:[#allocation113_spill] sm:$0xff] %v3549_v34  ;;  %1195 = vmatpush.bf16.msrb.mxu1 %v3628_v51  ;;  %v960_v16 = vunpack.c.l.b16 %v3647_v62 }
  0x82   :  { %6501 = vst [vmem:[#allocation114_spill] sm:$0xff] %v3551_v44  ;;  %v3611_v44 = vld [vmem:[#allocation2 + $0x248] sm:$0xff] }
  0x83   :  { %6502 = vst [vmem:[#allocation115_spill] sm:$0xff] %v3562_v13  ;;  %v3607_v13 = vpack.c.bf16 %v3574_v26, %v3574_v26 }
  0x84   :  { %6503 = vst [vmem:[#allocation116_spill] sm:$0xff] %v3564_v32  ;;  %v3609_v32 = vld [vmem:[#allocation2 + $0x240] sm:$0xff] }
  0x85   :  { %6504 = vst [vmem:[#allocation117_spill] sm:$0xff] %v3566_v8  ;;  %v3626_v8 = vpack.c.bf16 %v3598_v3, %v3598_v3  ;;  %v994_v47 = vunpack.c.l.b16 %v3607_v13 }
  0x86   :  { %211 = vst [vmem:[#allocation1 + $0x20] ss:$4 sm:$0xff] %v3556_v56 }
  0x87   :  { %6505 = vst [vmem:[#allocation118_spill] sm:$0xff] %v3574_v26  ;;  %v978_v26 = vunpack.c.l.b16 %v3592_v54 }
  0x88   :  { %6506 = vst [vmem:[#allocation119_spill] sm:$0xff] %v3576_v43  ;;  %v3637_v43 = vpack.c.bf16 %v3611_v44, %v3611_v44 }
  0x89   :  { %6507 = vst [vmem:[#allocation120_spill] sm:$0xff] %v3582_v60  ;;  %v3642_v49 = vpack.c.b16 %v979_v19, %v978_v26  ;;  %v3816_v60 = vld [vmem:[#allocation2 + $0x328] sm:$0xff] }
  0x8a   :  { %6508 = vst [vmem:[#allocation121_spill] sm:$0xff] %v3584_v2  ;;  %v3633_v2 = vpack.c.bf16 %v3609_v32, %v3609_v32  ;;  %v945_v26 = vunpack.c.l.b16 %v3637_v43  ;;  %v3836_v23 = vpack.c.bf16 %v3816_v60, %v3816_v60 }
  0x8b   :  { %6509 = vst [vmem:[#allocation122_spill] sm:$0xff] %v3588_v35  ;;  %1208 = vmatpush.bf16.msrb.mxu2 %v3642_v49  ;;  %v3814_v35 = vld [vmem:[#allocation2 + $0x320] sm:$0xff] }
  0x8c   :  { %6510 = vst [vmem:[#allocation123_spill] sm:$0xff] %v3592_v54  ;;  %v944_v19 = vunpack.c.l.b16 %v3633_v2 }
  0x8d   :  { %6511 = vst [vmem:[#allocation124_spill] sm:$0xff] %v3596_v18 }
  0x8e   :  { %6512 = vst [vmem:[#allocation125_spill] sm:$0xff] %v3598_v3  ;;  %v995_v3 = vunpack.c.l.b16 %v3626_v8 }
  0x8f   :  { %6513 = vst [vmem:[#allocation126_spill] sm:$0xff] %v3602_v48  ;;  %v3639_v48 = vld [vmem:[#allocation2 + $0x2c8] sm:$0xff] }
  0x90   :  { %6514 = vst [vmem:[#allocation127_spill] sm:$0xff] %v3607_v13  ;;  %v3666_v55 = vpack.c.b16 %v995_v3, %v994_v47  ;;  %v3685_v47 = vpack.c.bf16 %v3653_v27, %v3653_v27  ;;  %v976_v3 = vunpack.c.l.b16 %v3677_v11  ;;  %v3851_v13 = vld [vmem:[#allocation2 + $0x290] sm:$0xff] }
  0x91   :  { %6515 = vst [vmem:[#allocation128_spill] sm:$0xff] %v3609_v32  ;;  %v3651_v32 = vld [vmem:[#allocation2 + $0x348] sm:$0xff] }
  0x92   :  { %6516 = vst [vmem:[#allocation129_spill] sm:$0xff] %v3611_v44  ;;  %v3670_v44 = vpack.c.bf16 %v3639_v48, %v3639_v48  ;;  %v3681_v20 = vpack.c.bf16 %v3651_v32, %v3651_v32  ;;  %1221 = vmatpush.bf16.msrb.mxu3 %v3666_v55 }
  0x93   :  { %6517 = vst [vmem:[#allocation130_spill] sm:$0xff] %v3618_v6  ;;  %v3662_v6 = vld [vmem:[#allocation2 + $0x230] sm:$0xff] }
  0x94   :  { %6518 = vst [vmem:[#allocation131_spill] sm:$0xff] %v3626_v8  ;;  %v961_v59 = vunpack.c.l.b16 %v3670_v44 }
  0x95   :  { %6519 = vst [vmem:[#allocation132_spill] sm:$0xff] %v3628_v51  ;;  %v3673_v51 = vpack.c.b16 %v945_v26, %v944_v19  ;;  %v3692_v19 = vpack.c.bf16 %v3660_v17, %v3660_v17  ;;  %v3694_v26 = vld [vmem:[#allocation2 + $0x238] sm:$0xff] }
  0x96   :  { %6520 = vst [vmem:[#allocation133_spill] sm:$0xff] %v3633_v2  ;;  %v3713_v36 = vpack.c.b16 %v961_v59, %v960_v16  ;;  %v3724_v10 = vpack.c.bf16 %v3694_v26, %v3694_v26 }
  0x97   :  { %6521 = vst [vmem:[#allocation134_spill] sm:$0xff] %v3637_v43  ;;  %1183 = vmatpush.bf16.msrb.mxu0 %v3673_v51  ;;  %v993_v41 = vunpack.c.l.b16 %v3692_v19 }
  0x98   :  { %6522 = vst [vmem:[#allocation135_spill] sm:$0xff] %v3639_v48  ;;  %v3709_v48 = vld [vmem:[#allocation2 + $0x330] sm:$0xff]  ;;  %1196 = vmatpush.bf16.msrb.mxu1 %v3713_v36 }
  0x99   :  { %6523 = vst [vmem:[#allocation136_spill] sm:$0xff] %v3642_v49  ;;  %v3698_v49 = vpack.c.bf16 %v3662_v6, %v3662_v6 }
  0x9a   :  { %6524 = vst [vmem:[#allocation137_spill] sm:$0xff] %v3647_v62 }
  0x9b   :  { %6525 = vst [vmem:[#allocation138_spill] sm:$0xff] %v3649_v4  ;;  %v3705_v4 = vld [vmem:[#allocation2 + $0x2b0] sm:$0xff] }
  0x9c   :  { %6526 = vst [vmem:[#allocation139_spill] sm:$0xff] %v3651_v32  ;;  %v3716_v32 = vld [vmem:[#allocation2 + $0x338] sm:$0xff]  ;;  %v3730_v16 = vpack.c.bf16 %v3705_v4, %v3705_v4 }
  0x9d   :  { %6527 = vst [vmem:[#allocation140_spill] sm:$0xff] %v3653_v27  ;;  %v992_v27 = vunpack.c.l.b16 %v3685_v47 }
  0x9e   :  { %6528 = vst [vmem:[#allocation141_spill] sm:$0xff] %v3660_v17  ;;  %v3707_v17 = vld [vmem:[#allocation2 + $0x2b8] sm:$0xff] }
  0x9f   :  { %6529 = vst [vmem:[#allocation142_spill] sm:$0xff] %v3662_v6  ;;  %v942_v6 = vunpack.c.l.b16 %v3698_v49  ;;  %v3734_v59 = vpack.c.bf16 %v3707_v17, %v3707_v17  ;;  %v3742_v52 = vpack.c.b16 %v993_v41, %v992_v27  ;;  %v214_v41 = vld.sshfl [vmem:[#allocation1 + $0x10] sm:$0xff pattern:$0x73625140] }
  0xa0   :  { %6530 = vst [vmem:[#allocation143_spill] sm:$0xff] %v3666_v55  ;;  %v977_v55 = vunpack.c.l.b16 %v3681_v20 }
  0xa1   :  { %6531 = vst [vmem:[#allocation144_spill] sm:$0xff] %v3670_v44  ;;  %v959_v27 = vunpack.c.l.b16 %v3734_v59  ;;  %1222 = vmatpush.bf16.msrb.mxu3 %v3742_v52 }
  0xa2   :  { %6532 = vst [vmem:[#allocation145_spill] sm:$0xff] %v3673_v51  ;;  %v3719_v7 = vpack.c.b16 %v977_v55, %v976_v3  ;;  %v3738_v55 = vpack.c.bf16 %v3709_v48, %v3709_v48  ;;  %v212_v3 = vld.sshfl [vmem:[#allocation1] sm:$0xff pattern:$0x73625140]  ;;  %v958_v51 = vunpack.c.l.b16 %v3730_v16 }
  0xa3   :  { %6533 = vst [vmem:[#allocation146_spill] sm:$0xff] %v3677_v11  ;;  %v3910_v11 = vld [vmem:[#allocation2 + $0x200] sm:$0xff] }
  0xa4   :  { %6534 = vst [vmem:[#allocation147_spill] sm:$0xff] %v3681_v20  ;;  %1209 = vmatpush.bf16.msrb.mxu2 %v3719_v7  ;;  %v974_v42 = vunpack.c.l.b16 %v3738_v55  ;;  %v3763_v12 = vpack.c.b16 %v959_v27, %v958_v51  ;;  %v3783_v27 = vld [vmem:[#allocation2 + $0x228] sm:$0xff] }
  0xa5   :  { %6535 = vst [vmem:[#allocation148_spill] sm:$0xff] %v3685_v47 }
  0xa6   :  { %6536 = vst [vmem:[#allocation149_spill] sm:$0xff] %v3692_v19  ;;  %1197 = vmatpush.bf16.msrb.mxu1 %v3763_v12 }
  0xa7   :  { %6537 = vst [vmem:[#allocation150_spill] sm:$0xff] %v3694_v26  ;;  %v3749_v26 = vld [vmem:[#allocation2 + $0x3b0] sm:$0xff] }
  0xa8   :  { %6538 = vst [vmem:[#allocation151_spill] sm:$0xff] %v3698_v49 }
  0xa9   :  { %6539 = vst [vmem:[#allocation152_spill] sm:$0xff] %v3705_v4  ;;  %v3747_v4 = vpack.c.bf16 %v3716_v32, %v3716_v32 }
  0xaa   :  { %6540 = vst [vmem:[#allocation153_spill] sm:$0xff] %v3707_v17  ;;  %v3751_v17 = vld [vmem:[#allocation2 + $0x3b8] sm:$0xff] }
  0xab   :  { %6541 = vst [vmem:[#allocation154_spill] sm:$0xff] %v3709_v48  ;;  %v975_v15 = vunpack.c.l.b16 %v3747_v4  ;;  %v3768_v48 = vpack.c.bf16 %v3749_v26, %v3749_v26  ;;  %v3772_v24 = vpack.c.bf16 %v3751_v17, %v3751_v17 }
  0xac   :  { %6542 = vst [vmem:[#allocation155_spill] sm:$0xff] %v3713_v36  ;;  %v943_v36 = vunpack.c.l.b16 %v3724_v10 }
  0xad   :  { %6543 = vst [vmem:[#allocation156_spill] sm:$0xff] %v3716_v32  ;;  %v990_v32 = vunpack.c.l.b16 %v3768_v48 }
  0xae   :  { %6544 = vst [vmem:[#allocation157_spill] sm:$0xff] %v3719_v7  ;;  %v215_v7 = vld.sshfl [vmem:[#allocation1 + $0x18] sm:$0xff pattern:$0x73625140]  ;;  %v3760_v25 = vpack.c.b16 %v943_v36, %v942_v6  ;;  %v3777_v36 = vpack.c.bf16 %v213_v31, %v212_v3  ;;  %v3781_v6 = vld [vmem:[#allocation2 + $0x220] sm:$0xff]  ;;  %v991_v31 = vunpack.c.l.b16 %v3772_v24 }
  0xaf   :  { %6545 = vst [vmem:[#allocation158_spill] sm:$0xff] %v3724_v10  ;;  %v3779_v51 = vpack.c.bf16 %v215_v7, %v214_v41 }
  0xb0   :  { %6546 = vst [vmem:[#allocation159_spill] sm:$0xff] %v3730_v16  ;;  %1184 = vmatpush.bf16.msrb.mxu0 %v3760_v25  ;;  %v232_v7 = vunpack.c.l.bf16 %v3777_v36  ;;  %v233_v3 = vunpack.c.h.bf16 %v3777_v36 }
  0xb1   :  { %6547 = vst [vmem:[#allocation160_spill] sm:$0xff] %v3734_v59  ;;  %v234_v41 = vunpack.c.l.bf16 %v3779_v51 }
  0xb2   :  { %6548 = vst [vmem:[#allocation161_spill] sm:$0xff] %v3742_v52  ;;  %v235_v52 = vunpack.c.h.bf16 %v3779_v51 }
  0xb3   :  { %6549 = vst [vmem:[#allocation162_spill] sm:$0xff] %v3749_v26  ;;  %v248_v26 = vrot.slane %v233_v3, 6  ;;  %v249_v54 = vrot.slane %v234_v41, 4 }
  0xb4   :  { %6550 = vst [vmem:[#allocation163_spill] sm:$0xff] %v3751_v17  ;;  %v3787_v17 = vpack.c.b16 %v975_v15, %v974_v42  ;;  %v3800_v42 = vpack.c.bf16 %v3781_v6, %v3781_v6  ;;  %v3804_v15 = vpack.c.bf16 %v3783_v27, %v3783_v27  ;;  %v250_v34 = vrot.slane %v235_v52, 2 }
  0xb5   :  { %6551 = vst [vmem:[#allocation164_spill] sm:$0xff] %v3760_v25  ;;  %v3808_v25 = vpack.c.b16 %v991_v31, %v990_v32  ;;  %v255_v32 = vsel %vm254_vm0, %v232_v7, %v248_v26  ;;  %v3832_v52 = vpack.c.bf16 %v3814_v35, %v3814_v35  ;;  %v3840_v26 = vld [vmem:[#allocation2 + $0x3a8] sm:$0xff]  ;;  %v3842_v7 = vld [vmem:[#allocation2 + $0x210] sm:$0xff] }
  0xb6   :  { %6552 = vst [vmem:[#allocation165_spill] sm:$0xff] %v3763_v12  ;;  %1210 = vmatpush.bf16.msrb.mxu2 %v3787_v17  ;;  %v3806_v12 = vld [vmem:[#allocation2 + $0x2a8] sm:$0xff]  ;;  %v941_v31 = vunpack.c.l.b16 %v3804_v15  ;;  %v257_v41 = vsel %vm256_vm1, %v249_v54, %v250_v34 }
  0xb7   :  { %6553 = vst [vmem:[#allocation166_spill] sm:$0xff] %v3779_v51  ;;  %1223 = vmatpush.bf16.msrb.mxu3 %v3808_v25  ;;  %v3826_v3 = vpack.c.bf16 %v3806_v12, %v3806_v12  ;;  %v259_v34 = vsel %vm258_vm2, %v255_v32, %v257_v41  ;;  %v973_v32 = vunpack.c.l.b16 %v3836_v23  ;;  %v3869_v41 = vpack.c.bf16 %v3840_v26, %v3840_v26 }
  0xb8   :  { %6554 = vst [vmem:[#allocation167_spill] sm:$0xff] %v3781_v6  ;;  %v265_v51 = vsub.f32 %v3362_v38, %v259_v34  ;;  %v3873_v38 = vpack.c.bf16 %v3842_v7, %v3842_v7 }
  0xb9   :  { %6555 = vst [vmem:[#allocation168_spill] sm:$0xff] %v3783_v27  ;;  %v940_v27 = vunpack.c.l.b16 %v3800_v42 }
  0xba   :  { %6556 = vst [vmem:[#allocation169_spill] sm:$0xff] %v3787_v17  ;;  %v3812_v17 = vpack.c.bf16 %v3790_v46, %v3790_v46  ;;  %v938_v14 = vunpack.c.l.b16 %v3873_v38 }
  0xbb   :  { %6557 = vst [vmem:[#allocation170_spill] sm:$0xff] %v3790_v46  ;;  %v3846_v54 = vpack.c.b16 %v941_v31, %v940_v27  ;;  %v957_v46 = vunpack.c.l.b16 %v3826_v3 }
  0xbc   :  { %6558 = vst [vmem:[#allocation171_spill] sm:$0xff] %v3806_v12  ;;  %v956_v6 = vunpack.c.l.b16 %v3812_v17  ;;  %v972_v12 = vunpack.c.l.b16 %v3832_v52 }
  0xbd   :  { %6559 = vst [vmem:[#allocation172_spill] sm:$0xff] %v3808_v25  ;;  %v3838_v25 = vld [vmem:[#allocation2 + $0x3a0] sm:$0xff]  ;;  %1185 = vmatpush.bf16.msrb.mxu0 %v3846_v54 }
  0xbe   :  { %6560 = vst [vmem:[#allocation173_spill] sm:$0xff] %v3814_v35  ;;  %v3849_v35 = vld [vmem:[#allocation2 + $0x218] sm:$0xff]  ;;  %v3860_v27 = vpack.c.b16 %v957_v46, %v956_v6  ;;  %v3865_v31 = vpack.c.bf16 %v3838_v25, %v3838_v25  ;;  %v3881_v46 = vpack.c.bf16 %v3851_v13, %v3851_v13  ;;  %v3890_v18 = vpack.c.b16 %v973_v32, %v972_v12 }
  0xbf   :  { %6561 = vst [vmem:[#allocation174_spill] sm:$0xff] %v3816_v60  ;;  %v3853_v60 = vld [vmem:[#allocation2 + $0x298] sm:$0xff]  ;;  %v3877_v34 = vpack.c.bf16 %v3849_v35, %v3849_v35 }
  0xc0   :  { %6562 = vst [vmem:[#allocation175_spill] sm:$0xff] %v3838_v25  ;;  %v3885_v6 = vpack.c.bf16 %v3853_v60, %v3853_v60  ;;  %1198 = vmatpush.bf16.msrb.mxu1 %v3860_v27  ;;  %v3901_v25 = vld [vmem:[#allocation2 + $0x390] sm:$0xff]  ;;  %1211 = vmatpush.bf16.msrb.mxu2 %v3890_v18 }
  0xc1   :  { %6563 = vst [vmem:[#allocation176_spill] sm:$0xff] %v3840_v26 }
  0xc2   :  { %6564 = vst [vmem:[#allocation177_spill] sm:$0xff] %v3842_v7  ;;  %v3895_v7 = vld [vmem:[#allocation2 + $0x318] sm:$0xff]  ;;  %v955_v20 = vunpack.c.l.b16 %v3885_v6 }
  0xc3   :  { %6565 = vst [vmem:[#allocation178_spill] sm:$0xff] %v3846_v54  ;;  %v988_v54 = vunpack.c.l.b16 %v3865_v31  ;;  %v3921_v12 = vpack.c.bf16 %v3895_v7, %v3895_v7 }
  0xc4   :  { %6566 = vst [vmem:[#allocation179_spill] sm:$0xff] %v3849_v35  ;;  %v3893_v35 = vld [vmem:[#allocation2 + $0x310] sm:$0xff] }
  0xc5   :  { %6567 = vst [vmem:[#allocation180_spill] sm:$0xff] %v3851_v13  ;;  %v954_v13 = vunpack.c.l.b16 %v3881_v46  ;;  %v3917_v44 = vpack.c.bf16 %v3893_v35, %v3893_v35 }
  0xc6   :  { %6568 = vst [vmem:[#allocation181_spill] sm:$0xff] %v3853_v60  ;;  %v989_v60 = vunpack.c.l.b16 %v3869_v41 }
  0xc7   :  { %6569 = vst [vmem:[#allocation182_spill] sm:$0xff] %v3860_v27  ;;  %v939_v27 = vunpack.c.l.b16 %v3877_v34  ;;  %v3943_v32 = vpack.c.b16 %v955_v20, %v954_v13  ;;  %v970_v49 = vunpack.c.l.b16 %v3917_v44  ;;  %v971_v20 = vunpack.c.l.b16 %v3921_v12 }
  0xc8   :  { %6570 = vst [vmem:[#allocation183_spill] sm:$0xff] %v3865_v31  ;;  %v3912_v26 = vpack.c.b16 %v989_v60, %v988_v54  ;;  %v3933_v60 = vpack.c.bf16 %v3901_v25, %v3901_v25 }
  0xc9   :  { %269 = vst [vmem:[#allocation1] ss:$4 sm:$0xff] %v265_v51  ;;  %v3903_v51 = vld [vmem:[#allocation2 + $0x398] sm:$0xff]  ;;  %v3929_v19 = vpack.c.b16 %v939_v27, %v938_v14  ;;  %v3948_v14 = vpack.c.bf16 %v3910_v11, %v3910_v11  ;;  %v3950_v27 = vld [vmem:[#allocation2 + $0x280] sm:$0xff]  ;;  %1199 = vmatpush.bf16.msrb.mxu1 %v3943_v32  ;;  %v3969_v16 = vpack.c.b16 %v971_v20, %v970_v49 }
  0xca   :  { %6571 = vst [vmem:[#allocation184_spill] sm:$0xff] %v3890_v18  ;;  %v3927_v18 = vld [vmem:[%s6061_s1] sm:$0xff]  ;;  %v3937_v54 = vpack.c.bf16 %v3903_v51, %v3903_v51  ;;  %1224 = vmatpush.bf16.msrb.mxu3 %v3912_v26  ;;  %v986_v13 = vunpack.c.l.b16 %v3933_v60  ;;  %v3983_v49 = vpack.c.bf16 %v3950_v27, %v3950_v27 }
  0xcb   :  { %6572 = vst [vmem:[#allocation185_spill] sm:$0xff] %v3893_v35  ;;  %v3939_v35 = vld [vmem:[#allocation2 + $0x208] sm:$0xff]  ;;  %1186 = vmatpush.bf16.msrb.mxu0 %v3929_v19  ;;  %1212 = vmatpush.bf16.msrb.mxu2 %v3969_v16 }
  0xcc   :  { %6573 = vst [vmem:[#allocation186_spill] sm:$0xff] %v3895_v7  ;;  %v987_v8 = vunpack.c.l.b16 %v3937_v54  ;;  %v3965_v47 = vpack.c.bf16 %v3939_v35, %v3939_v35 }
  0xcd   :  { %6574 = vst [vmem:[#allocation187_spill] sm:$0xff] %v3901_v25  ;;  %v3952_v25 = vld [vmem:[#allocation2 + $0x288] sm:$0xff] }
  0xce   :  { %6575 = vst [vmem:[#allocation188_spill] sm:$0xff] %v3903_v51  ;;  %v3954_v51 = vld [vmem:[#allocation2 + $0x300] sm:$0xff]  ;;  %v937_v7 = vunpack.c.l.b16 %v3965_v47 }
  0xcf   :  { %6576 = vst [vmem:[#allocation189_spill] sm:$0xff] %v3910_v11 }
  0xd0   :  { %6577 = vst [vmem:[#allocation190_spill] sm:$0xff] %v3912_v26  ;;  %v274_v10 = vld.sshfl [vmem:[#allocation1 + $0x10] sm:$0xff pattern:$0x73625140] }
  0xd1   :  { %6578 = vst [vmem:[#allocation191_spill] sm:$0xff] %v3929_v19  ;;  %v272_v26 = vld.sshfl [vmem:[#allocation1] sm:$0xff pattern:$0x73625140]  ;;  %v290_v11 = vpack.c.bf16 %v274_v10, %v274_v10  ;;  %v3971_v10 = vld [vmem:[#allocation2 + $0x308] sm:$0xff] }
  0xd2   :  { %6579 = vst [vmem:[#allocation192_spill] sm:$0xff] %v3937_v54  ;;  %v288_v62 = vpack.c.bf16 %v272_v26, %v272_v26  ;;  %v275_v43 = vld.sshfl [vmem:[#allocation1 + $0x18] sm:$0xff pattern:$0x73625140]  ;;  %v3973_v26 = vld [vmem:[#allocation2 + $0x380] sm:$0xff]  ;;  %v3976_v54 = vpack.c.b16 %v987_v8, %v986_v13 }
  0xd3   :  { %6580 = vst [vmem:[#allocation193_spill] sm:$0xff] %v3939_v35  ;;  %v273_v2 = vld.sshfl [vmem:[#allocation1 + $0x8] sm:$0xff pattern:$0x73625140]  ;;  %v291_v59 = vpack.c.bf16 %v275_v43, %v275_v43  ;;  %1162 = vmatmul.bf16.vlgmr.msra.gmra.mxu2 %v290_v11  ;;  %v936_v35 = vunpack.c.l.b16 %v3948_v14  ;;  %v3991_v11 = vpack.c.bf16 %v3954_v51, %v3954_v51  ;;  %v4006_v20 = vpack.c.bf16 %v3973_v26, %v3973_v26 }
  0xd4   :  { %6581 = vst [vmem:[#allocation194_spill] sm:$0xff] %v3943_v32  ;;  %v289_v19 = vpack.c.bf16 %v273_v2, %v273_v2  ;;  %1136 = vmatmul.bf16.vlgmr.msra.gmra.mxu0 %v288_v62  ;;  %v3987_v2 = vpack.c.bf16 %v3952_v25, %v3952_v25  ;;  %1225 = vmatpush.bf16.msrb.mxu3 %v3976_v54  ;;  %v952_v43 = vunpack.c.l.b16 %v3983_v49 }
  0xd5   :  { %6582 = vst [vmem:[#allocation195_spill] sm:$0xff] %v3950_v27  ;;  %1175 = vmatmul.bf16.vlgmr.msra.gmra.mxu3 %v291_v59  ;;  %v3996_v62 = vpack.c.b16 %v937_v7, %v936_v35  ;;  %v4002_v59 = vld [vmem:[#allocation2 + $0x388] sm:$0xff]  ;;  %v984_v13 = vunpack.c.l.b16 %v4006_v20  ;;  %v687_v7 = vpack.c.bf16 %v3144_v22, %v3142_v21  ;;  %v217_v21 = vld.sshfl [vmem:[#allocation1 + $0x28] sm:$0xff pattern:$0x73625140] }
  0xd6   :  { %6583 = vst [vmem:[#allocation196_spill] sm:$0xff] %v3952_v25  ;;  %1149 = vmatmul.bf16.vlgmr.msra.gmra.mxu1 %v289_v19  ;;  %v4000_v19 = vpack.c.bf16 %v3971_v10, %v3971_v10  ;;  %v953_v32 = vunpack.c.l.b16 %v3987_v2  ;;  %v4022_v8 = vpack.c.bf16 %v4002_v59, %v4002_v59 }
  0xd7   :  { %6584 = vst [vmem:[#allocation197_spill] sm:$0xff] %v3954_v51  ;;  %1187 = vmatpush.bf16.msrb.mxu0 %v3996_v62 }
  0xd8   :  { %1541 = vst [vmem:[#allocation1] ss:$4 sm:$0xff] %v3927_v18 }
  0xd9   :  { %6585 = vst [vmem:[#allocation198_spill] sm:$0xff] %v3969_v16  ;;  %v969_v16 = vunpack.c.l.b16 %v4000_v19 }
  0xda   :  { %6586 = vst [vmem:[#allocation199_spill] sm:$0xff] %v3971_v10  ;;  %v4018_v10 = vpack.c.b16 %v953_v32, %v952_v43  ;;  %v703_v32 = vpack.c.bf16 %v3158_v37, %v3155_v33  ;;  %v2951_v37 = vld [vmem:[#allocation2 + $0x68] sm:$0xff] }
  0xdb   :  { %6587 = vst [vmem:[#allocation200_spill] sm:$0xff] %v3973_v26  ;;  %1260 = vmatpush.bf16.msra.mxu0 %v687_v7  ;;  %v216_v7 = vld.sshfl [vmem:[#allocation1 + $0x20] sm:$0xff pattern:$0x73625140] }
  0xdc   :  { %6588 = vst [vmem:[#allocation201_spill] sm:$0xff] %v3976_v54  ;;  %v968_v54 = vunpack.c.l.b16 %v3991_v11  ;;  %1200 = vmatpush.bf16.msrb.mxu1 %v4018_v10 }
  0xdd   :  { %6589 = vst [vmem:[#allocation202_spill] sm:$0xff] %v3996_v62  ;;  %v695_v62 = vpack.c.bf16 %v3150_v29, %v3148_v28  ;;  %v2950_v28 = vld [vmem:[#allocation2 + $0x60] sm:$0xff]  ;;  %v6596_v29 = vunpack.c.l.bf16 %v3160_v39 }
  0xde   :  { %6590 = vst [vmem:[#allocation203_spill] sm:$0xff] %v4002_v59  ;;  %v4025_v25 = vpack.c.b16 %v969_v16, %v968_v54  ;;  %v985_v16 = vunpack.c.l.b16 %v4022_v8  ;;  %v711_v54 = vpack.c.bf16 %v3175_v57, %v3169_v50  ;;  %v2952_v57 = vld [vmem:[#allocation2 + $0xe0] sm:$0xff] }
  0xdf   :  { %6591 = vst [vmem:[#allocation204_spill] sm:$0xff] %v4018_v10  ;;  %v1542_v51 = vld.sshfl [vmem:[#allocation1] sm:$0xff pattern:$0x73625140]  ;;  %v564_v33 = vsub.f32 %v2950_v28, %v6596_v29  ;;  %v2953_v29 = vld [vmem:[#allocation2 + $0xe8] sm:$0xff] }
  0xe0   :  { %6592 = vst [vmem:[#allocation205_spill] sm:$0xff] %v4022_v8  ;;  %v1543_v35 = vld.sshfl [vmem:[#allocation1 + $0x8] sm:$0xff pattern:$0x73625140]  ;;  %1213 = vmatpush.bf16.msrb.mxu2 %v4025_v25  ;;  %v4050_v50 = vpack.c.b16 %v985_v16, %v984_v13  ;;  %1273 = vmatpush.bf16.msra.mxu1 %v695_v62 }
  0xe1   :  { %6593 = vst [vmem:[#allocation206_spill] sm:$0xff] %v4025_v25  ;;  %v1544_v26 = vld.sshfl [vmem:[#allocation1 + $0x10] sm:$0xff pattern:$0x73625140]  ;;  %v4034_v27 = vpack.c.bf16 %v1543_v35, %v1542_v51  ;;  %v6597_v51 = vunpack.c.l.bf16 %v3162_v40  ;;  %v2954_v62 = vld [vmem:[#allocation2 + $0x160] sm:$0xff] }
  0xe2   :  { %v1545_v59 = vld.sshfl [vmem:[#allocation1 + $0x18] sm:$0xff pattern:$0x73625140]  ;;  %6598 = vst [vmem:[#allocation209_spill] sm:$0xff] %v4050_v50  ;;  %1226 = vmatpush.bf16.msrb.mxu3 %v4050_v50  ;;  %v2956_v8 = vld [vmem:[#allocation2 + $0x1e0] sm:$0xff] }
  0xe3   :  { %6594 = vst [vmem:[#allocation207_spill] sm:$0xff] %v4034_v27  ;;  %v4041_v22 = vpack.c.bf16 %v1545_v59, %v1544_v26  ;;  %v565_v35 = vsub.f32 %v2951_v37, %v6597_v51  ;;  %v1552_v43 = vunpack.c.l.bf16 %v4034_v27  ;;  %v1553_v10 = vunpack.c.h.bf16 %v4034_v27  ;;  %v218_v27 = vld.sshfl [vmem:[#allocation1 + $0x30] sm:$0xff pattern:$0x73625140] }
  0xe4   :  { %1286 = vmatpush.bf16.msra.mxu2 %v703_v32  ;;  %v6599_v26 = vunpack.c.l.bf16 %v3166_v45  ;;  %v6600_v37 = vunpack.c.l.bf16 %v3173_v53  ;;  %v219_v13 = vld.sshfl [vmem:[#allocation1 + $0x38] sm:$0xff pattern:$0x73625140]  ;;  %v6601_v45 = vunpack.c.l.bf16 %v3183_v63 }
  0xe5   :  { %6595 = vst [vmem:[#allocation208_spill] sm:$0xff] %v4041_v22  ;;  %v1554_v39 = vunpack.c.l.bf16 %v4041_v22  ;;  %v1555_v28 = vunpack.c.h.bf16 %v4041_v22  ;;  %v686_v40 = vpack.c.bf16 %v565_v35, %v564_v33  ;;  %v1560_v16 = vrot.slane %v1553_v10, 6  ;;  %v2957_v10 = vld [vmem:[#allocation2 + $0x1e8] sm:$0xff] }
  0xe6   :  { %v580_v59 = vsub.f32 %v2952_v57, %v6599_v26  ;;  %v581_v51 = vsub.f32 %v2953_v29, %v6600_v37  ;;  %v596_v32 = vsub.f32 %v2954_v62, %v6601_v45  ;;  %v2955_v57 = vld [vmem:[#allocation2 + $0x168] sm:$0xff]  ;;  %v6602_v26 = vunpack.c.l.bf16 %v3186_v0  ;;  %1299 = vmatpush.bf16.msra.mxu3 %v711_v54 }
  0xe7   :  { %v6603_v33 = vunpack.c.l.bf16 %v3188_v1  ;;  %v1561_v22 = vrot.slane %v1554_v39, 4  ;;  %v1562_v53 = vrot.slane %v1555_v28, 2  ;;  %1261 = vmatpush.bf16.msra.mxu0 %v686_v40  ;;  %v6604_v37 = vld [vmem:[#allocation13_spill] sm:$0xff]  ;;  %v1563_v63 = vsel %vm254_vm0, %v1552_v43, %v1560_v16  ;;  %v6606_v39 = vld [vmem:[#allocation14_spill] sm:$0xff]  ;;  %v6608_v40 = vld [vmem:[#allocation16_spill] sm:$0xff] }
  0xe8   :  { %v597_v25 = vsub.f32 %v2955_v57, %v6602_v26  ;;  %v694_v29 = vpack.c.bf16 %v581_v51, %v580_v59  ;;  %v6605_v50 = vunpack.c.l.bf16 %v6604_v37  ;;  %v4068_v45 = vpack.c.bf16 %v217_v21, %v216_v7  ;;  %v2959_v59 = vld [vmem:[#allocation2 + $0x58] sm:$0xff]  ;;  %v2960_v7 = vld [vmem:[#allocation2 + $0xd0] sm:$0xff] }
  0xe9   :  { %v612_v35 = vsub.f32 %v2956_v8, %v6603_v33  ;;  %v4070_v0 = vpack.c.bf16 %v219_v13, %v218_v27  ;;  %v1564_v57 = vsel %vm256_vm1, %v1561_v22, %v1562_v53  ;;  %v2958_v8 = vld [vmem:[#allocation2 + $0x50] sm:$0xff]  ;;  %v6607_v54 = vunpack.c.l.bf16 %v6606_v39  ;;  %v2961_v53 = vld [vmem:[#allocation2 + $0xd8] sm:$0xff] }
  0xea   :  { %v613_v31 = vsub.f32 %v2957_v10, %v6605_v50  ;;  %v702_v62 = vpack.c.bf16 %v597_v25, %v596_v32  ;;  %1274 = vmatpush.bf16.msra.mxu1 %v694_v29  ;;  %v6609_v51 = vunpack.c.l.bf16 %v6608_v40  ;;  %v1565_v50 = vsel %vm258_vm2, %v1563_v63, %v1564_v57  ;;  %v6610_v13 = vld [vmem:[#allocation18_spill] sm:$0xff]  ;;  %v6612_v29 = vld [vmem:[#allocation20_spill] sm:$0xff] }
  0xeb   :  { %v562_v28 = vsub.f32 %v2958_v8, %v6607_v54  ;;  %v236_v25 = vunpack.c.l.bf16 %v4068_v45  ;;  %v237_v27 = vunpack.c.h.bf16 %v4068_v45  ;;  %v238_v43 = vunpack.c.l.bf16 %v4070_v0  ;;  %v2962_v63 = vld [vmem:[#allocation2 + $0x150] sm:$0xff]  ;;  %v6618_v40 = vld [vmem:[#allocation24_spill] sm:$0xff] }
  0xec   :  { %v710_v1 = vpack.c.bf16 %v613_v31, %v612_v35  ;;  %v563_v26 = vsub.f32 %v2959_v59, %v6609_v51  ;;  %1287 = vmatpush.bf16.msra.mxu2 %v702_v62  ;;  %v1567_v21 = vsub.f32 %v3927_v18, %v1565_v50  ;;  %v239_v31 = vunpack.c.h.bf16 %v4070_v0  ;;  %v6614_v62 = vld [vmem:[#allocation21_spill] sm:$0xff]  ;;  %v6616_v39 = vld [vmem:[#allocation22_spill] sm:$0xff]  ;;  %v2965_v50 = vld [vmem:[#allocation2 + $0x1d8] sm:$0xff] }
  0xed   :  { %v6611_v16 = vunpack.c.l.bf16 %v6610_v13  ;;  %v251_v33 = vrot.slane %v237_v27, 6  ;;  %v252_v35 = vrot.slane %v238_v43, 4  ;;  %v6613_v10 = vunpack.c.l.bf16 %v6612_v29  ;;  %v2964_v59 = vld [vmem:[#allocation2 + $0x1d0] sm:$0xff]  ;;  %v6620_v27 = vld [vmem:[#allocation25_spill] sm:$0xff]  ;;  %v6622_v29 = vld [vmem:[#allocation27_spill] sm:$0xff] }
  0xee   :  { %1300 = vmatpush.bf16.msra.mxu3 %v710_v1  ;;  %v685_v22 = vpack.c.bf16 %v563_v26, %v562_v28  ;;  %v6615_v57 = vunpack.c.l.bf16 %v6614_v62  ;;  %1569 = vst [vmem:[#allocation1] ss:$4 sm:$0xff] %v1567_v21  ;;  %v253_v18 = vrot.slane %v239_v31, 2  ;;  %v2963_v1 = vld [vmem:[#allocation2 + $0x158] sm:$0xff]  ;;  %v6617_v54 = vunpack.c.l.bf16 %v6616_v39 }
  0xef   :  { %v578_v32 = vsub.f32 %v2960_v7, %v6611_v16  ;;  %v579_v37 = vsub.f32 %v2961_v53, %v6613_v10  ;;  %v6619_v51 = vunpack.c.l.bf16 %v6618_v40  ;;  %v6621_v43 = vunpack.c.l.bf16 %v6620_v27  ;;  %v2966_v53 = vld [vmem:[#allocation2 + $0x40] sm:$0xff] }
  0xf0   :  { %v594_v8 = vsub.f32 %v2962_v63, %v6615_v57  ;;  %1262 = vmatpush.bf16.msra.mxu0 %v685_v22  ;;  %v595_v28 = vsub.f32 %v2963_v1, %v6617_v54  ;;  %v260_v13 = vsel %vm254_vm0, %v236_v25, %v251_v33  ;;  %v6623_v21 = vunpack.c.l.bf16 %v6622_v29  ;;  %v2967_v22 = vld [vmem:[#allocation2 + $0x48] sm:$0xff]  ;;  %v6624_v10 = vld [vmem:[#allocation28_spill] sm:$0xff] }
  0xf1   :  { %v610_v26 = vsub.f32 %v2964_v59, %v6619_v51  ;;  %v611_v7 = vsub.f32 %v2965_v50, %v6621_v43  ;;  %v693_v16 = vpack.c.bf16 %v579_v37, %v578_v32  ;;  %v6625_v63 = vunpack.c.l.bf16 %v6624_v10  ;;  %v2968_v54 = vld [vmem:[#allocation2 + $0xc0] sm:$0xff]  ;;  %v6626_v59 = vld [vmem:[#allocation30_spill] sm:$0xff]  ;;  %v2969_v32 = vld [vmem:[#allocation2 + $0xc8] sm:$0xff] }
  0xf2   :  { %v560_v31 = vsub.f32 %v2966_v53, %v6623_v21  ;;  %v261_v57 = vsel %vm256_vm1, %v252_v35, %v253_v18  ;;  %v701_v1 = vpack.c.bf16 %v595_v28, %v594_v8  ;;  %v6627_v40 = vunpack.c.l.bf16 %v6626_v59  ;;  %v6628_v33 = vld [vmem:[#allocation32_spill] sm:$0xff]  ;;  %v6630_v53 = vld [vmem:[#allocation34_spill] sm:$0xff]  ;;  %v2971_v18 = vld [vmem:[#allocation2 + $0x148] sm:$0xff] }
  0xf3   :  { %v561_v62 = vsub.f32 %v2967_v22, %v6625_v63  ;;  %v709_v39 = vpack.c.bf16 %v611_v7, %v610_v26  ;;  %v262_v50 = vsel %vm258_vm2, %v260_v13, %v261_v57  ;;  %1275 = vmatpush.bf16.msra.mxu1 %v693_v16  ;;  %v6629_v37 = vunpack.c.l.bf16 %v6628_v33  ;;  %v2970_v43 = vld [vmem:[#allocation2 + $0x140] sm:$0xff]  ;;  %v6632_v28 = vld [vmem:[#allocation35_spill] sm:$0xff]  ;;  %v2973_v63 = vld [vmem:[#allocation2 + $0x1c8] sm:$0xff] }
  0xf4   :  { %v576_v51 = vsub.f32 %v2968_v54, %v6627_v40  ;;  %v6631_v29 = vunpack.c.l.bf16 %v6630_v53  ;;  %v541_v35 = vunpack.c.l.bf16 %v3869_v41  ;;  %v266_v8 = vsub.f32 %v3556_v56, %v262_v50  ;;  %1288 = vmatpush.bf16.msra.mxu2 %v701_v1  ;;  %v2972_v13 = vld [vmem:[#allocation2 + $0x1c0] sm:$0xff]  ;;  %v2974_v59 = vld [vmem:[#allocation2 + $0x30] sm:$0xff]  ;;  %v2975_v1 = vld [vmem:[#allocation2 + $0x38] sm:$0xff] }
  0xf5   :  { %v684_v25 = vpack.c.bf16 %v561_v62, %v560_v31  ;;  %v577_v27 = vsub.f32 %v2969_v32, %v6629_v37  ;;  %1301 = vmatpush.bf16.msra.mxu3 %v709_v39  ;;  %v6633_v26 = vunpack.c.l.bf16 %v6632_v28  ;;  %v6634_v16 = vld [vmem:[#allocation36_spill] sm:$0xff]  ;;  %v6636_v62 = vld [vmem:[#allocation37_spill] sm:$0xff]  ;;  %v6638_v40 = vld [vmem:[#allocation38_spill] sm:$0xff]  ;;  %v6817_v41 = vunpack.c.l.bf16 %v3917_v44 }
  0xf6   :  { %v592_v21 = vsub.f32 %v2970_v43, %v6631_v29  ;;  %v6635_v31 = vunpack.c.l.bf16 %v6634_v16  ;;  %v6637_v57 = vunpack.c.l.bf16 %v6636_v62  ;;  %v6639_v32 = vunpack.c.l.bf16 %v6638_v40  ;;  %v6640_v39 = vld [vmem:[#allocation41_spill] sm:$0xff]  ;;  %271 = vst [vmem:[#allocation1 + $0x20] ss:$4 sm:$0xff] %v266_v8  ;;  %v2976_v43 = vld [vmem:[#allocation2 + $0xb0] sm:$0xff] }
  0xf7   :  { %v593_v7 = vsub.f32 %v2971_v18, %v6633_v26  ;;  %1263 = vmatpush.bf16.msra.mxu0 %v684_v25  ;;  %v692_v10 = vpack.c.bf16 %v577_v27, %v576_v51  ;;  %v6641_v50 = vunpack.c.l.bf16 %v6640_v39  ;;  %v6642_v53 = vld [vmem:[#allocation42_spill] sm:$0xff]  ;;  %v2977_v25 = vld [vmem:[#allocation2 + $0xb8] sm:$0xff] }
  0xf8   :  { %v608_v22 = vsub.f32 %v2972_v13, %v6635_v31  ;;  %v609_v54 = vsub.f32 %v2973_v63, %v6637_v57  ;;  %v558_v56 = vsub.f32 %v2974_v59, %v6639_v32  ;;  %v6643_v29 = vunpack.c.l.bf16 %v6642_v53  ;;  %v6644_v51 = vld [vmem:[#allocation43_spill] sm:$0xff]  ;;  %v2978_v26 = vld [vmem:[#allocation2 + $0x130] sm:$0xff]  ;;  %v6646_v13 = vld [vmem:[#allocation44_spill] sm:$0xff] }
  0xf9   :  { %v559_v33 = vsub.f32 %v2975_v1, %v6641_v50  ;;  %v700_v37 = vpack.c.bf16 %v593_v7, %v592_v21  ;;  %v6645_v27 = vunpack.c.l.bf16 %v6644_v51  ;;  %v6647_v16 = vunpack.c.l.bf16 %v6646_v13  ;;  %1276 = vmatpush.bf16.msra.mxu1 %v692_v10  ;;  %v2979_v57 = vld [vmem:[#allocation2 + $0x138] sm:$0xff]  ;;  %v6648_v59 = vld [vmem:[#allocation46_spill] sm:$0xff]  ;;  %v6650_v7 = vld [vmem:[#allocation49_spill] sm:$0xff] }
  0xfa   :  { %v574_v18 = vsub.f32 %v2976_v43, %v6643_v29  ;;  %v708_v63 = vpack.c.bf16 %v609_v54, %v608_v22  ;;  %v6649_v40 = vunpack.c.l.bf16 %v6648_v59  ;;  %v2980_v21 = vld [vmem:[#allocation2 + $0x1b0] sm:$0xff]  ;;  %v6651_v32 = vunpack.c.l.bf16 %v6650_v7  ;;  %v2981_v50 = vld [vmem:[#allocation2 + $0x1b8] sm:$0xff]  ;;  %v2983_v22 = vld [vmem:[#allocation2 + $0x28] sm:$0xff] }
  0xfb   :  { %v575_v28 = vsub.f32 %v2977_v25, %v6645_v27  ;;  %v590_v31 = vsub.f32 %v2978_v26, %v6647_v16  ;;  %v683_v62 = vpack.c.bf16 %v559_v33, %v558_v56  ;;  %1289 = vmatpush.bf16.msra.mxu2 %v700_v37  ;;  %v6652_v43 = vld [vmem:[#allocation50_spill] sm:$0xff]  ;;  %v2982_v25 = vld [vmem:[#allocation2 + $0x20] sm:$0xff]  ;;  %v6654_v51 = vld [vmem:[#allocation51_spill] sm:$0xff]  ;;  %v490_v26 = vunpack.c.l.bf16 %v3873_v38 }
  0xfc   :  { %v591_v8 = vsub.f32 %v2979_v57, %v6649_v40  ;;  %v606_v1 = vsub.f32 %v2980_v21, %v6651_v32  ;;  %v6653_v53 = vunpack.c.l.bf16 %v6652_v43  ;;  %v6655_v27 = vunpack.c.l.bf16 %v6654_v51  ;;  %v6656_v54 = vld [vmem:[#allocation52_spill] sm:$0xff]  ;;  %1302 = vmatpush.bf16.msra.mxu3 %v708_v63  ;;  %v6658_v37 = vld [vmem:[#allocation53_spill] sm:$0xff]  ;;  %v6660_v59 = vld [vmem:[#allocation54_spill] sm:$0xff] }
  0xfd   :  { %v691_v39 = vpack.c.bf16 %v575_v28, %v574_v18  ;;  %v6657_v56 = vunpack.c.l.bf16 %v6656_v54  ;;  %1264 = vmatpush.bf16.msra.mxu0 %v683_v62  ;;  %v2984_v16 = vld [vmem:[#allocation2 + $0xa0] sm:$0xff]  ;;  %v6659_v18 = vunpack.c.l.bf16 %v6658_v37  ;;  %v2985_v57 = vld [vmem:[#allocation2 + $0xa8] sm:$0xff]  ;;  %v6661_v40 = vunpack.c.l.bf16 %v6660_v59  ;;  %v6671_v59 = vld [vmem:[#allocation62_spill] sm:$0xff] }
  0xfe   :  { %v607_v29 = vsub.f32 %v2981_v50, %v6653_v53  ;;  %v556_v10 = vsub.f32 %v2982_v25, %v6655_v27  ;;  %v699_v13 = vpack.c.bf16 %v591_v8, %v590_v31  ;;  %v2986_v50 = vld [vmem:[#allocation2 + $0x120] sm:$0xff]  ;;  %v6662_v43 = vunpack.c.l.bf16 %v3341_v61  ;;  %v2987_v25 = vld [vmem:[#allocation2 + $0x128] sm:$0xff] }
  0xff   :  { %v557_v33 = vsub.f32 %v2983_v22, %v6657_v56  ;;  %v572_v28 = vsub.f32 %v2984_v16, %v6659_v18  ;;  %v573_v21 = vsub.f32 %v2985_v57, %v6661_v40  ;;  %v6663_v51 = vunpack.c.l.bf16 %v3343_v58  ;;  %1277 = vmatpush.bf16.msra.mxu1 %v691_v39  ;;  %v2988_v62 = vld [vmem:[#allocation2 + $0x1a0] sm:$0xff]  ;;  %v2989_v22 = vld [vmem:[#allocation2 + $0x1a8] sm:$0xff]  ;;  %v6667_v16 = vld [vmem:[#allocation59_spill] sm:$0xff] }
 0x100   :  { %v707_v7 = vpack.c.bf16 %v607_v29, %v606_v1  ;;  %v588_v53 = vsub.f32 %v2986_v50, %v6662_v43  ;;  %v6664_v8 = vunpack.c.l.bf16 %v3347_v30  ;;  %v6665_v54 = vunpack.c.l.bf16 %v3349_v9  ;;  %v2990_v1 = vld [vmem:[#allocation2 + $0x10] sm:$0xff]  ;;  %1290 = vmatpush.bf16.msra.mxu2 %v699_v13  ;;  %v6669_v18 = vld [vmem:[#allocation61_spill] sm:$0xff]  ;;  %v2993_v30 = vld [vmem:[#allocation2 + $0x98] sm:$0xff] }
 0x101   :  { %v682_v32 = vpack.c.bf16 %v557_v33, %v556_v10  ;;  %v589_v63 = vsub.f32 %v2987_v25, %v6663_v51  ;;  %v690_v31 = vpack.c.bf16 %v573_v21, %v572_v28  ;;  %v6666_v29 = vunpack.c.l.bf16 %v3351_v5  ;;  %v2991_v33 = vld [vmem:[#allocation2 + $0x18] sm:$0xff]  ;;  %v2992_v39 = vld [vmem:[#allocation2 + $0x90] sm:$0xff]  ;;  %v278_v9 = vld.sshfl [vmem:[#allocation1 + $0x30] sm:$0xff pattern:$0x73625140] }
 0x102   :  { %v604_v27 = vsub.f32 %v2988_v62, %v6664_v8  ;;  %v605_v56 = vsub.f32 %v2989_v22, %v6665_v54  ;;  %v6668_v58 = vunpack.c.l.bf16 %v6667_v16  ;;  %v6670_v28 = vunpack.c.l.bf16 %v6669_v18  ;;  %v276_v50 = vld.sshfl [vmem:[#allocation1 + $0x20] sm:$0xff pattern:$0x73625140]  ;;  %1303 = vmatpush.bf16.msra.mxu3 %v707_v7  ;;  %v2994_v43 = vld [vmem:[#allocation2 + $0x110] sm:$0xff] }
 0x103   :  { %v554_v10 = vsub.f32 %v2990_v1, %v6666_v29  ;;  %v698_v61 = vpack.c.bf16 %v589_v63, %v588_v53  ;;  %v6672_v40 = vunpack.c.l.bf16 %v6671_v59  ;;  %1265 = vmatpush.bf16.msra.mxu0 %v682_v32  ;;  %v6673_v13 = vld [vmem:[#allocation63_spill] sm:$0xff]  ;;  %v6675_v63 = vld [vmem:[#allocation65_spill] sm:$0xff]  ;;  %v1236_v22 = vunpack.c.l.b16 %v3777_v36  ;;  %v279_v29 = vld.sshfl [vmem:[#allocation1 + $0x38] sm:$0xff pattern:$0x73625140]  ;;  %1278 = vmatpush.bf16.msra.mxu1 %v690_v31 }
 0x104   :  { %v555_v37 = vsub.f32 %v2991_v33, %v6668_v58  ;;  %v570_v57 = vsub.f32 %v2992_v39, %v6670_v28  ;;  %v706_v5 = vpack.c.bf16 %v605_v56, %v604_v27  ;;  %v6674_v53 = vunpack.c.l.bf16 %v6673_v13  ;;  %v2995_v51 = vld [vmem:[#allocation2 + $0x118] sm:$0xff]  ;;  %v277_v33 = vld.sshfl [vmem:[#allocation1 + $0x28] sm:$0xff pattern:$0x73625140]  ;;  %v2996_v27 = vld [vmem:[#allocation2 + $0x190] sm:$0xff] }
 0x105   :  { %v571_v21 = vsub.f32 %v2993_v30, %v6672_v40  ;;  %v6676_v62 = vunpack.c.l.bf16 %v6675_v63  ;;  %v294_v54 = vpack.c.bf16 %v278_v9, %v278_v9  ;;  %v292_v1 = vpack.c.bf16 %v276_v50, %v276_v50  ;;  %v6677_v56 = vld [vmem:[#allocation68_spill] sm:$0xff]  ;;  %v2997_v30 = vld [vmem:[#allocation2 + $0x198] sm:$0xff]  ;;  %v6679_v59 = vld [vmem:[#allocation69_spill] sm:$0xff]  ;;  %1291 = vmatpush.bf16.msra.mxu2 %v698_v61 }
 0x106   :  { %v586_v25 = vsub.f32 %v2994_v43, %v6674_v53  ;;  %v681_v16 = vpack.c.bf16 %v555_v37, %v554_v10  ;;  %v295_v39 = vpack.c.bf16 %v279_v29, %v279_v29  ;;  %v293_v7 = vpack.c.bf16 %v277_v33, %v277_v33  ;;  %v2998_v9 = vld [vmem:[#allocation2] sm:$0xff]  ;;  %v6681_v50 = vld [vmem:[#allocation70_spill] sm:$0xff]  ;;  %v2999_v10 = vld [vmem:[#allocation2 + $0x8] sm:$0xff]  ;;  %1304 = vmatpush.bf16.msra.mxu3 %v706_v5 }
 0x107   :  { %v587_v8 = vsub.f32 %v2995_v51, %v6676_v62  ;;  %v689_v58 = vpack.c.bf16 %v571_v21, %v570_v57  ;;  %v6678_v18 = vunpack.c.l.bf16 %v6677_v56  ;;  %1214 = vmatmul.bf16.vlgmr.msrb.gmra.mxu2 %v294_v54  ;;  %1188 = vmatmul.bf16.vlgmr.msrb.gmra.mxu0 %v292_v1  ;;  %v6680_v40 = vunpack.c.l.bf16 %v6679_v59  ;;  %v6683_v37 = vld [vmem:[#allocation71_spill] sm:$0xff]  ;;  %v6685_v31 = vld [vmem:[#allocation166_spill] sm:$0xff]  ;;  %v3000_v51 = vld [vmem:[#allocation2 + $0x80] sm:$0xff] }
 0x108   :  { %v6682_v13 = vunpack.c.l.bf16 %v6681_v50  ;;  %v6684_v57 = vunpack.c.l.bf16 %v6683_v37  ;;  %1227 = vmatmul.bf16.vlgmr.msrb.gmra.mxu3 %v295_v39  ;;  %1201 = vmatmul.bf16.vlgmr.msrb.gmra.mxu1 %v293_v7  ;;  %v6686_v63 = vld [vmem:[#allocation72_spill] sm:$0xff]  ;;  %v3001_v54 = vld [vmem:[#allocation2 + $0x88] sm:$0xff]  ;;  %v1237_v59 = vunpack.c.h.b16 %v3777_v36  ;;  %v491_v37 = vunpack.c.l.bf16 %v3877_v34 }
 0x109   :  { %v697_v32 = vpack.c.bf16 %v587_v8, %v586_v25  ;;  %v602_v28 = vsub.f32 %v2996_v27, %v6678_v18  ;;  %v603_v43 = vsub.f32 %v2997_v30, %v6680_v40  ;;  %v1238_v25 = vunpack.c.l.b16 %v6685_v31  ;;  %v6688_v1 = vld [vmem:[#allocation73_spill] sm:$0xff]  ;;  %v3002_v27 = vld [vmem:[#allocation2 + $0x100] sm:$0xff]  ;;  %1266 = vmatpush.bf16.msra.mxu0 %v681_v16  ;;  %1279 = vmatpush.bf16.msra.mxu1 %v689_v58 }
 0x10a   :  { %v552_v53 = vsub.f32 %v2998_v9, %v6682_v13  ;;  %v553_v21 = vsub.f32 %v2999_v10, %v6684_v57  ;;  %v6687_v62 = vunpack.c.l.bf16 %v6686_v63  ;;  %v6689_v29 = vunpack.c.l.bf16 %v6688_v1  ;;  %v6690_v56 = vld [vmem:[#allocation76_spill] sm:$0xff]  ;;  %v3003_v39 = vld [vmem:[#allocation2 + $0x108] sm:$0xff]  ;;  %v6694_v63 = vld [vmem:[#allocation79_spill] sm:$0xff] }
 0x10b   :  { %v6691_v18 = vunpack.c.l.bf16 %v6690_v56  ;;  %v705_v40 = vpack.c.bf16 %v603_v43, %v602_v28  ;;  %v6692_v7 = vld [vmem:[#allocation77_spill] sm:$0xff]  ;;  %v1239_v10 = vunpack.c.h.b16 %v6685_v31  ;;  %v6696_v61 = vld [vmem:[#allocation80_spill] sm:$0xff]  ;;  %v6702_v56 = vld [vmem:[#allocation90_spill] sm:$0xff]  ;;  %1292 = vmatpush.bf16.msra.mxu2 %v697_v32  ;;  %v6819_v38 = vunpack.c.l.bf16 %v3921_v12 }
 0x10c   :  { %v568_v8 = vsub.f32 %v3000_v51, %v6687_v62  ;;  %v569_v33 = vsub.f32 %v3001_v54, %v6689_v29  ;;  %v680_v9 = vpack.c.bf16 %v553_v21, %v552_v53  ;;  %v6693_v50 = vunpack.c.l.bf16 %v6692_v7  ;;  %v3004_v51 = vld [vmem:[#allocation2 + $0x180] sm:$0xff]  ;;  %v3005_v36 = vld [vmem:[#allocation2 + $0x188] sm:$0xff]  ;;  %v6700_v29 = vld [vmem:[#allocation87_spill] sm:$0xff] }
 0x10d   :  { %v584_v30 = vsub.f32 %v3002_v27, %v6691_v18  ;;  %v6695_v62 = vunpack.c.l.bf16 %v6694_v63  ;;  %v6697_v5 = vunpack.c.l.bf16 %v6696_v61  ;;  %v6698_v53 = vld [vmem:[#allocation84_spill] sm:$0xff]  ;;  %v6699_v21 = vld [vmem:[#allocation85_spill] sm:$0xff]  ;;  %v6703_v18 = vld [vmem:[#allocation94_spill] sm:$0xff]  ;;  %v4194_v7 = vpack.c.b16 %v1236_v22, %v1236_v22  ;;  %1305 = vmatpush.bf16.msra.mxu3 %v705_v40 }
 0x10e   :  { %v585_v13 = vsub.f32 %v3003_v39, %v6693_v50  ;;  %v688_v57 = vpack.c.bf16 %v569_v33, %v568_v8  ;;  %v719_v1 = vpack.c.bf16 %v6699_v21, %v6698_v53  ;;  %v6701_v27 = vld [vmem:[#allocation88_spill] sm:$0xff]  ;;  %v735_v16 = vpack.c.bf16 %v6703_v18, %v6702_v56  ;;  %v6704_v8 = vld [vmem:[#allocation98_spill] sm:$0xff]  ;;  %v6705_v33 = vld [vmem:[#allocation103_spill] sm:$0xff]  ;;  %1267 = vmatpush.bf16.msra.mxu0 %v680_v9 }
 0x10f   :  { %v600_v54 = vsub.f32 %v3004_v51, %v6695_v62  ;;  %v601_v28 = vsub.f32 %v3005_v36, %v6697_v5  ;;  %v727_v31 = vpack.c.bf16 %v6701_v27, %v6700_v29  ;;  %v743_v39 = vpack.c.bf16 %v6705_v33, %v6704_v8  ;;  %v3006_v63 = vld [vmem:[#allocation2 + $0x260] sm:$0xff]  ;;  %v6706_v62 = vld [vmem:[#allocation91_spill] sm:$0xff]  ;;  %v3007_v22 = vld [vmem:[#allocation2 + $0x268] sm:$0xff] }
 0x110   :  { %v696_v43 = vpack.c.bf16 %v585_v13, %v584_v30  ;;  %v4196_v50 = vpack.c.b16 %v1238_v25, %v1238_v25  ;;  %v4199_v30 = vpack.c.b16 %v1237_v59, %v1237_v59  ;;  %v4201_v13 = vpack.c.b16 %v1239_v10, %v1239_v10  ;;  %1280 = vmatpush.bf16.msra.mxu1 %v688_v57  ;;  %v6708_v5 = vld [vmem:[#allocation92_spill] sm:$0xff]  ;;  %v6710_v21 = vld [vmem:[#allocation93_spill] sm:$0xff]  ;;  %v6712_v29 = vld [vmem:[#allocation99_spill] sm:$0xff] }
 0x111   :  { %v704_v58 = vpack.c.bf16 %v601_v28, %v600_v54  ;;  %v6707_v36 = vunpack.c.l.bf16 %v6706_v62  ;;  %v6709_v25 = vunpack.c.l.bf16 %v6708_v5  ;;  %v3008_v53 = vld [vmem:[#allocation2 + $0x2e0] sm:$0xff]  ;;  %v6711_v32 = vunpack.c.l.bf16 %v6710_v21  ;;  %v3009_v59 = vld [vmem:[#allocation2 + $0x2e8] sm:$0xff]  ;;  %v6714_v18 = vld [vmem:[#allocation107_spill] sm:$0xff] }
 0x112   :  { %v6713_v10 = vunpack.c.l.bf16 %v6712_v29  ;;  %1312 = vmatpush.bf16.msrb.mxu0 %v719_v1  ;;  %v6715_v8 = vunpack.c.l.bf16 %v6714_v18  ;;  %v6716_v9 = vld [vmem:[#allocation96_spill] sm:$0xff]  ;;  %v6719_v62 = vld [vmem:[#allocation97_spill] sm:$0xff]  ;;  %v6723_v29 = vld [vmem:[#allocation110_spill] sm:$0xff]  ;;  %1293 = vmatpush.bf16.msra.mxu2 %v696_v43 }
 0x113   :  { %v628_v61 = vsub.f32 %v3006_v63, %v6707_v36  ;;  %v629_v28 = vsub.f32 %v3007_v22, %v6709_v25  ;;  %v644_v40 = vsub.f32 %v3008_v53, %v6711_v32  ;;  %v6717_v33 = vld [vmem:[#allocation108_spill] sm:$0xff]  ;;  %v6720_v22 = vld [vmem:[#allocation109_spill] sm:$0xff]  ;;  %v6726_v1 = vld [vmem:[#allocation111_spill] sm:$0xff]  ;;  %1306 = vmatpush.bf16.msra.mxu3 %v704_v58 }
 0x114   :  { %v645_v27 = vsub.f32 %v3009_v59, %v6713_v10  ;;  %1325 = vmatpush.bf16.msrb.mxu1 %v727_v31  ;;  %v660_v57 = vsub.f32 %v6716_v9, %v6715_v8  ;;  %v6718_v63 = vunpack.c.l.bf16 %v6717_v33  ;;  %v6721_v5 = vunpack.c.l.bf16 %v6720_v22  ;;  %v6722_v25 = vld [vmem:[#allocation100_spill] sm:$0xff]  ;;  %v6725_v10 = vld [vmem:[#allocation101_spill] sm:$0xff]  ;;  %v6728_v54 = vld [vmem:[#allocation102_spill] sm:$0xff] }
 0x115   :  { %v718_v21 = vpack.c.bf16 %v629_v28, %v628_v61  ;;  %v6724_v59 = vunpack.c.l.bf16 %v6723_v29  ;;  %v6727_v31 = vunpack.c.l.bf16 %v6726_v1  ;;  %v6729_v33 = vld [vmem:[#allocation113_spill] sm:$0xff]  ;;  %v6734_v28 = vld [vmem:[#allocation114_spill] sm:$0xff]  ;;  %v6738_v43 = vld [vmem:[#allocation123_spill] sm:$0xff] }
 0x116   :  { %v661_v36 = vsub.f32 %v6719_v62, %v6718_v63  ;;  %v676_v53 = vsub.f32 %v6722_v25, %v6721_v5  ;;  %v726_v32 = vpack.c.bf16 %v645_v27, %v644_v40  ;;  %v6730_v63 = vunpack.c.l.bf16 %v6729_v33  ;;  %v6731_v62 = vld [vmem:[#allocation105_spill] sm:$0xff]  ;;  %v6732_v5 = vld [vmem:[#allocation120_spill] sm:$0xff]  ;;  %1338 = vmatpush.bf16.msrb.mxu2 %v735_v16  ;;  %v6735_v29 = vld [vmem:[#allocation122_spill] sm:$0xff] }
 0x117   :  { %v677_v56 = vsub.f32 %v6725_v10, %v6724_v59  ;;  %v626_v18 = vsub.f32 %v6728_v54, %v6727_v31  ;;  %v6733_v61 = vunpack.c.l.bf16 %v6732_v5  ;;  %1351 = vmatpush.bf16.msrb.mxu3 %v743_v39  ;;  %v6736_v54 = vunpack.c.l.bf16 %v6735_v29  ;;  %v6737_v59 = vld [vmem:[#allocation115_spill] sm:$0xff]  ;;  %v6741_v1 = vld [vmem:[#allocation192_spill] sm:$0xff]  ;;  %1313 = vmatpush.bf16.msrb.mxu0 %v718_v21  ;;  %v6744_v5 = vld [vmem:[#allocation117_spill] sm:$0xff] }
 0x118   :  { %v734_v9 = vpack.c.bf16 %v661_v36, %v660_v57  ;;  %v627_v22 = vsub.f32 %v6731_v62, %v6730_v63  ;;  %v6739_v58 = vunpack.c.l.bf16 %v6738_v43  ;;  %v6740_v57 = vld [vmem:[#allocation116_spill] sm:$0xff]  ;;  %1326 = vmatpush.bf16.msrb.mxu1 %v726_v32  ;;  %v6745_v16 = vld [vmem:[#allocation127_spill] sm:$0xff]  ;;  %v6751_v27 = vld [vmem:[#allocation133_spill] sm:$0xff]  ;;  %1268 = vmatmul.bf16.vlgmr.msra.gmra.mxu0 %v4194_v7 }
 0x119   :  { %v642_v40 = vsub.f32 %v6734_v28, %v6733_v61  ;;  %v742_v25 = vpack.c.bf16 %v677_v56, %v676_v53  ;;  %v643_v10 = vsub.f32 %v6737_v59, %v6736_v54  ;;  %v6742_v63 = vld [vmem:[#allocation124_spill] sm:$0xff]  ;;  %v6746_v39 = vunpack.c.l.bf16 %v6745_v16  ;;  %v6747_v56 = vld [vmem:[#allocation118_spill] sm:$0xff]  ;;  %v6748_v29 = vld [vmem:[#allocation131_spill] sm:$0xff]  ;;  %1294 = vmatmul.bf16.vlgmr.msra.gmra.mxu2 %v4196_v50  ;;  %1281 = vmatmul.bf16.vlgmr.msra.gmra.mxu1 %v4199_v30 }
 0x11a   :  { %v658_v36 = vsub.f32 %v6740_v57, %v6739_v58  ;;  %v717_v33 = vpack.c.bf16 %v627_v22, %v626_v18  ;;  %v6743_v62 = vunpack.c.l.bf16 %v6742_v63  ;;  %v6749_v54 = vunpack.c.l.bf16 %v6748_v29  ;;  %v6750_v59 = vld [vmem:[#allocation125_spill] sm:$0xff]  ;;  %v6753_v57 = vld [vmem:[#allocation128_spill] sm:$0xff]  ;;  %v6754_v21 = vld [vmem:[#allocation134_spill] sm:$0xff]  ;;  %1339 = vmatpush.bf16.msrb.mxu2 %v734_v9  ;;  %1307 = vmatmul.bf16.vlgmr.msra.gmra.mxu3 %v4201_v13 }
 0x11b   :  { %v674_v53 = vsub.f32 %v6747_v56, %v6746_v39  ;;  %v725_v28 = vpack.c.bf16 %v643_v10, %v642_v40  ;;  %v6752_v58 = vunpack.c.l.bf16 %v6751_v27  ;;  %v6755_v32 = vunpack.c.l.bf16 %v6754_v21  ;;  %v6756_v18 = vld [vmem:[#allocation129_spill] sm:$0xff]  ;;  %v6760_v51 = vld [vmem:[#allocation144_spill] sm:$0xff]  ;;  %v6762_v40 = vld [vmem:[#allocation135_spill] sm:$0xff]  ;;  %1352 = vmatpush.bf16.msrb.mxu3 %v742_v25 }
 0x11c   :  { %v659_v61 = vsub.f32 %v6744_v5, %v6743_v62  ;;  %v675_v43 = vsub.f32 %v6750_v59, %v6749_v54  ;;  %v6757_v8 = vld [vmem:[#allocation137_spill] sm:$0xff]  ;;  %v6759_v5 = vld [vmem:[#allocation130_spill] sm:$0xff]  ;;  %v6761_v39 = vunpack.c.l.bf16 %v6760_v51  ;;  %v488_v27 = vunpack.c.l.bf16 %v3948_v14  ;;  %v6766_v21 = vld [vmem:[#allocation147_spill] sm:$0xff]  ;;  %1314 = vmatpush.bf16.msrb.mxu0 %v717_v33 }
 0x11d   :  { %v624_v31 = vsub.f32 %v6753_v57, %v6752_v58  ;;  %v625_v22 = vsub.f32 %v6756_v18, %v6755_v32  ;;  %v6758_v62 = vunpack.c.l.bf16 %v6757_v8  ;;  %v6763_v56 = vld [vmem:[#allocation146_spill] sm:$0xff]  ;;  %v489_v32 = vunpack.c.l.bf16 %v3965_v47  ;;  %v6769_v18 = vld [vmem:[#allocation148_spill] sm:$0xff]  ;;  %v6774_v25 = vld [vmem:[#allocation141_spill] sm:$0xff]  ;;  %1327 = vmatpush.bf16.msrb.mxu1 %v725_v28 }
 0x11e   :  { %v733_v63 = vpack.c.bf16 %v659_v61, %v658_v36  ;;  %v641_v10 = vsub.f32 %v6762_v40, %v6761_v39  ;;  %v6764_v29 = vunpack.c.l.bf16 %v6763_v56  ;;  %v6765_v54 = vld [vmem:[#allocation138_spill] sm:$0xff]  ;;  %v741_v58 = vpack.c.bf16 %v675_v43, %v674_v53  ;;  %v6768_v61 = vld [vmem:[#allocation139_spill] sm:$0xff]  ;;  %v6772_v40 = vld [vmem:[#allocation149_spill] sm:$0xff] }
 0x11f   :  { %v640_v16 = vsub.f32 %v6759_v5, %v6758_v62  ;;  %v716_v57 = vpack.c.bf16 %v625_v22, %v624_v31  ;;  %v6767_v36 = vunpack.c.l.bf16 %v6766_v21  ;;  %v6770_v62 = vunpack.c.l.bf16 %v6769_v18  ;;  %v6771_v5 = vld [vmem:[#allocation140_spill] sm:$0xff]  ;;  %v6775_v22 = vld [vmem:[#allocation151_spill] sm:$0xff]  ;;  %v6780_v21 = vld [vmem:[#allocation150_spill] sm:$0xff] }
 0x120   :  { %v656_v59 = vsub.f32 %v6765_v54, %v6764_v29  ;;  %v6773_v9 = vunpack.c.l.bf16 %v6772_v40  ;;  %v504_v31 = vunpack.c.l.bf16 %v3983_v49  ;;  %v6776_v56 = vunpack.c.l.bf16 %v6775_v22  ;;  %v6777_v29 = vld [vmem:[#allocation142_spill] sm:$0xff]  ;;  %1340 = vmatpush.bf16.msrb.mxu2 %v733_v63  ;;  %1353 = vmatpush.bf16.msrb.mxu3 %v741_v58  ;;  %v6790_v28 = vld [vmem:[#allocation156_spill] sm:$0xff]  ;;  %v6796_v58 = vld [vmem:[#allocation167_spill] sm:$0xff] }
 0x121   :  { %v657_v8 = vsub.f32 %v6768_v61, %v6767_v36  ;;  %v724_v51 = vpack.c.bf16 %v641_v10, %v640_v16  ;;  %v672_v39 = vsub.f32 %v6771_v5, %v6770_v62  ;;  %v6778_v16 = vld [vmem:[#allocation158_spill] sm:$0xff]  ;;  %v505_v61 = vunpack.c.l.bf16 %v3987_v2  ;;  %v6781_v62 = vld [vmem:[#allocation159_spill] sm:$0xff]  ;;  %v6783_v5 = vld [vmem:[#allocation152_spill] sm:$0xff]  ;;  %1315 = vmatpush.bf16.msrb.mxu0 %v716_v57 }
 0x122   :  { %v673_v53 = vsub.f32 %v6774_v25, %v6773_v9  ;;  %v622_v54 = vsub.f32 %v6777_v29, %v6776_v56  ;;  %v6779_v10 = vunpack.c.l.bf16 %v6778_v16  ;;  %v6782_v49 = vunpack.c.l.bf16 %v6781_v62  ;;  %v6784_v9 = vld [vmem:[#allocation160_spill] sm:$0xff]  ;;  %v6788_v16 = vld [vmem:[#allocation154_spill] sm:$0xff] }
 0x123   :  { %v732_v43 = vpack.c.bf16 %v657_v8, %v656_v59  ;;  %v6785_v25 = vunpack.c.l.bf16 %v6784_v9  ;;  %v6786_v59 = vld [vmem:[#allocation153_spill] sm:$0xff]  ;;  %v520_v22 = vunpack.c.l.bf16 %v3991_v11  ;;  %v6787_v29 = vunpack.c.l.bf16 %v3738_v55  ;;  %v6798_v9 = vld [vmem:[#allocation168_spill] sm:$0xff]  ;;  %1328 = vmatpush.bf16.msrb.mxu1 %v724_v51 }
 0x124   :  { %v623_v36 = vsub.f32 %v6780_v21, %v6779_v10  ;;  %v740_v18 = vpack.c.bf16 %v673_v53, %v672_v39  ;;  %v638_v40 = vsub.f32 %v6783_v5, %v6782_v49  ;;  %v6789_v33 = vunpack.c.l.bf16 %v3747_v4  ;;  %v6792_v21 = vld [vmem:[#allocation162_spill] sm:$0xff]  ;;  %v6794_v5 = vld [vmem:[#allocation163_spill] sm:$0xff] }
 0x125   :  { %v639_v8 = vsub.f32 %v6786_v59, %v6785_v25  ;;  %v654_v2 = vsub.f32 %v6788_v16, %v6787_v29  ;;  %v6791_v10 = vunpack.c.l.bf16 %v3768_v48  ;;  %v6793_v49 = vunpack.c.l.bf16 %v3772_v24  ;;  %1341 = vmatpush.bf16.msrb.mxu2 %v732_v43 }
 0x126   :  { %v715_v56 = vpack.c.bf16 %v623_v36, %v622_v54  ;;  %v655_v39 = vsub.f32 %v6790_v28, %v6789_v33  ;;  %v6795_v63 = vunpack.c.l.bf16 %v3800_v42  ;;  %v6797_v36 = vunpack.c.l.bf16 %v3804_v15  ;;  %v6806_v28 = vld [vmem:[#allocation174_spill] sm:$0xff]  ;;  %1354 = vmatpush.bf16.msrb.mxu3 %v740_v18 }
 0x127   :  { %v723_v53 = vpack.c.bf16 %v639_v8, %v638_v40  ;;  %v670_v62 = vsub.f32 %v6792_v21, %v6791_v10  ;;  %v671_v11 = vsub.f32 %v6794_v5, %v6793_v49  ;;  %v6799_v25 = vunpack.c.l.bf16 %v3812_v17  ;;  %v6800_v40 = vld [vmem:[#allocation170_spill] sm:$0xff]  ;;  %v6802_v8 = vld [vmem:[#allocation171_spill] sm:$0xff] }
 0x128   :  { %v620_v54 = vsub.f32 %v6796_v58, %v6795_v63  ;;  %v731_v55 = vpack.c.bf16 %v655_v39, %v654_v2  ;;  %v621_v4 = vsub.f32 %v6798_v9, %v6797_v36  ;;  %v6801_v48 = vunpack.c.l.bf16 %v3826_v3  ;;  %v6804_v2 = vld [vmem:[#allocation173_spill] sm:$0xff]  ;;  %v6807_v21 = vld [vmem:[#allocation183_spill] sm:$0xff]  ;;  %1316 = vmatpush.bf16.msrb.mxu0 %v715_v56 }
 0x129   :  { %v636_v59 = vsub.f32 %v6800_v40, %v6799_v25  ;;  %v521_v24 = vunpack.c.l.bf16 %v4000_v19  ;;  %v739_v42 = vpack.c.bf16 %v671_v11, %v670_v62  ;;  %v6803_v16 = vunpack.c.l.bf16 %v3832_v52  ;;  %v6809_v19 = vld [vmem:[#allocation175_spill] sm:$0xff]  ;;  %v6810_v52 = vld [vmem:[#allocation176_spill] sm:$0xff]  ;;  %v6818_v9 = vld [vmem:[#allocation185_spill] sm:$0xff]  ;;  %1329 = vmatpush.bf16.msrb.mxu1 %v723_v53 }
 0x12a   :  { %v637_v29 = vsub.f32 %v6802_v8, %v6801_v48  ;;  %v6805_v15 = vunpack.c.l.bf16 %v3836_v23  ;;  %v536_v17 = vunpack.c.l.bf16 %v4006_v20  ;;  %v714_v3 = vpack.c.bf16 %v621_v4, %v620_v54  ;;  %v6811_v23 = vld [vmem:[#allocation177_spill] sm:$0xff]  ;;  %v6812_v20 = vld [vmem:[#allocation179_spill] sm:$0xff]  ;;  %v6814_v11 = vld [vmem:[#allocation180_spill] sm:$0xff]  ;;  %1342 = vmatpush.bf16.msrb.mxu2 %v731_v55 }
 0x12b   :  { %v652_v33 = vsub.f32 %v6804_v2, %v6803_v16  ;;  %v6808_v49 = vunpack.c.l.bf16 %v6807_v21  ;;  %v669_v62 = vsub.f32 %v6810_v52, %v541_v35  ;;  %v618_v5 = vsub.f32 %v6811_v23, %v490_v26  ;;  %v6816_v54 = vld [vmem:[#allocation181_spill] sm:$0xff]  ;;  %v6820_v4 = vld [vmem:[#allocation186_spill] sm:$0xff]  ;;  %1355 = vmatpush.bf16.msrb.mxu3 %v739_v42  ;;  %v6831_v21 = vld [vmem:[#allocation199_spill] sm:$0xff] }
 0x12c   :  { %v653_v39 = vsub.f32 %v6806_v28, %v6805_v15  ;;  %v722_v10 = vpack.c.bf16 %v637_v29, %v636_v59  ;;  %v619_v43 = vsub.f32 %v6812_v20, %v491_v37  ;;  %v6813_v18 = vunpack.c.l.bf16 %v3881_v46  ;;  %v6821_v25 = vld [vmem:[#allocation205_spill] sm:$0xff]  ;;  %v6823_v59 = vld [vmem:[#allocation187_spill] sm:$0xff]  ;;  %v6825_v29 = vld [vmem:[#allocation188_spill] sm:$0xff]  ;;  %1317 = vmatpush.bf16.msrb.mxu0 %v714_v3 }
 0x12d   :  { %v668_v57 = vsub.f32 %v6809_v19, %v6808_v49  ;;  %v6815_v58 = vunpack.c.l.bf16 %v3885_v6  ;;  %v650_v35 = vsub.f32 %v6818_v9, %v6817_v41  ;;  %v651_v26 = vsub.f32 %v6820_v4, %v6819_v38  ;;  %v6826_v16 = vld [vmem:[#allocation189_spill] sm:$0xff]  ;;  %v6829_v15 = vld [vmem:[#allocation196_spill] sm:$0xff]  ;;  %v6839_v20 = vld [vmem:[#allocation15_spill] sm:$0xff] }
 0x12e   :  { %v730_v51 = vpack.c.bf16 %v653_v39, %v652_v33  ;;  %v634_v63 = vsub.f32 %v6814_v11, %v6813_v18  ;;  %v537_v34 = vunpack.c.l.bf16 %v6821_v25  ;;  %v713_v46 = vpack.c.bf16 %v619_v43, %v618_v5  ;;  %v6827_v56 = vld [vmem:[#allocation193_spill] sm:$0xff]  ;;  %v6828_v33 = vld [vmem:[#allocation195_spill] sm:$0xff]  ;;  %1330 = vmatpush.bf16.msrb.mxu1 %v722_v10  ;;  %v6836_v5 = vld [vmem:[#allocation10_spill] sm:$0xff] }
 0x12f   :  { %v635_v36 = vsub.f32 %v6816_v54, %v6815_v58  ;;  %v738_v37 = vpack.c.bf16 %v669_v62, %v668_v57  ;;  %v6822_v40 = vunpack.c.l.bf16 %v3933_v60  ;;  %v729_v44 = vpack.c.bf16 %v651_v26, %v650_v35  ;;  %v6830_v42 = vld [vmem:[#allocation197_spill] sm:$0xff]  ;;  %v6834_v62 = vld [vmem:[#allocation8_spill] sm:$0xff]  ;;  %v6841_v18 = vld [vmem:[#allocation19_spill] sm:$0xff] }
 0x130   :  { %v6824_v8 = vunpack.c.l.bf16 %v6741_v1  ;;  %v616_v2 = vsub.f32 %v6826_v16, %v488_v27  ;;  %v617_v53 = vsub.f32 %v6827_v56, %v489_v32  ;;  %v632_v60 = vsub.f32 %v6828_v33, %v504_v31  ;;  %v6832_v1 = vld [vmem:[#allocation200_spill] sm:$0xff]  ;;  %v6833_v27 = vld [vmem:[#allocation203_spill] sm:$0xff]  ;;  %1343 = vmatpush.bf16.msrb.mxu2 %v730_v51  ;;  %1318 = vmatpush.bf16.msrb.mxu0 %v713_v46  ;;  %v6835_v23 = vld [vmem:[#allocation9_spill] sm:$0xff] }
 0x131   :  { %v666_v6 = vsub.f32 %v6823_v59, %v6822_v40  ;;  %v721_v48 = vpack.c.bf16 %v635_v36, %v634_v63  ;;  %v633_v28 = vsub.f32 %v6829_v15, %v505_v61  ;;  %v648_v39 = vsub.f32 %v6830_v42, %v520_v22  ;;  %1356 = vmatpush.bf16.msrb.mxu3 %v738_v37  ;;  %v6840_v43 = vld [vmem:[#allocation17_spill] sm:$0xff]  ;;  %v6842_v11 = vld [vmem:[#allocation23_spill] sm:$0xff]  ;;  %v6843_v63 = vld [vmem:[#allocation26_spill] sm:$0xff] }
 0x132   :  { %v667_v12 = vsub.f32 %v6825_v29, %v6824_v8  ;;  %v649_v49 = vsub.f32 %v6831_v21, %v521_v24  ;;  %v664_v19 = vsub.f32 %v6832_v1, %v536_v17  ;;  %v712_v14 = vpack.c.bf16 %v617_v53, %v616_v2  ;;  %v6844_v58 = vld [vmem:[#allocation29_spill] sm:$0xff]  ;;  %v6845_v54 = vld [vmem:[#allocation31_spill] sm:$0xff]  ;;  %v6848_v9 = vld [vmem:[#allocation40_spill] sm:$0xff] }
 0x133   :  { %v720_v57 = vpack.c.bf16 %v633_v28, %v632_v60  ;;  %v665_v52 = vsub.f32 %v6833_v27, %v537_v34  ;;  %1331 = vmatpush.bf16.msrb.mxu1 %v721_v48  ;;  %v1240_v31 = vunpack.c.l.b16 %v4068_v45  ;;  %v1242_v61 = vunpack.c.l.b16 %v4070_v0  ;;  %v6846_v36 = vld [vmem:[#allocation33_spill] sm:$0xff]  ;;  %v6847_v41 = vld [vmem:[#allocation39_spill] sm:$0xff]  ;;  %v6851_v4 = vld [vmem:[#allocation48_spill] sm:$0xff] }
 0x134   :  { %v737_v55 = vpack.c.bf16 %v667_v12, %v666_v6  ;;  %v728_v47 = vpack.c.bf16 %v649_v49, %v648_v39  ;;  %1344 = vmatpush.bf16.msrb.mxu2 %v729_v44  ;;  %v1241_v22 = vunpack.c.h.b16 %v4068_v45  ;;  %v1243_v24 = vunpack.c.h.b16 %v4070_v0  ;;  %1319 = vmatpush.bf16.msrb.mxu0 %v712_v14  ;;  %v6837_v45 = vld [vmem:[#allocation11_spill] sm:$0xff]  ;;  %v6838_v0 = vld [vmem:[#allocation12_spill] sm:$0xff]  ;;  %v6849_v35 = vld [vmem:[#allocation45_spill] sm:$0xff] }
 0x135   :  { %v736_v32 = vpack.c.bf16 %v665_v52, %v664_v19  ;;  %v4376_v17 = vpack.c.b16 %v1240_v31, %v1240_v31  ;;  %v4378_v3 = vpack.c.b16 %v1242_v61, %v1242_v61  ;;  %v6850_v38 = vld [vmem:[#allocation47_spill] sm:$0xff]  ;;  %v6853_v25 = vld [vmem:[#allocation56_spill] sm:$0xff]  ;;  %v6854_v34 = vld [vmem:[#allocation57_spill] sm:$0xff] }
 0x136   :  { %1357 = vmatpush.bf16.msrb.mxu3 %v737_v55  ;;  %v4380_v10 = vpack.c.b16 %v1241_v22, %v1241_v22  ;;  %v4382_v51 = vpack.c.b16 %v1243_v24, %v1243_v24  ;;  %v6852_v26 = vld [vmem:[#allocation55_spill] sm:$0xff]  ;;  %v6855_v37 = vld [vmem:[#allocation58_spill] sm:$0xff]  ;;  %v6856_v46 = vld [vmem:[#allocation60_spill] sm:$0xff] }
 0x137   :  { %1332 = vmatpush.bf16.msrb.mxu1 %v720_v57  ;;  %1320 = vmatmul.bf16.vlgmr.msrb.gmra.mxu0 %v4376_v17  ;;  %v6857_v40 = vld [vmem:[#allocation64_spill] sm:$0xff]  ;;  %v6858_v59 = vld [vmem:[#allocation66_spill] sm:$0xff]  ;;  %v6859_v6 = vld [vmem:[#allocation67_spill] sm:$0xff] }
 0x138   :  { %1345 = vmatpush.bf16.msrb.mxu2 %v728_v47  ;;  %1364 = vmatpush.bf16.msra.mxu0 %v6834_v62  ;;  %v6860_v48 = vld [vmem:[#allocation74_spill] sm:$0xff]  ;;  %v6861_v44 = vld [vmem:[#allocation75_spill] sm:$0xff]  ;;  %v6863_v16 = vld [vmem:[#allocation81_spill] sm:$0xff] }
 0x139   :  { %v4416_v8 = vld [vmem:[#allocation4 + $0x70] sm:$0xff]  ;;  %v4418_v29 = vld [vmem:[#allocation4 + $0x78] sm:$0xff]  ;;  %v6867_v14 = vld [vmem:[#allocation89_spill] sm:$0xff] }
 0x13a   :  { %1358 = vmatpush.bf16.msrb.mxu3 %v736_v32  ;;  %1333 = vmatmul.bf16.vlgmr.msrb.gmra.mxu1 %v4380_v10  ;;  %v6862_v12 = vld [vmem:[#allocation78_spill] sm:$0xff]  ;;  %v4424_v2 = vpack.c.bf16 %v4416_v8, %v4416_v8  ;;  %v4428_v56 = vpack.c.bf16 %v4418_v29, %v4418_v29  ;;  %v4432_v33 = vld [vmem:[#allocation4 + $0xf8] sm:$0xff]  ;;  %v6869_v31 = vld [vmem:[#allocation104_spill] sm:$0xff] }
 0x13b   :  { %1377 = vmatpush.bf16.msra.mxu1 %v6835_v23  ;;  %1346 = vmatmul.bf16.vlgmr.msrb.gmra.mxu2 %v4378_v3  ;;  %v4430_v53 = vld [vmem:[#allocation4 + $0xf0] sm:$0xff]  ;;  %v6865_v28 = vld [vmem:[#allocation83_spill] sm:$0xff]  ;;  %v4444_v42 = vpack.c.bf16 %v4432_v33, %v4432_v33  ;;  %v4477_v23 = vld [vmem:[#allocation4 + $0x60] sm:$0xff] }
 0x13c   :  { %1390 = vmatpush.bf16.msra.mxu2 %v6836_v5  ;;  %1365 = vmatpush.bf16.msra.mxu0 %v6838_v0  ;;  %v4434_v60 = vld [vmem:[#allocation4 + $0x170] sm:$0xff]  ;;  %v4440_v55 = vpack.c.bf16 %v4430_v53, %v4430_v53  ;;  %v4446_v39 = vld [vmem:[#allocation4 + $0x178] sm:$0xff]  ;;  %v1884_v57 = vunpack.c.l.b16 %v4424_v2  ;;  %v1885_v27 = vunpack.c.l.b16 %v4428_v56  ;;  %6870 = vst [vmem:[#allocation13_spill] sm:$0xff] %v4477_v23  ;;  %v4479_v5 = vld [vmem:[#allocation4 + $0x68] sm:$0xff] }
 0x13d   :  { %1359 = vmatmul.bf16.vlgmr.msrb.gmra.mxu3 %v4382_v51  ;;  %v6864_v15 = vld [vmem:[#allocation82_spill] sm:$0xff]  ;;  %v4450_v21 = vpack.c.bf16 %v4434_v60, %v4434_v60  ;;  %v4454_v1 = vld [vmem:[#allocation4 + $0x1f8] sm:$0xff]  ;;  %v4462_v52 = vpack.c.bf16 %v4446_v39, %v4446_v39  ;;  %v1901_v22 = vunpack.c.l.b16 %v4444_v42  ;;  %6871 = vst [vmem:[#allocation14_spill] sm:$0xff] %v4479_v5 }
 0x13e   :  { %1403 = vmatpush.bf16.msra.mxu3 %v6837_v45  ;;  %v4452_v49 = vld [vmem:[#allocation4 + $0x1f0] sm:$0xff]  ;;  %v6868_v32 = vld [vmem:[#allocation95_spill] sm:$0xff]  ;;  %v1900_v61 = vunpack.c.l.b16 %v4440_v55  ;;  %v4475_v62 = vpack.c.bf16 %v4454_v1, %v4454_v1  ;;  %v4483_v45 = vpack.c.b16 %v1885_v27, %v1884_v57 }
 0x13f   :  { %1378 = vmatpush.bf16.msra.mxu1 %v6839_v20  ;;  %v6866_v19 = vld [vmem:[#allocation86_spill] sm:$0xff]  ;;  %v4466_v47 = vpack.c.bf16 %v4452_v49, %v4452_v49  ;;  %v1916_v24 = vunpack.c.l.b16 %v4450_v21  ;;  %v1917_v0 = vunpack.c.l.b16 %v4462_v52  ;;  %v4488_v20 = vpack.c.bf16 %v4477_v23, %v4477_v23 }
 0x140   :  { %1391 = vmatpush.bf16.msra.mxu2 %v6840_v43  ;;  %1366 = vmatpush.bf16.msra.mxu0 %v6842_v11  ;;  %6872 = vst [vmem:[#allocation16_spill] sm:$0xff] %v4483_v45  ;;  %v4490_v43 = vld [vmem:[#allocation4 + $0xe0] sm:$0xff] }
 0x141   :  { %6873 = vst [vmem:[#allocation18_spill] sm:$0xff] %v4490_v43  ;;  %v4494_v11 = vld [vmem:[#allocation4 + $0x160] sm:$0xff] }
 0x142   :  { %1404 = vmatpush.bf16.msra.mxu3 %v6841_v18  ;;  %v4492_v18 = vld [vmem:[#allocation4 + $0xe8] sm:$0xff]  ;;  %6875 = vst [vmem:[#allocation21_spill] sm:$0xff] %v4494_v11 }
 0x143   :  { %1379 = vmatpush.bf16.msra.mxu1 %v6843_v63  ;;  %6874 = vst [vmem:[#allocation20_spill] sm:$0xff] %v4492_v18  ;;  %v4502_v63 = vpack.c.bf16 %v4479_v5, %v4479_v5  ;;  %v6978_v5 = vld [vmem:[#allocation194_spill] sm:$0xff] }
 0x144   :  { %1392 = vmatpush.bf16.msra.mxu2 %v6844_v58  ;;  %1367 = vmatpush.bf16.msra.mxu0 %v6846_v36  ;;  %v4506_v58 = vpack.c.bf16 %v4490_v43, %v4490_v43  ;;  %v4510_v36 = vld [vmem:[#allocation4 + $0x1e0] sm:$0xff] }
 0x145   :  { %6877 = vst [vmem:[#allocation24_spill] sm:$0xff] %v4510_v36 }
 0x146   :  { %1405 = vmatpush.bf16.msra.mxu3 %v6845_v54  ;;  %v4508_v54 = vld [vmem:[#allocation4 + $0x168] sm:$0xff] }
 0x147   :  { %1380 = vmatpush.bf16.msra.mxu1 %v6847_v41  ;;  %6876 = vst [vmem:[#allocation22_spill] sm:$0xff] %v4508_v54  ;;  %v4512_v41 = vld [vmem:[#allocation4 + $0x1e8] sm:$0xff] }
 0x148   :  { %1393 = vmatpush.bf16.msra.mxu2 %v6848_v9  ;;  %1368 = vmatpush.bf16.msra.mxu0 %v6850_v38  ;;  %6878 = vst [vmem:[#allocation25_spill] sm:$0xff] %v4512_v41  ;;  %v4516_v9 = vpack.c.b16 %v1901_v22, %v1900_v61  ;;  %v4521_v38 = vpack.c.bf16 %v4492_v18, %v4492_v18  ;;  %v6899_v61 = vld [vmem:[#allocation126_spill] sm:$0xff]  ;;  %v6900_v22 = vld [vmem:[#allocation132_spill] sm:$0xff] }
 0x14a   :  { %1406 = vmatpush.bf16.msra.mxu3 %v6849_v35  ;;  %6881 = vst [vmem:[#allocation27_spill] sm:$0xff] %v4516_v9  ;;  %v1882_v35 = vunpack.c.l.b16 %v4488_v20 }
 0x14b   :  { %1381 = vmatpush.bf16.msra.mxu1 %v6851_v4  ;;  %6882 = vst [vmem:[#allocation28_spill] sm:$0xff] %v4521_v38  ;;  %v4525_v4 = vpack.c.bf16 %v4494_v11, %v4494_v11 }
 0x14c   :  { %1394 = vmatpush.bf16.msra.mxu2 %v6852_v26  ;;  %1369 = vmatpush.bf16.msra.mxu0 %v6854_v34  ;;  %v4527_v26 = vld [vmem:[#allocation4 + $0x50] sm:$0xff]  ;;  %v6886_v34 = vld [vmem:[#allocation119_spill] sm:$0xff] }
 0x14d   :  { %6883 = vst [vmem:[#allocation30_spill] sm:$0xff] %v4525_v4  ;;  %v4560_v57 = vpack.c.bf16 %v4527_v26, %v4527_v26 }
 0x14e   :  { %1407 = vmatpush.bf16.msra.mxu3 %v6853_v25  ;;  %6884 = vst [vmem:[#allocation32_spill] sm:$0xff] %v4527_v26  ;;  %v4529_v25 = vld [vmem:[#allocation4 + $0x58] sm:$0xff] }
 0x14f   :  { %1382 = vmatpush.bf16.msra.mxu1 %v6855_v37  ;;  %6885 = vst [vmem:[#allocation34_spill] sm:$0xff] %v4529_v25  ;;  %v6887_v37 = vld [vmem:[#allocation121_spill] sm:$0xff]  ;;  %v4564_v27 = vpack.c.bf16 %v4529_v25, %v4529_v25 }
 0x150   :  { %1395 = vmatpush.bf16.msra.mxu2 %v6856_v46  ;;  %1370 = vmatpush.bf16.msra.mxu0 %v6858_v59  ;;  %v4533_v46 = vpack.c.b16 %v1917_v0, %v1916_v24  ;;  %v1898_v59 = vunpack.c.l.b16 %v4506_v58  ;;  %6895 = vst [vmem:[#allocation44_spill] sm:$0xff] %v4560_v57  ;;  %v4596_v25 = vld [vmem:[#allocation4 + $0x48] sm:$0xff] }
 0x151   :  { %6896 = vst [vmem:[#allocation46_spill] sm:$0xff] %v4564_v27 }
 0x152   :  { %1408 = vmatpush.bf16.msra.mxu3 %v6857_v40  ;;  %6888 = vst [vmem:[#allocation35_spill] sm:$0xff] %v4533_v46  ;;  %v1883_v40 = vunpack.c.l.b16 %v4502_v63 }
 0x153   :  { %1383 = vmatpush.bf16.msra.mxu1 %v6859_v6  ;;  %v4539_v6 = vpack.c.bf16 %v4508_v54, %v4508_v54  ;;  %6910 = vst [vmem:[#allocation63_spill] sm:$0xff] %v4596_v25 }
 0x154   :  { %1396 = vmatpush.bf16.msra.mxu2 %v6860_v48  ;;  %1371 = vmatpush.bf16.msra.mxu0 %v6862_v12  ;;  %v1899_v48 = vunpack.c.l.b16 %v4521_v38  ;;  %v4545_v12 = vpack.c.bf16 %v4510_v36, %v4510_v36  ;;  %v4572_v24 = vpack.c.b16 %v1883_v40, %v1882_v35  ;;  %v1880_v35 = vunpack.c.l.b16 %v4560_v57  ;;  %v4652_v57 = vld [vmem:[#allocation4 + $0x1c8] sm:$0xff]  ;;  %v4782_v38 = vld [vmem:[#allocation4 + $0x1a0] sm:$0xff] }
 0x155   :  { %6889 = vst [vmem:[#allocation36_spill] sm:$0xff] %v4539_v6  ;;  %v1881_v40 = vunpack.c.l.b16 %v4564_v27  ;;  %v6925_v27 = vld [vmem:[#allocation157_spill] sm:$0xff] }
 0x156   :  { %1409 = vmatpush.bf16.msra.mxu3 %v6861_v44  ;;  %v1914_v44 = vunpack.c.l.b16 %v4525_v4  ;;  %6890 = vst [vmem:[#allocation37_spill] sm:$0xff] %v4545_v12  ;;  %v1930_v0 = vunpack.c.l.b16 %v4545_v12 }
 0x157   :  { %1384 = vmatpush.bf16.msra.mxu1 %v6863_v16  ;;  %1372 = vmatmul.bf16.vlgmr.msra.gmra.mxu0 %v4194_v7  ;;  %v1932_v7 = vunpack.c.l.b16 %v4466_v47  ;;  %v4549_v16 = vpack.c.bf16 %v4512_v41, %v4512_v41  ;;  %6901 = vst [vmem:[#allocation51_spill] sm:$0xff] %v4572_v24 }
 0x158   :  { %1397 = vmatpush.bf16.msra.mxu2 %v6864_v15  ;;  %1416 = vmatpush.bf16.msrb.mxu0 %v6866_v19  ;;  %v4551_v15 = vld [vmem:[#allocation4 + $0xd0] sm:$0xff]  ;;  %6930 = vst [vmem:[#allocation88_spill] sm:$0xff] %v4652_v57 }
 0x159   :  { %6891 = vst [vmem:[#allocation38_spill] sm:$0xff] %v4549_v16 }
 0x15a   :  { %1410 = vmatpush.bf16.msra.mxu3 %v6865_v28  ;;  %1385 = vmatmul.bf16.vlgmr.msra.gmra.mxu1 %v4199_v30  ;;  %v6880_v30 = vld [vmem:[#allocation112_spill] sm:$0xff]  ;;  %6892 = vst [vmem:[#allocation41_spill] sm:$0xff] %v4551_v15  ;;  %v4553_v28 = vld [vmem:[#allocation4 + $0xd8] sm:$0xff] }
 0x15b   :  { %1429 = vmatpush.bf16.msrb.mxu1 %v6867_v14  ;;  %1398 = vmatmul.bf16.vlgmr.msra.gmra.mxu2 %v4196_v50  ;;  %v1933_v50 = vunpack.c.l.b16 %v4475_v62  ;;  %6893 = vst [vmem:[#allocation42_spill] sm:$0xff] %v4553_v28  ;;  %v1915_v14 = vunpack.c.l.b16 %v4539_v6 }
 0x15c   :  { %1442 = vmatpush.bf16.msrb.mxu2 %v6868_v32  ;;  %v4566_v32 = vld [vmem:[#allocation4 + $0x150] sm:$0xff]  ;;  %6976 = vst [vmem:[#allocation137_spill] sm:$0xff] %v4782_v38 }
 0x15d   :  { %1411 = vmatmul.bf16.vlgmr.msra.gmra.mxu3 %v4201_v13  ;;  %v6879_v13 = vld [vmem:[#allocation106_spill] sm:$0xff]  ;;  %v4555_v19 = vpack.c.b16 %v1933_v50, %v1932_v7  ;;  %6897 = vst [vmem:[#allocation49_spill] sm:$0xff] %v4566_v32  ;;  %v1931_v7 = vunpack.c.l.b16 %v4549_v16  ;;  %v4578_v50 = vpack.c.bf16 %v4551_v15, %v4551_v15  ;;  %v4594_v15 = vld [vmem:[#allocation4 + $0x40] sm:$0xff]  ;;  %v4598_v26 = vpack.c.b16 %v1915_v14, %v1914_v44 }
 0x15e   :  { %1455 = vmatpush.bf16.msrb.mxu3 %v6869_v31  ;;  %1417 = vmatpush.bf16.msrb.mxu0 %v6879_v13  ;;  %v4568_v31 = vld [vmem:[#allocation4 + $0x158] sm:$0xff]  ;;  %v4580_v13 = vld [vmem:[#allocation4 + $0x1d0] sm:$0xff]  ;;  %6909 = vst [vmem:[#allocation62_spill] sm:$0xff] %v4594_v15  ;;  %v6946_v16 = vld [vmem:[#allocation172_spill] sm:$0xff] }
 0x15f   :  { %1430 = vmatpush.bf16.msrb.mxu1 %v6880_v30  ;;  %6894 = vst [vmem:[#allocation43_spill] sm:$0xff] %v4555_v19  ;;  %v4582_v30 = vld [vmem:[#allocation4 + $0x1d8] sm:$0xff]  ;;  %v4616_v44 = vpack.c.bf16 %v4580_v13, %v4580_v13 }
 0x160   :  { %1443 = vmatpush.bf16.msrb.mxu2 %v6886_v34  ;;  %6898 = vst [vmem:[#allocation50_spill] sm:$0xff] %v4568_v31  ;;  %v6905_v34 = vld [vmem:[#allocation136_spill] sm:$0xff]  ;;  %v4620_v14 = vpack.c.bf16 %v4582_v30, %v4582_v30 }
 0x161   :  { %6902 = vst [vmem:[#allocation52_spill] sm:$0xff] %v4578_v50 }
 0x162   :  { %1456 = vmatpush.bf16.msrb.mxu3 %v6887_v37  ;;  %1418 = vmatpush.bf16.msrb.mxu0 %v6899_v61  ;;  %6903 = vst [vmem:[#allocation53_spill] sm:$0xff] %v4580_v13  ;;  %v6906_v37 = vld [vmem:[#allocation143_spill] sm:$0xff]  ;;  %v4586_v61 = vpack.c.b16 %v1899_v48, %v1898_v59  ;;  %v4603_v59 = vpack.c.bf16 %v4566_v32, %v4566_v32  ;;  %v4622_v32 = vld [vmem:[#allocation4 + $0xc8] sm:$0xff] }
 0x163   :  { %1431 = vmatpush.bf16.msrb.mxu1 %v6900_v22  ;;  %6904 = vst [vmem:[#allocation54_spill] sm:$0xff] %v4582_v30  ;;  %v4592_v22 = vpack.c.bf16 %v4553_v28, %v4553_v28  ;;  %v4607_v48 = vpack.c.bf16 %v4568_v31, %v4568_v31  ;;  %v4611_v28 = vpack.c.b16 %v1931_v7, %v1930_v0  ;;  %v6920_v31 = vld [vmem:[#allocation155_spill] sm:$0xff]  ;;  %v4636_v30 = vld [vmem:[#allocation4 + $0x140] sm:$0xff] }
 0x164   :  { %1444 = vmatpush.bf16.msrb.mxu2 %v6905_v34  ;;  %6907 = vst [vmem:[#allocation59_spill] sm:$0xff] %v4586_v61  ;;  %v1896_v34 = vunpack.c.l.b16 %v4578_v50  ;;  %v6919_v50 = vld [vmem:[#allocation145_spill] sm:$0xff]  ;;  %v1912_v36 = vunpack.c.l.b16 %v4603_v59  ;;  %v4630_v7 = vpack.c.bf16 %v4594_v15, %v4594_v15  ;;  %v4634_v13 = vpack.c.bf16 %v4596_v25, %v4596_v25  ;;  %v4650_v25 = vld [vmem:[#allocation4 + $0x1c0] sm:$0xff] }
 0x165   :  { %6908 = vst [vmem:[#allocation61_spill] sm:$0xff] %v4592_v22  ;;  %v1897_v41 = vunpack.c.l.b16 %v4592_v22  ;;  %v1913_v0 = vunpack.c.l.b16 %v4607_v48  ;;  %v4638_v22 = vld [vmem:[#allocation4 + $0x148] sm:$0xff] }
 0x166   :  { %1457 = vmatpush.bf16.msrb.mxu3 %v6906_v37  ;;  %6911 = vst [vmem:[#allocation65_spill] sm:$0xff] %v4598_v26  ;;  %v4609_v37 = vld [vmem:[#allocation4 + $0xc0] sm:$0xff]  ;;  %1419 = vmatpush.bf16.msrb.mxu0 %v6919_v50  ;;  %v6926_v50 = vld [vmem:[#allocation161_spill] sm:$0xff] }
 0x167   :  { %6912 = vst [vmem:[#allocation68_spill] sm:$0xff] %v4603_v59  ;;  %1432 = vmatpush.bf16.msrb.mxu1 %v6920_v31  ;;  %v4642_v31 = vpack.c.b16 %v1881_v40, %v1880_v35  ;;  %v1929_v59 = vunpack.c.l.b16 %v4620_v14  ;;  %v4648_v15 = vpack.c.bf16 %v4609_v37, %v4609_v37  ;;  %v4654_v54 = vpack.c.b16 %v1897_v41, %v1896_v34  ;;  %v4662_v40 = vld [vmem:[#allocation4 + $0x30] sm:$0xff] }
 0x168   :  { %6913 = vst [vmem:[#allocation69_spill] sm:$0xff] %v4607_v48  ;;  %1445 = vmatpush.bf16.msrb.mxu2 %v6925_v27  ;;  %v1928_v48 = vunpack.c.l.b16 %v4616_v44  ;;  %v1878_v27 = vunpack.c.l.b16 %v4630_v7  ;;  %v4660_v35 = vpack.c.bf16 %v4622_v32, %v4622_v32  ;;  %v4671_v41 = vpack.c.bf16 %v4636_v30, %v4636_v30 }
 0x169   :  { %6914 = vst [vmem:[#allocation70_spill] sm:$0xff] %v4609_v37  ;;  %v4666_v37 = vpack.c.b16 %v1913_v0, %v1912_v36  ;;  %v4675_v34 = vpack.c.bf16 %v4638_v22, %v4638_v22  ;;  %v4686_v0 = vpack.c.bf16 %v4650_v25, %v4650_v25 }
 0x16a   :  { %6915 = vst [vmem:[#allocation71_spill] sm:$0xff] %v4611_v28  ;;  %1458 = vmatpush.bf16.msrb.mxu3 %v6926_v50  ;;  %v1879_v50 = vunpack.c.l.b16 %v4634_v13  ;;  %v4681_v11 = vpack.c.b16 %v1929_v59, %v1928_v48  ;;  %v1895_v36 = vunpack.c.l.b16 %v4660_v35  ;;  %v4700_v48 = vpack.c.bf16 %v4662_v40, %v4662_v40 }
 0x16b   :  { %6916 = vst [vmem:[#allocation166_spill] sm:$0xff] %v4616_v44  ;;  %v1894_v44 = vunpack.c.l.b16 %v4648_v15  ;;  %v1911_v59 = vunpack.c.l.b16 %v4675_v34 }
 0x16c   :  { %6917 = vst [vmem:[#allocation72_spill] sm:$0xff] %v4620_v14  ;;  %v4664_v14 = vld [vmem:[#allocation4 + $0x38] sm:$0xff]  ;;  %v1876_v12 = vunpack.c.l.b16 %v4700_v48 }
 0x16d   :  { %6918 = vst [vmem:[#allocation73_spill] sm:$0xff] %v4622_v32  ;;  %v6939_v32 = vld [vmem:[#allocation164_spill] sm:$0xff] }
 0x16e   :  { %6921 = vst [vmem:[#allocation76_spill] sm:$0xff] %v4630_v7  ;;  %1420 = vmatpush.bf16.msrb.mxu0 %v6939_v32  ;;  %v6940_v7 = vld [vmem:[#allocation165_spill] sm:$0xff]  ;;  %1459 = vmatpush.bf16.msrb.mxu3 %v6946_v16  ;;  %v1910_v32 = vunpack.c.l.b16 %v4671_v41  ;;  %v1926_v16 = vunpack.c.l.b16 %v4686_v0 }
 0x16f   :  { %6922 = vst [vmem:[#allocation77_spill] sm:$0xff] %v4634_v13  ;;  %v4677_v13 = vld [vmem:[#allocation4 + $0xb0] sm:$0xff]  ;;  %1433 = vmatpush.bf16.msrb.mxu1 %v6940_v7  ;;  %v4704_v7 = vpack.c.bf16 %v4664_v14, %v4664_v14 }
 0x170   :  { %6923 = vst [vmem:[#allocation79_spill] sm:$0xff] %v4636_v30  ;;  %v4690_v30 = vpack.c.bf16 %v4652_v57, %v4652_v57  ;;  %v4706_v57 = vld [vmem:[#allocation4 + $0x130] sm:$0xff] }
 0x171   :  { %6924 = vst [vmem:[#allocation80_spill] sm:$0xff] %v4638_v22  ;;  %v4692_v22 = vld [vmem:[#allocation4 + $0xb8] sm:$0xff]  ;;  %v1877_v18 = vunpack.c.l.b16 %v4704_v7 }
 0x172   :  { %6927 = vst [vmem:[#allocation84_spill] sm:$0xff] %v4642_v31 }
 0x173   :  { %6928 = vst [vmem:[#allocation85_spill] sm:$0xff] %v4648_v15  ;;  %v6945_v15 = vld [vmem:[#allocation169_spill] sm:$0xff]  ;;  %v4776_v6 = vpack.c.b16 %v1877_v18, %v1876_v12 }
 0x174   :  { %6929 = vst [vmem:[#allocation87_spill] sm:$0xff] %v4650_v25  ;;  %1446 = vmatpush.bf16.msrb.mxu2 %v6945_v15  ;;  %v4708_v25 = vld [vmem:[#allocation4 + $0x138] sm:$0xff]  ;;  %v1927_v15 = vunpack.c.l.b16 %v4690_v30  ;;  %v4794_v12 = vld [vmem:[#allocation4 + $0x1a8] sm:$0xff] }
 0x175   :  { %6931 = vst [vmem:[#allocation90_spill] sm:$0xff] %v4654_v54 }
 0x176   :  { %6932 = vst [vmem:[#allocation94_spill] sm:$0xff] %v4660_v35  ;;  %v4710_v35 = vpack.c.b16 %v1879_v50, %v1878_v27  ;;  %v4728_v27 = vpack.c.bf16 %v4692_v22, %v4692_v22  ;;  %v6957_v50 = vld [vmem:[#allocation178_spill] sm:$0xff] }
 0x177   :  { %6933 = vst [vmem:[#allocation98_spill] sm:$0xff] %v4662_v40  ;;  %v4718_v40 = vld [vmem:[#allocation4 + $0x1b0] sm:$0xff]  ;;  %1421 = vmatpush.bf16.msrb.mxu0 %v6957_v50  ;;  %v4745_v50 = vpack.c.b16 %v1927_v15, %v1926_v16 }
 0x178   :  { %6934 = vst [vmem:[#allocation103_spill] sm:$0xff] %v4664_v14  ;;  %v4722_v14 = vpack.c.b16 %v1895_v36, %v1894_v44  ;;  %v4737_v44 = vpack.c.bf16 %v4706_v57, %v4706_v57  ;;  %v4741_v36 = vpack.c.bf16 %v4708_v25, %v4708_v25 }
 0x179   :  { %6935 = vst [vmem:[#allocation91_spill] sm:$0xff] %v4666_v37 }
 0x17a   :  { %6936 = vst [vmem:[#allocation92_spill] sm:$0xff] %v4671_v41  ;;  %v4720_v41 = vld [vmem:[#allocation4 + $0x1b8] sm:$0xff]  ;;  %v1908_v16 = vunpack.c.l.b16 %v4737_v44  ;;  %v1909_v15 = vunpack.c.l.b16 %v4741_v36 }
 0x17b   :  { %6937 = vst [vmem:[#allocation93_spill] sm:$0xff] %v4675_v34  ;;  %v4716_v34 = vpack.c.bf16 %v4677_v13, %v4677_v13 }
 0x17c   :  { %6938 = vst [vmem:[#allocation99_spill] sm:$0xff] %v4677_v13  ;;  %v4732_v13 = vpack.c.b16 %v1911_v59, %v1910_v32  ;;  %v4750_v32 = vpack.c.bf16 %v4718_v40, %v4718_v40  ;;  %v4754_v59 = vpack.c.bf16 %v4720_v41, %v4720_v41 }
 0x17d   :  { %6941 = vst [vmem:[#allocation107_spill] sm:$0xff] %v4681_v11 }
 0x17e   :  { %6942 = vst [vmem:[#allocation96_spill] sm:$0xff] %v4686_v0  ;;  %v1892_v0 = vunpack.c.l.b16 %v4716_v34  ;;  %v1924_v4 = vunpack.c.l.b16 %v4750_v32 }
 0x17f   :  { %6943 = vst [vmem:[#allocation108_spill] sm:$0xff] %v4690_v30  ;;  %v6958_v30 = vld [vmem:[#allocation182_spill] sm:$0xff] }
 0x180   :  { %6944 = vst [vmem:[#allocation97_spill] sm:$0xff] %v4692_v22  ;;  %1434 = vmatpush.bf16.msrb.mxu1 %v6958_v30  ;;  %v6963_v22 = vld [vmem:[#allocation190_spill] sm:$0xff]  ;;  %v1893_v30 = vunpack.c.l.b16 %v4728_v27 }
 0x181   :  { %6947 = vst [vmem:[#allocation109_spill] sm:$0xff] %v4700_v48  ;;  %1460 = vmatpush.bf16.msrb.mxu3 %v6963_v22  ;;  %v1137_v48 = vpop.f32.mrf.mxu0  ;;  %v1150_v22 = vpop.f32.mrf.mxu1 }
 0x182   :  { %6948 = vst [vmem:[#allocation100_spill] sm:$0xff] %v4704_v7  ;;  %v6962_v7 = vld [vmem:[#allocation184_spill] sm:$0xff]  ;;  %v1151_v43 = vadd.f32 %v1150_v22, %v1137_v48  ;;  %v6982_v22 = vld [vmem:[#allocation198_spill] sm:$0xff] }
 0x183   :  { %6949 = vst [vmem:[#allocation110_spill] sm:$0xff] %v4706_v57  ;;  %1447 = vmatpush.bf16.msrb.mxu2 %v6962_v7  ;;  %v4756_v57 = vld [vmem:[#allocation4 + $0x20] sm:$0xff] }
 0x184   :  { %6950 = vst [vmem:[#allocation101_spill] sm:$0xff] %v4708_v25  ;;  %v4758_v25 = vld [vmem:[#allocation4 + $0x28] sm:$0xff]  ;;  %v4760_v7 = vld [vmem:[#allocation4 + $0xa0] sm:$0xff]  ;;  %1435 = vmatpush.bf16.msrb.mxu1 %v6978_v5 }
 0x185   :  { %6951 = vst [vmem:[#allocation111_spill] sm:$0xff] %v4710_v35  ;;  %v4792_v18 = vpack.c.bf16 %v4760_v7, %v4760_v7 }
 0x186   :  { %6952 = vst [vmem:[#allocation102_spill] sm:$0xff] %v4716_v34  ;;  %v4774_v34 = vld [vmem:[#allocation4 + $0x120] sm:$0xff] }
 0x187   :  { %6953 = vst [vmem:[#allocation113_spill] sm:$0xff] %v4718_v40  ;;  %v4770_v40 = vpack.c.bf16 %v4758_v25, %v4758_v25  ;;  %1448 = vmatpush.bf16.msrb.mxu2 %v6982_v22  ;;  %v1890_v22 = vunpack.c.l.b16 %v4792_v18 }
 0x188   :  { %6954 = vst [vmem:[#allocation105_spill] sm:$0xff] %v4720_v41  ;;  %v4772_v41 = vld [vmem:[#allocation4 + $0xa8] sm:$0xff] }
 0x189   :  { %6955 = vst [vmem:[#allocation120_spill] sm:$0xff] %v4722_v14  ;;  %v1875_v48 = vunpack.c.l.b16 %v4770_v40  ;;  %v4802_v5 = vpack.c.bf16 %v4772_v41, %v4772_v41 }
 0x18a   :  { %6956 = vst [vmem:[#allocation114_spill] sm:$0xff] %v4728_v27  ;;  %v4766_v27 = vpack.c.bf16 %v4756_v57, %v4756_v57 }
 0x18b   :  { %6959 = vst [vmem:[#allocation122_spill] sm:$0xff] %v4732_v13 }
 0x18c   :  { %6960 = vst [vmem:[#allocation115_spill] sm:$0xff] %v4737_v44  ;;  %v1925_v44 = vunpack.c.l.b16 %v4754_v59  ;;  %v1874_v23 = vunpack.c.l.b16 %v4766_v27 }
 0x18d   :  { %6961 = vst [vmem:[#allocation123_spill] sm:$0xff] %v4741_v36  ;;  %v4780_v36 = vld [vmem:[#allocation4 + $0x128] sm:$0xff] }
 0x18e   :  { %6964 = vst [vmem:[#allocation116_spill] sm:$0xff] %v4745_v50 }
 0x18f   :  { %6965 = vst [vmem:[#allocation192_spill] sm:$0xff] %v4750_v32  ;;  %v4798_v32 = vpack.c.b16 %v1909_v15, %v1908_v16  ;;  %v4821_v16 = vpack.c.bf16 %v4782_v38, %v4782_v38  ;;  %v4823_v15 = vld [vmem:[#allocation4 + $0x90] sm:$0xff]  ;;  %v6994_v38 = vld [vmem:[#allocation204_spill] sm:$0xff] }
 0x190   :  { %6966 = vst [vmem:[#allocation124_spill] sm:$0xff] %v4754_v59  ;;  %v6983_v59 = vld [vmem:[#allocation201_spill] sm:$0xff]  ;;  %1436 = vmatpush.bf16.msrb.mxu1 %v6994_v38 }
 0x191   :  { %6967 = vst [vmem:[#allocation117_spill] sm:$0xff] %v4756_v57  ;;  %v6977_v57 = vld [vmem:[#allocation191_spill] sm:$0xff]  ;;  %1461 = vmatpush.bf16.msrb.mxu3 %v6983_v59  ;;  %v4817_v59 = vpack.c.bf16 %v4780_v36, %v4780_v36 }
 0x192   :  { %6968 = vst [vmem:[#allocation127_spill] sm:$0xff] %v4758_v25  ;;  %1422 = vmatpush.bf16.msrb.mxu0 %v6977_v57  ;;  %v4786_v25 = vpack.c.b16 %v1893_v30, %v1892_v0  ;;  %v4806_v57 = vpack.c.bf16 %v4774_v34, %v4774_v34  ;;  %v4808_v0 = vld [vmem:[#allocation4 + $0x10] sm:$0xff]  ;;  %v4810_v30 = vld [vmem:[#allocation4 + $0x18] sm:$0xff] }
 0x193   :  { %6969 = vst [vmem:[#allocation118_spill] sm:$0xff] %v4760_v7  ;;  %v4812_v7 = vpack.c.b16 %v1925_v44, %v1924_v4  ;;  %v4829_v4 = vpack.c.bf16 %v4794_v12, %v4794_v12  ;;  %v4833_v44 = vpack.c.bf16 %v4808_v0, %v4808_v0  ;;  %1437 = vmatmul.bf16.vlgmr.msrb.gmra.mxu1 %v4380_v10 }
 0x194   :  { %6970 = vst [vmem:[#allocation131_spill] sm:$0xff] %v4766_v27  ;;  %2011 = vmatpush.bf16.msra.mxu1 %v4516_v9 }
 0x195   :  { %6971 = vst [vmem:[#allocation125_spill] sm:$0xff] %v4770_v40  ;;  %v1906_v40 = vunpack.c.l.b16 %v4806_v57 }
 0x196   :  { %6972 = vst [vmem:[#allocation133_spill] sm:$0xff] %v4772_v41  ;;  %v1891_v41 = vunpack.c.l.b16 %v4802_v5 }
 0x197   :  { %6973 = vst [vmem:[#allocation128_spill] sm:$0xff] %v4774_v34  ;;  %v1163_v34 = vpop.f32.mrf.mxu2 }
 0x198   :  { %6974 = vst [vmem:[#allocation134_spill] sm:$0xff] %v4776_v6  ;;  %v1164_v27 = vadd.f32 %v1163_v34, %v1151_v43  ;;  %v6999_v6 = vld [vmem:[#allocation209_spill] sm:$0xff]  ;;  %v4852_v38 = vpack.c.b16 %v1891_v41, %v1890_v22  ;;  %v1923_v43 = vunpack.c.l.b16 %v4829_v4  ;;  %v4858_v34 = vpack.c.bf16 %v4823_v15, %v4823_v15  ;;  %2012 = vmatpush.bf16.msra.mxu1 %v4586_v61 }
 0x199   :  { %6975 = vst [vmem:[#allocation129_spill] sm:$0xff] %v4780_v36  ;;  %v4835_v36 = vld [vmem:[#allocation4 + $0x98] sm:$0xff]  ;;  %1462 = vmatpush.bf16.msrb.mxu3 %v6999_v6  ;;  %v1152_v6 = vpop.f32.mrf.mxu1  ;;  %v1872_v41 = vunpack.c.l.b16 %v4833_v44 }
 0x19a   :  { %6979 = vst [vmem:[#allocation130_spill] sm:$0xff] %v4786_v25  ;;  %v6998_v25 = vld [vmem:[#allocation206_spill] sm:$0xff]  ;;  %v4890_v6 = vld [vmem:[#allocation4 + $0x80] sm:$0xff] }
 0x19b   :  { %6980 = vst [vmem:[#allocation144_spill] sm:$0xff] %v4792_v18  ;;  %v6993_v18 = vld [vmem:[#allocation202_spill] sm:$0xff]  ;;  %1449 = vmatpush.bf16.msrb.mxu2 %v6998_v25 }
 0x19c   :  { %6981 = vst [vmem:[#allocation135_spill] sm:$0xff] %v4794_v12  ;;  %1423 = vmatpush.bf16.msrb.mxu0 %v6993_v18  ;;  %v4844_v12 = vpack.c.bf16 %v4810_v30, %v4810_v30  ;;  %v1139_v18 = vpop.f32.mrf.mxu0  ;;  %1463 = vmatmul.bf16.vlgmr.msrb.gmra.mxu3 %v4382_v51 }
 0x19d   :  { %6984 = vst [vmem:[#allocation146_spill] sm:$0xff] %v4798_v32  ;;  %v4839_v32 = vpack.c.b16 %v1875_v48, %v1874_v23  ;;  %v1922_v23 = vunpack.c.l.b16 %v4821_v16  ;;  %v4860_v48 = vld [vmem:[#allocation4 + $0x190] sm:$0xff]  ;;  %v4872_v18 = vpack.c.bf16 %v4835_v36, %v4835_v36  ;;  %2037 = vmatpush.bf16.msra.mxu3 %v4555_v19  ;;  %2013 = vmatpush.bf16.msra.mxu1 %v4654_v54  ;;  %v1676_v54 = vunpack.c.l.bf16 %v4440_v55 }
 0x19e   :  { %6985 = vst [vmem:[#allocation138_spill] sm:$0xff] %v4802_v5  ;;  %v4846_v5 = vld [vmem:[#allocation4 + $0x110] sm:$0xff]  ;;  %v1873_v22 = vunpack.c.l.b16 %v4844_v12  ;;  %1450 = vmatmul.bf16.vlgmr.msrb.gmra.mxu2 %v4378_v3  ;;  %v1708_v55 = vunpack.c.l.bf16 %v4466_v47 }
 0x19f   :  { %6986 = vst [vmem:[#allocation147_spill] sm:$0xff] %v4806_v57  ;;  %v1907_v57 = vunpack.c.l.b16 %v4817_v59  ;;  %2024 = vmatpush.bf16.msra.mxu2 %v4533_v46  ;;  %1424 = vmatmul.bf16.vlgmr.msrb.gmra.mxu0 %v4376_v17  ;;  %v1888_v46 = vunpack.c.l.b16 %v4858_v34  ;;  %v1889_v19 = vunpack.c.l.b16 %v4872_v18  ;;  %v4924_v10 = vpack.c.b16 %v1923_v43, %v1922_v23 }
 0x1a0   :  { %6987 = vst [vmem:[#allocation139_spill] sm:$0xff] %v4808_v0  ;;  %v4848_v0 = vld [vmem:[#allocation4 + $0x118] sm:$0xff]  ;;  %1998 = vmatpush.bf16.msra.mxu0 %v4483_v45  ;;  %v4904_v45 = vld [vmem:[#allocation4 + $0x88] sm:$0xff]  ;;  %v4926_v51 = vpack.c.b16 %v1873_v22, %v1872_v41 }
 0x1a1   :  { %6988 = vst [vmem:[#allocation148_spill] sm:$0xff] %v4810_v30  ;;  %v4862_v30 = vld [vmem:[#allocation4 + $0x198] sm:$0xff]  ;;  %v4880_v9 = vpack.c.b16 %v1907_v57, %v1906_v40  ;;  %v4898_v40 = vpack.c.bf16 %v4860_v48, %v4860_v48  ;;  %2038 = vmatpush.bf16.msra.mxu3 %v4611_v28  ;;  %v4944_v22 = vpack.c.bf16 %v4904_v45, %v4904_v45 }
 0x1a2   :  { %6989 = vst [vmem:[#allocation140_spill] sm:$0xff] %v4812_v7  ;;  %v1176_v7 = vpop.f32.mrf.mxu3  ;;  %v4902_v57 = vpack.c.bf16 %v4862_v30, %v4862_v30  ;;  %2014 = vmatpush.bf16.msra.mxu1 %v4722_v14 }
 0x1a3   :  { %6990 = vst [vmem:[#allocation149_spill] sm:$0xff] %v4823_v15  ;;  %v4866_v25 = vadd.f32 %v1176_v7, %v1164_v27  ;;  %v4874_v15 = vld [vmem:[#allocation4] sm:$0xff]  ;;  %v4884_v27 = vpack.c.bf16 %v4846_v5, %v4846_v5  ;;  %v4888_v7 = vpack.c.bf16 %v4848_v0, %v4848_v0  ;;  %2025 = vmatpush.bf16.msra.mxu2 %v4598_v26 }
 0x1a4   :  { %6991 = vst [vmem:[#allocation141_spill] sm:$0xff] %v4829_v4  ;;  %v4876_v4 = vld [vmem:[#allocation4 + $0x8] sm:$0xff]  ;;  %1999 = vmatpush.bf16.msra.mxu0 %v4572_v24  ;;  %v1165_v24 = vpop.f32.mrf.mxu2  ;;  %v1921_v23 = vunpack.c.l.b16 %v4902_v57 }
 0x1a5   :  { %6992 = vst [vmem:[#allocation151_spill] sm:$0xff] %v4835_v36  ;;  %v1904_v17 = vunpack.c.l.b16 %v4884_v27  ;;  %v1905_v3 = vunpack.c.l.b16 %v4888_v7  ;;  %v1920_v36 = vunpack.c.l.b16 %v4898_v40  ;;  %2039 = vmatpush.bf16.msra.mxu3 %v4681_v11 }
 0x1a6   :  { %6995 = vst [vmem:[#allocation142_spill] sm:$0xff] %v4839_v32 }
 0x1a7   :  { %6996 = vst [vmem:[#allocation158_spill] sm:$0xff] %v4846_v5  ;;  %v4920_v5 = vld [vmem:[#allocation4 + $0x108] sm:$0xff]  ;;  %2026 = vmatpush.bf16.msra.mxu2 %v4666_v37 }
 0x1a8   :  { %6997 = vst [vmem:[#allocation150_spill] sm:$0xff] %v4848_v0  ;;  %v4912_v0 = vpack.c.bf16 %v4874_v15, %v4874_v15  ;;  %v4956_v24 = vpack.c.bf16 %v4920_v5, %v4920_v5  ;;  %2000 = vmatpush.bf16.msra.mxu0 %v4642_v31 }
 0x1a9   :  { %7000 = vst [vmem:[#allocation159_spill] sm:$0xff] %v4852_v38  ;;  %2040 = vmatpush.bf16.msra.mxu3 %v4745_v50 }
 0x1aa   :  { %7001 = vst [vmem:[#allocation152_spill] sm:$0xff] %v4860_v48  ;;  %v4916_v48 = vpack.c.bf16 %v4876_v4, %v4876_v4  ;;  %v1870_v43 = vunpack.c.l.b16 %v4912_v0  ;;  %v1178_v61 = vpop.f32.mrf.mxu3 }
 0x1ab   :  { %7002 = vst [vmem:[#allocation160_spill] sm:$0xff] %v4862_v30  ;;  %v4918_v30 = vld [vmem:[#allocation4 + $0x100] sm:$0xff]  ;;  %v1903_v61 = vunpack.c.l.b16 %v4956_v24  ;;  %2027 = vmatpush.bf16.msra.mxu2 %v4732_v13  ;;  %v7053_v13 = vld [vmem:[#allocation77_spill] sm:$0xff] }
 0x1ac   :  { %7003 = vst [vmem:[#allocation153_spill] sm:$0xff] %v4874_v15  ;;  %v4931_v15 = vpack.c.bf16 %v4890_v6, %v4890_v6  ;;  %v1871_v41 = vunpack.c.l.b16 %v4916_v48  ;;  %v4952_v26 = vpack.c.bf16 %v4918_v30, %v4918_v30  ;;  %2001 = vmatpush.bf16.msra.mxu0 %v4710_v35 }
 0x1ad   :  { %7004 = vst [vmem:[#allocation154_spill] sm:$0xff] %v4876_v4  ;;  %v4933_v4 = vld [vmem:[#allocation4 + $0x180] sm:$0xff] }
 0x1ae   :  { %7005 = vst [vmem:[#allocation156_spill] sm:$0xff] %v4880_v9  ;;  %v1886_v28 = vunpack.c.l.b16 %v4931_v15 }
 0x1af   :  { %7006 = vst [vmem:[#allocation162_spill] sm:$0xff] %v4888_v7  ;;  %v4935_v7 = vld [vmem:[#allocation4 + $0x188] sm:$0xff] }
 0x1b0   :  { %7007 = vst [vmem:[#allocation163_spill] sm:$0xff] %v4890_v6  ;;  %v4946_v6 = vpack.c.b16 %v1889_v19, %v1888_v46  ;;  %v4966_v46 = vpack.c.bf16 %v4935_v7, %v4935_v7  ;;  %v1902_v19 = vunpack.c.l.b16 %v4952_v26 }
 0x1b1   :  { %7008 = vst [vmem:[#allocation167_spill] sm:$0xff] %v4898_v40  ;;  %v4948_v40 = vpack.c.b16 %v1905_v3, %v1904_v17  ;;  %v1660_v17 = vunpack.c.l.bf16 %v4424_v2  ;;  %v1661_v3 = vunpack.c.l.bf16 %v4428_v56  ;;  %v1677_v56 = vunpack.c.l.bf16 %v4444_v42 }
 0x1b2   :  { %7009 = vst [vmem:[#allocation168_spill] sm:$0xff] %v4904_v45  ;;  %v4962_v45 = vpack.c.bf16 %v4933_v4, %v4933_v4  ;;  %v1709_v42 = vunpack.c.l.bf16 %v4475_v62  ;;  %v5021_v62 = vsub.f32 %v4452_v49, %v1708_v55  ;;  %v7034_v49 = vld [vmem:[#allocation21_spill] sm:$0xff] }
 0x1b3   :  { %7010 = vst [vmem:[#allocation170_spill] sm:$0xff] %v4916_v48  ;;  %v1887_v48 = vunpack.c.l.b16 %v4944_v22  ;;  %v4987_v2 = vsub.f32 %v4418_v29, %v1661_v3  ;;  %v5002_v29 = vsub.f32 %v4432_v33, %v1677_v56  ;;  %v7028_v56 = vld [vmem:[#allocation146_spill] sm:$0xff] }
 0x1b4   :  { %7011 = vst [vmem:[#allocation171_spill] sm:$0xff] %v4918_v30  ;;  %v1918_v31 = vunpack.c.l.b16 %v4962_v45  ;;  %v4984_v30 = vsub.f32 %v4416_v8, %v1660_v17  ;;  %v4999_v8 = vsub.f32 %v4430_v53, %v1676_v54  ;;  %v1658_v53 = vunpack.c.l.bf16 %v4488_v20  ;;  %v7027_v17 = vld [vmem:[#allocation36_spill] sm:$0xff]  ;;  %2028 = vmatpush.bf16.msra.mxu2 %v7028_v56 }
 0x1b5   :  { %7012 = vst [vmem:[#allocation173_spill] sm:$0xff] %v4920_v5  ;;  %v1919_v5 = vunpack.c.l.b16 %v4966_v46  ;;  %v4990_v37 = vpack.c.b16 %v1887_v48, %v1886_v28  ;;  %v1659_v54 = vunpack.c.l.bf16 %v4502_v63  ;;  %v1674_v28 = vunpack.c.l.bf16 %v4506_v58  ;;  %v7021_v48 = vld [vmem:[#allocation13_spill] sm:$0xff]  ;;  %v7023_v63 = vld [vmem:[#allocation28_spill] sm:$0xff] }
 0x1b6   :  { %7013 = vst [vmem:[#allocation174_spill] sm:$0xff] %v4924_v10  ;;  %v1691_v3 = vunpack.c.l.bf16 %v7027_v17  ;;  %v7036_v17 = vld [vmem:[#allocation44_spill] sm:$0xff] }
 0x1b7   :  { %7014 = vst [vmem:[#allocation183_spill] sm:$0xff] %v4926_v51  ;;  %v5016_v33 = vpack.c.b16 %v1919_v5, %v1918_v31  ;;  %v1675_v31 = vunpack.c.l.bf16 %v7023_v63  ;;  %v7024_v5 = vld [vmem:[#allocation134_spill] sm:$0xff]  ;;  %v1656_v56 = vunpack.c.l.bf16 %v7036_v17 }
 0x1b8   :  { %7015 = vst [vmem:[#allocation175_spill] sm:$0xff] %v4933_v4  ;;  %v4976_v4 = vpack.c.b16 %v1921_v23, %v1920_v36  ;;  %v4992_v36 = vpack.c.b16 %v1903_v61, %v1902_v19  ;;  %v1692_v23 = vunpack.c.l.bf16 %v4450_v21  ;;  %2002 = vmatpush.bf16.msra.mxu0 %v7024_v5  ;;  %v7025_v19 = vld [vmem:[#allocation130_spill] sm:$0xff]  ;;  %2029 = vmatpush.bf16.msra.mxu2 %v4880_v9  ;;  %v7050_v5 = vld [vmem:[#allocation49_spill] sm:$0xff] }
 0x1b9   :  { %7016 = vst [vmem:[#allocation176_spill] sm:$0xff] %v4935_v7  ;;  %v4978_v7 = vpack.c.b16 %v1871_v41, %v1870_v43  ;;  %v1693_v43 = vunpack.c.l.bf16 %v4462_v52  ;;  %v7022_v41 = vld [vmem:[#allocation14_spill] sm:$0xff]  ;;  %2015 = vmatpush.bf16.msra.mxu1 %v7025_v19 }
 0x1ba   :  { %7017 = vst [vmem:[#allocation177_spill] sm:$0xff] %v4946_v6  ;;  %v5009_v21 = vsub.f32 %v4434_v60, %v1692_v23  ;;  %v5025_v60 = vsub.f32 %v4454_v1, %v1709_v42  ;;  %v5031_v20 = vsub.f32 %v7022_v41, %v1659_v54  ;;  %v7026_v1 = vld [vmem:[#allocation30_spill] sm:$0xff]  ;;  %v7029_v23 = vld [vmem:[#allocation140_spill] sm:$0xff]  ;;  %v7032_v54 = vld [vmem:[#allocation37_spill] sm:$0xff] }
 0x1bb   :  { %7018 = vst [vmem:[#allocation179_spill] sm:$0xff] %v4948_v40  ;;  %v5012_v52 = vsub.f32 %v4446_v39, %v1693_v43  ;;  %v5028_v39 = vsub.f32 %v7021_v48, %v1658_v53  ;;  %v1690_v61 = vunpack.c.l.bf16 %v7026_v1  ;;  %2041 = vmatpush.bf16.msra.mxu3 %v7029_v23  ;;  %v7030_v43 = vld [vmem:[#allocation18_spill] sm:$0xff]  ;;  %v7031_v42 = vld [vmem:[#allocation20_spill] sm:$0xff]  ;;  %v1706_v48 = vunpack.c.l.bf16 %v7032_v54 }
 0x1bc   :  { %7019 = vst [vmem:[#allocation180_spill] sm:$0xff] %v4966_v46  ;;  %v5045_v55 = vsub.f32 %v7030_v43, %v1674_v28  ;;  %v5048_v53 = vsub.f32 %v7031_v42, %v1675_v31  ;;  %v7033_v41 = vld [vmem:[#allocation38_spill] sm:$0xff]  ;;  %v7038_v43 = vld [vmem:[#allocation24_spill] sm:$0xff]  ;;  %2003 = vmatpush.bf16.msra.mxu0 %v4839_v32  ;;  %v7043_v28 = vld [vmem:[#allocation61_spill] sm:$0xff]  ;;  %2030 = vmatpush.bf16.msra.mxu2 %v4948_v40 }
 0x1bd   :  { %7020 = vst [vmem:[#allocation181_spill] sm:$0xff] %v4976_v4  ;;  %v1707_v63 = vunpack.c.l.bf16 %v7033_v41  ;;  %v5053_v58 = vsub.f32 %v7034_v49, %v1690_v61  ;;  %v7035_v1 = vld [vmem:[#allocation22_spill] sm:$0xff]  ;;  %v5065_v42 = vsub.f32 %v7038_v43, %v1706_v48  ;;  %v7039_v54 = vld [vmem:[#allocation52_spill] sm:$0xff]  ;;  %2016 = vmatpush.bf16.msra.mxu1 %v4852_v38  ;;  %v7040_v49 = vld [vmem:[#allocation25_spill] sm:$0xff]  ;;  %v1673_v31 = vunpack.c.l.bf16 %v7043_v28 }
 0x1be   :  { %v5056_v47 = vsub.f32 %v7035_v1, %v1691_v3  ;;  %v7037_v19 = vld [vmem:[#allocation46_spill] sm:$0xff]  ;;  %v1672_v41 = vunpack.c.l.bf16 %v7039_v54  ;;  %v7041_v3 = vld [vmem:[#allocation32_spill] sm:$0xff]  ;;  %v7044_v43 = vld [vmem:[#allocation41_spill] sm:$0xff] }
 0x1bf   :  { %v1657_v23 = vunpack.c.l.bf16 %v7037_v19  ;;  %v5071_v61 = vsub.f32 %v7040_v49, %v1707_v63  ;;  %v5074_v19 = vsub.f32 %v7041_v3, %v1656_v56  ;;  %v7042_v1 = vld [vmem:[#allocation34_spill] sm:$0xff]  ;;  %2042 = vmatpush.bf16.msra.mxu3 %v4924_v10  ;;  %v7045_v63 = vld [vmem:[#allocation68_spill] sm:$0xff]  ;;  %v7046_v38 = vld [vmem:[#allocation69_spill] sm:$0xff] }
 0x1c0   :  { %v5085_v54 = vsub.f32 %v7044_v43, %v1672_v41  ;;  %v1688_v49 = vunpack.c.l.bf16 %v7045_v63  ;;  %v1689_v56 = vunpack.c.l.bf16 %v7046_v38  ;;  %v7047_v3 = vld [vmem:[#allocation42_spill] sm:$0xff]  ;;  %v7049_v32 = vld [vmem:[#allocation72_spill] sm:$0xff]  ;;  %v1655_v38 = vunpack.c.l.bf16 %v7053_v13  ;;  %2004 = vmatpush.bf16.msra.mxu0 %v4926_v51  ;;  %v7059_v40 = vld [vmem:[#allocation63_spill] sm:$0xff]  ;;  %2031 = vmatpush.bf16.msra.mxu2 %v4992_v36 }
 0x1c1   :  { %v5077_v17 = vsub.f32 %v7042_v1, %v1657_v23  ;;  %v5092_v1 = vsub.f32 %v7047_v3, %v1673_v31  ;;  %v7048_v28 = vld [vmem:[#allocation166_spill] sm:$0xff]  ;;  %v1705_v10 = vunpack.c.l.bf16 %v7049_v32  ;;  %v7052_v43 = vld [vmem:[#allocation76_spill] sm:$0xff]  ;;  %2017 = vmatpush.bf16.msra.mxu1 %v4946_v6  ;;  %v7055_v3 = vld [vmem:[#allocation53_spill] sm:$0xff]  ;;  %v1202_v6 = vpop.f32.mrf.mxu1 }
 0x1c2   :  { %v1704_v9 = vunpack.c.l.bf16 %v7048_v28  ;;  %v5097_v50 = vsub.f32 %v7050_v5, %v1688_v49  ;;  %v7051_v48 = vld [vmem:[#allocation50_spill] sm:$0xff]  ;;  %v1654_v63 = vunpack.c.l.bf16 %v7052_v43  ;;  %v7054_v49 = vld [vmem:[#allocation85_spill] sm:$0xff]  ;;  %v5129_v14 = vsub.f32 %v7059_v40, %v1655_v38  ;;  %v7066_v38 = vld [vmem:[#allocation108_spill] sm:$0xff] }
 0x1c3   :  { %v5100_v41 = vsub.f32 %v7051_v48, %v1689_v56  ;;  %v1670_v48 = vunpack.c.l.bf16 %v7054_v49  ;;  %v1189_v56 = vpop.f32.mrf.mxu0  ;;  %2043 = vmatpush.bf16.msra.mxu3 %v4976_v4  ;;  %v7056_v43 = vld [vmem:[#allocation54_spill] sm:$0xff]  ;;  %v7060_v4 = vld [vmem:[#allocation92_spill] sm:$0xff] }
 0x1c4   :  { %v5118_v28 = vsub.f32 %v7055_v3, %v1704_v9  ;;  %v5121_v31 = vsub.f32 %v7056_v43, %v1705_v10  ;;  %v7057_v32 = vld [vmem:[#allocation94_spill] sm:$0xff]  ;;  %v1190_v5 = vadd.f32 %v1189_v56, %v4866_v25  ;;  %v1686_v35 = vunpack.c.l.bf16 %v7060_v4  ;;  %v7062_v9 = vld [vmem:[#allocation73_spill] sm:$0xff]  ;;  %2005 = vmatpush.bf16.msra.mxu0 %v4978_v7 }
 0x1c5   :  { %v1671_v23 = vunpack.c.l.bf16 %v7057_v32  ;;  %v7058_v49 = vld [vmem:[#allocation62_spill] sm:$0xff]  ;;  %v7063_v10 = vld [vmem:[#allocation93_spill] sm:$0xff]  ;;  %v7064_v32 = vld [vmem:[#allocation96_spill] sm:$0xff]  ;;  %2018 = vmatpush.bf16.msra.mxu1 %v4990_v37  ;;  %v1703_v4 = vunpack.c.l.bf16 %v7066_v38 }
 0x1c6   :  { %v5126_v51 = vsub.f32 %v7058_v49, %v1654_v63  ;;  %v7061_v13 = vld [vmem:[#allocation70_spill] sm:$0xff]  ;;  %v1687_v43 = vunpack.c.l.bf16 %v7063_v10  ;;  %v1702_v46 = vunpack.c.l.bf16 %v7064_v32  ;;  %v1203_v25 = vadd.f32 %v1202_v6, %v1190_v5  ;;  %v7065_v63 = vld [vmem:[#allocation79_spill] sm:$0xff]  ;;  %v7067_v56 = vld [vmem:[#allocation109_spill] sm:$0xff] }
 0x1c7   :  { %v5133_v11 = vsub.f32 %v7061_v13, %v1670_v48  ;;  %v5136_v3 = vsub.f32 %v7062_v9, %v1671_v23  ;;  %v5143_v40 = vsub.f32 %v7065_v63, %v1686_v35  ;;  %v1652_v48 = vunpack.c.l.bf16 %v7067_v56  ;;  %2044 = vmatpush.bf16.msra.mxu3 %v5016_v33  ;;  %v7068_v13 = vld [vmem:[#allocation80_spill] sm:$0xff]  ;;  %v7069_v5 = vld [vmem:[#allocation87_spill] sm:$0xff] }
 0x1c8   :  { %v1803_v23 = vpack.c.bf16 %v5121_v31, %v5118_v28  ;;  %v5152_v6 = vsub.f32 %v7068_v13, %v1687_v43  ;;  %v5155_v49 = vsub.f32 %v7069_v5, %v1702_v46  ;;  %v7070_v9 = vld [vmem:[#allocation100_spill] sm:$0xff]  ;;  %v7071_v10 = vpack.c.bf16 %v4987_v2, %v4984_v30  ;;  %v7074_v31 = vld [vmem:[#allocation98_spill] sm:$0xff]  ;;  %v1215_v5 = vpop.f32.mrf.mxu2 }
 0x1c9   :  { %v1653_v35 = vunpack.c.l.bf16 %v7070_v9  ;;  %v7072_v32 = vpack.c.bf16 %v5002_v29, %v4999_v8  ;;  %v7073_v63 = vld [vmem:[#allocation88_spill] sm:$0xff]  ;;  %v5168_v28 = vsub.f32 %v7074_v31, %v1652_v48  ;;  %v7075_v43 = vld [vmem:[#allocation102_spill] sm:$0xff]  ;;  %v7077_v9 = vpack.c.bf16 %v5012_v52, %v5009_v21  ;;  %v7079_v8 = vld [vmem:[#allocation103_spill] sm:$0xff] }
 0x1ca   :  { %2064 = vmatpush.bf16.msrb.mxu0 %v7071_v10  ;;  %v5165_v38 = vsub.f32 %v7073_v63, %v1703_v4  ;;  %v1668_v56 = vunpack.c.l.bf16 %v7075_v43  ;;  %v7076_v46 = vld [vmem:[#allocation114_spill] sm:$0xff]  ;;  %v7078_v30 = vpack.c.bf16 %v5025_v60, %v5021_v62  ;;  %v1778_v2 = vpack.c.bf16 %v5129_v14, %v5126_v51  ;;  %v7080_v4 = vld [vmem:[#allocation115_spill] sm:$0xff]  ;;  %v1572_v63 = vld.sshfl [vmem:[#allocation1 + $0x10] sm:$0xff pattern:$0x73625140]  ;;  %v1228_v43 = vpop.f32.mrf.mxu3 }
 0x1cb   :  { %2077 = vmatpush.bf16.msrb.mxu1 %v7072_v32  ;;  %v1669_v13 = vunpack.c.l.bf16 %v7076_v46  ;;  %2090 = vmatpush.bf16.msrb.mxu2 %v7077_v9  ;;  %v5181_v29 = vsub.f32 %v7079_v8, %v1653_v35  ;;  %v1684_v48 = vunpack.c.l.bf16 %v7080_v4  ;;  %v7081_v10 = vld [vmem:[#allocation123_spill] sm:$0xff]  ;;  %v1216_v31 = vadd.f32 %v1215_v5, %v1203_v25  ;;  %v1191_v60 = vpop.f32.mrf.mxu0  ;;  %v7084_v25 = vld [vmem:[#allocation192_spill] sm:$0xff]  ;;  %v7114_v51 = vld [vmem:[#allocation149_spill] sm:$0xff] }
 0x1cc   :  { %2103 = vmatpush.bf16.msrb.mxu3 %v7078_v30  ;;  %v1685_v32 = vunpack.c.l.bf16 %v7081_v10  ;;  %v1786_v21 = vpack.c.bf16 %v5136_v3, %v5133_v11  ;;  %v1794_v52 = vpack.c.bf16 %v5152_v6, %v5143_v40  ;;  %v1802_v62 = vpack.c.bf16 %v5165_v38, %v5155_v49  ;;  %v7082_v46 = vld [vmem:[#allocation99_spill] sm:$0xff]  ;;  %v7083_v30 = vld [vmem:[#allocation97_spill] sm:$0xff]  ;;  %v1204_v40 = vpop.f32.mrf.mxu1  ;;  %v7087_v6 = vld [vmem:[#allocation110_spill] sm:$0xff] }
 0x1cd   :  { %v1777_v35 = vpack.c.bf16 %v5181_v29, %v5168_v28  ;;  %v5194_v9 = vsub.f32 %v7082_v46, %v1668_v56  ;;  %v5197_v8 = vsub.f32 %v7083_v30, %v1669_v13  ;;  %v1700_v5 = vunpack.c.l.bf16 %v7084_v25  ;;  %v7088_v38 = vld [vmem:[#allocation124_spill] sm:$0xff]  ;;  %v7094_v60 = vld [vmem:[#allocation125_spill] sm:$0xff]  ;;  %v7097_v25 = vld [vmem:[#allocation138_spill] sm:$0xff] }
 0x1ce   :  { %v1229_v4 = vadd.f32 %v1228_v43, %v1216_v31  ;;  %v7085_v11 = vpack.c.bf16 %v5031_v20, %v5028_v39  ;;  %v7086_v3 = vpack.c.bf16 %v5048_v53, %v5045_v55  ;;  %v5207_v49 = vsub.f32 %v7087_v6, %v1684_v48  ;;  %v7091_v39 = vld [vmem:[#allocation101_spill] sm:$0xff]  ;;  %v7093_v43 = vld [vmem:[#allocation131_spill] sm:$0xff] }
 0x1cf   :  { %v1701_v56 = vunpack.c.l.bf16 %v7088_v38  ;;  %v1580_v10 = vpack.c.bf16 %v1572_v63, %v1572_v63  ;;  %v7089_v13 = vpack.c.bf16 %v5056_v47, %v5053_v58  ;;  %v7090_v31 = vpack.c.bf16 %v5071_v61, %v5065_v42  ;;  %v7092_v55 = vld [vmem:[#allocation113_spill] sm:$0xff]  ;;  %v7096_v47 = vld [vmem:[#allocation144_spill] sm:$0xff]  ;;  %v7098_v42 = vld [vmem:[#allocation147_spill] sm:$0xff] }
 0x1d0   :  { %2065 = vmatpush.bf16.msrb.mxu0 %v7085_v11  ;;  %2078 = vmatpush.bf16.msrb.mxu1 %v7086_v3  ;;  %v5217_v20 = vsub.f32 %v7091_v39, %v1685_v32  ;;  %v5220_v53 = vsub.f32 %v7092_v55, %v1700_v5  ;;  %v1650_v48 = vunpack.c.l.bf16 %v7093_v43  ;;  %v1651_v46 = vunpack.c.l.bf16 %v7094_v60  ;;  %v7095_v30 = vld [vmem:[#allocation105_spill] sm:$0xff]  ;;  %v7100_v40 = vld [vmem:[#allocation127_spill] sm:$0xff]  ;;  %v7103_v39 = vld [vmem:[#allocation118_spill] sm:$0xff] }
 0x1d1   :  { %2091 = vmatpush.bf16.msrb.mxu2 %v7089_v13  ;;  %2104 = vmatpush.bf16.msrb.mxu3 %v7090_v31  ;;  %v5225_v63 = vsub.f32 %v7095_v30, %v1701_v56  ;;  %v1666_v58 = vunpack.c.l.bf16 %v7096_v47  ;;  %v1667_v11 = vunpack.c.l.bf16 %v7097_v25  ;;  %v1682_v61 = vunpack.c.l.bf16 %v7098_v42  ;;  %v7099_v3 = vld [vmem:[#allocation117_spill] sm:$0xff]  ;;  %v1570_v13 = vld.sshfl [vmem:[#allocation1] sm:$0xff pattern:$0x73625140] }
 0x1d2   :  { %2032 = vmatmul.bf16.vlgmr.msra.gmra.mxu2 %v1580_v10  ;;  %v5231_v32 = vsub.f32 %v7099_v3, %v1650_v48  ;;  %v5234_v5 = vsub.f32 %v7100_v40, %v1651_v46  ;;  %v1683_v6 = vunpack.c.l.bf16 %v4817_v59  ;;  %v1698_v38 = vunpack.c.l.bf16 %v4821_v16  ;;  %v7104_v43 = vld [vmem:[#allocation133_spill] sm:$0xff]  ;;  %v1573_v60 = vld.sshfl [vmem:[#allocation1 + $0x18] sm:$0xff pattern:$0x73625140]  ;;  %v1230_v30 = vpop.f32.mrf.mxu3 }
 0x1d3   :  { %v7101_v56 = vpack.c.bf16 %v5077_v17, %v5074_v19  ;;  %v7102_v10 = vpack.c.bf16 %v5092_v1, %v5085_v54  ;;  %v1785_v31 = vpack.c.bf16 %v5197_v8, %v5194_v9  ;;  %v5247_v55 = vsub.f32 %v7103_v39, %v1666_v58  ;;  %v7105_v59 = vld [vmem:[#allocation141_spill] sm:$0xff]  ;;  %v1571_v46 = vld.sshfl [vmem:[#allocation1 + $0x8] sm:$0xff pattern:$0x73625140]  ;;  %v1217_v17 = vpop.f32.mrf.mxu2 }
 0x1d4   :  { %v5250_v48 = vsub.f32 %v7104_v43, %v1667_v11  ;;  %v1699_v16 = vunpack.c.l.bf16 %v7105_v59  ;;  %v7106_v19 = vpack.c.bf16 %v5100_v41, %v5097_v50  ;;  %v1793_v54 = vpack.c.bf16 %v5217_v20, %v5207_v49  ;;  %v7107_v58 = vld [vmem:[#allocation128_spill] sm:$0xff]  ;;  %v7108_v41 = vld [vmem:[#allocation129_spill] sm:$0xff]  ;;  %v1269_v11 = vpop.f32.mrf.mxu0  ;;  %v7117_v43 = vld [vmem:[#allocation158_spill] sm:$0xff] }
 0x1d5   :  { %2066 = vmatpush.bf16.msrb.mxu0 %v7101_v56  ;;  %2079 = vmatpush.bf16.msrb.mxu1 %v7102_v10  ;;  %v1801_v1 = vpack.c.bf16 %v5225_v63, %v5220_v53  ;;  %v1776_v9 = vpack.c.bf16 %v5234_v5, %v5231_v32  ;;  %v1648_v8 = vunpack.c.l.bf16 %v4833_v44  ;;  %v1746_v50 = vsub.f32 %v7107_v58, %v1682_v61  ;;  %v7109_v42 = vld [vmem:[#allocation137_spill] sm:$0xff]  ;;  %v1282_v44 = vpop.f32.mrf.mxu1  ;;  %v7110_v32 = vld [vmem:[#allocation135_spill] sm:$0xff]  ;;  %v7120_v17 = vld [vmem:[#allocation152_spill] sm:$0xff] }
 0x1d6   :  { %2092 = vmatpush.bf16.msrb.mxu2 %v7106_v19  ;;  %2105 = vmatpush.bf16.msrb.mxu3 %v1803_v23  ;;  %v1784_v47 = vpack.c.bf16 %v5250_v48, %v5247_v55  ;;  %v1747_v23 = vsub.f32 %v7108_v41, %v1683_v6  ;;  %v1578_v25 = vpack.c.bf16 %v1570_v13, %v1570_v13  ;;  %v1649_v53 = vunpack.c.l.bf16 %v4844_v12  ;;  %v7111_v61 = vld [vmem:[#allocation139_spill] sm:$0xff]  ;;  %v7121_v30 = vld [vmem:[#allocation160_spill] sm:$0xff] }
 0x1d7   :  { %v1762_v49 = vsub.f32 %v7109_v42, %v1698_v38  ;;  %v1581_v20 = vpack.c.bf16 %v1573_v60, %v1573_v60  ;;  %v1579_v3 = vpack.c.bf16 %v1571_v46, %v1571_v46  ;;  %v1270_v63 = vadd.f32 %v1269_v11, %v1229_v4  ;;  %v7112_v38 = vld [vmem:[#allocation148_spill] sm:$0xff]  ;;  %v7113_v4 = vld [vmem:[#allocation162_spill] sm:$0xff]  ;;  %v7124_v42 = vld [vmem:[#allocation163_spill] sm:$0xff] }
 0x1d8   :  { %v1763_v40 = vsub.f32 %v7110_v32, %v1699_v16  ;;  %v1712_v5 = vsub.f32 %v7111_v61, %v1648_v8  ;;  %v1664_v6 = vunpack.c.l.bf16 %v4858_v34  ;;  %v1713_v13 = vsub.f32 %v7112_v38, %v1649_v53  ;;  %2006 = vmatmul.bf16.vlgmr.msra.gmra.mxu0 %v1578_v25  ;;  %v7119_v46 = vld [vmem:[#allocation170_spill] sm:$0xff]  ;;  %v7127_v61 = vld [vmem:[#allocation171_spill] sm:$0xff] }
 0x1d9   :  { %2067 = vmatpush.bf16.msrb.mxu0 %v1778_v2  ;;  %2080 = vmatpush.bf16.msrb.mxu1 %v1786_v21  ;;  %v1665_v56 = vunpack.c.l.bf16 %v4872_v18  ;;  %v1680_v12 = vunpack.c.l.bf16 %v4884_v27  ;;  %v1681_v10 = vunpack.c.l.bf16 %v7113_v4  ;;  %v1283_v14 = vadd.f32 %v1282_v44, %v1270_v63  ;;  %v7115_v21 = vld [vmem:[#allocation167_spill] sm:$0xff]  ;;  %v7118_v18 = vld [vmem:[#allocation150_spill] sm:$0xff]  ;;  %v7126_v63 = vld [vmem:[#allocation180_spill] sm:$0xff] }
 0x1da   :  { %2093 = vmatpush.bf16.msrb.mxu2 %v1794_v52  ;;  %2106 = vmatpush.bf16.msrb.mxu3 %v1802_v62  ;;  %v1728_v2 = vsub.f32 %v7114_v51, %v1664_v6  ;;  %v1696_v39 = vunpack.c.l.bf16 %v7115_v21  ;;  %v1697_v55 = vunpack.c.l.bf16 %v4902_v57  ;;  %v1792_v34 = vpack.c.bf16 %v1747_v23, %v1746_v50  ;;  %v7116_v52 = vld [vmem:[#allocation151_spill] sm:$0xff]  ;;  %v1308_v29 = vpop.f32.mrf.mxu3  ;;  %v7122_v23 = vld [vmem:[#allocation153_spill] sm:$0xff] }
 0x1db   :  { %2045 = vmatmul.bf16.vlgmr.msra.gmra.mxu3 %v1581_v20  ;;  %2019 = vmatmul.bf16.vlgmr.msra.gmra.mxu1 %v1579_v3  ;;  %v1729_v62 = vsub.f32 %v7116_v52, %v1665_v56  ;;  %v1744_v48 = vsub.f32 %v7117_v43, %v1680_v12  ;;  %v1745_v59 = vsub.f32 %v7118_v18, %v1681_v10  ;;  %v1646_v60 = vunpack.c.l.bf16 %v4912_v0  ;;  %v1295_v57 = vpop.f32.mrf.mxu2  ;;  %v7123_v0 = vld [vmem:[#allocation154_spill] sm:$0xff]  ;;  %v7131_v12 = vld [vmem:[#allocation208_spill] sm:$0xff]  ;;  %v7132_v4 = vld [vmem:[#allocation207_spill] sm:$0xff] }
 0x1dc   :  { %v1800_v27 = vpack.c.bf16 %v1763_v40, %v1762_v49  ;;  %v1775_v16 = vpack.c.bf16 %v1713_v13, %v1712_v5  ;;  %v1647_v19 = vunpack.c.l.bf16 %v7119_v46  ;;  %v1760_v8 = vsub.f32 %v7120_v17, %v1696_v39  ;;  %v1271_v20 = vpop.f32.mrf.mxu0  ;;  %v7130_v13 = vld [vmem:[#allocation176_spill] sm:$0xff]  ;;  %v2193_v18 = vld [vmem:[%s6068_s8 + $0x78] sm:$0xff]  ;;  %v7135_v46 = vld [vmem:[#allocation35_spill] sm:$0xff] }
 0x1dd   :  { %2068 = vmatpush.bf16.msrb.mxu0 %v1777_v35  ;;  %2081 = vmatpush.bf16.msrb.mxu1 %v1785_v31  ;;  %v1761_v58 = vsub.f32 %v7121_v30, %v1697_v55  ;;  %v1662_v50 = vunpack.c.l.bf16 %v4931_v15  ;;  %v1663_v41 = vunpack.c.l.bf16 %v4944_v22  ;;  %v1296_v28 = vadd.f32 %v1295_v57, %v1283_v14  ;;  %v7125_v15 = vld [vmem:[#allocation168_spill] sm:$0xff]  ;;  %v1284_v32 = vpop.f32.mrf.mxu1 }
 0x1de   :  { %2094 = vmatpush.bf16.msrb.mxu2 %v1793_v54  ;;  %2107 = vmatpush.bf16.msrb.mxu3 %v1801_v1  ;;  %v1783_v35 = vpack.c.bf16 %v1729_v62, %v1728_v2  ;;  %v1791_v31 = vpack.c.bf16 %v1745_v59, %v1744_v48  ;;  %v1710_v25 = vsub.f32 %v7122_v23, %v1646_v60  ;;  %v1678_v1 = vunpack.c.l.bf16 %v4952_v26  ;;  %v7128_v26 = vld [vmem:[#allocation173_spill] sm:$0xff]  ;;  %v7133_v59 = vld [vmem:[#allocation16_spill] sm:$0xff]  ;;  %v2209_v60 = vld [vmem:[%s6068_s8 + $0xf8] sm:$0xff] }
 0x1df   :  { %v1711_v11 = vsub.f32 %v7123_v0, %v1647_v19  ;;  %v1726_v54 = vsub.f32 %v7124_v42, %v1662_v50  ;;  %v1679_v49 = vunpack.c.l.bf16 %v4956_v24  ;;  %v5299_v3 = vadd.f32 %v1308_v29, %v1296_v28  ;;  %v7129_v24 = vld [vmem:[#allocation175_spill] sm:$0xff]  ;;  %v2192_v48 = vld [vmem:[%s6068_s8 + $0x70] sm:$0xff] }
 0x1e0   :  { %v1727_v22 = vsub.f32 %v7125_v15, %v1663_v41  ;;  %v1694_v53 = vunpack.c.l.bf16 %v4962_v45  ;;  %v1695_v44 = vunpack.c.l.bf16 %v7126_v63  ;;  %v1799_v40 = vpack.c.bf16 %v1761_v58, %v1760_v8  ;;  %v7136_v19 = vld [vmem:[#allocation43_spill] sm:$0xff]  ;;  %v7139_v41 = vld [vmem:[#allocation65_spill] sm:$0xff] }
 0x1e1   :  { %2069 = vmatpush.bf16.msrb.mxu0 %v1776_v9  ;;  %2082 = vmatpush.bf16.msrb.mxu1 %v1784_v47  ;;  %v1742_v5 = vsub.f32 %v7127_v61, %v1678_v1  ;;  %v1743_v6 = vsub.f32 %v7128_v26, %v1679_v49  ;;  %v1774_v9 = vpack.c.bf16 %v1711_v11, %v1710_v25  ;;  %v2054_v45 = vunpack.c.l.b16 %v7131_v12  ;;  %v7137_v58 = vld [vmem:[#allocation51_spill] sm:$0xff]  ;;  %v7141_v1 = vld [vmem:[#allocation84_spill] sm:$0xff]  ;;  %v7142_v49 = vld [vmem:[#allocation90_spill] sm:$0xff] }
 0x1e2   :  { %2095 = vmatpush.bf16.msrb.mxu2 %v1792_v34  ;;  %2108 = vmatpush.bf16.msrb.mxu3 %v1800_v27  ;;  %v1758_v38 = vsub.f32 %v7129_v24, %v1694_v53  ;;  %v1759_v56 = vsub.f32 %v7130_v13, %v1695_v44  ;;  %v1782_v47 = vpack.c.bf16 %v1727_v22, %v1726_v54  ;;  %v2052_v10 = vunpack.c.l.b16 %v7132_v4  ;;  %v1310_v55 = vpop.f32.mrf.mxu3  ;;  %v7134_v27 = vld [vmem:[#allocation27_spill] sm:$0xff]  ;;  %v2207_v54 = vld [vmem:[%s6068_s8 + $0xe8] sm:$0xff]  ;;  %v2189_v26 = vld [vmem:[%s6068_s8 + $0x58] sm:$0xff] }
 0x1e3   :  { %v1790_v14 = vpack.c.bf16 %v1743_v6, %v1742_v5  ;;  %v2055_v2 = vunpack.c.h.b16 %v7131_v12  ;;  %v1297_v21 = vpop.f32.mrf.mxu2  ;;  %v2053_v39 = vunpack.c.h.b16 %v7132_v4  ;;  %v5312_v34 = vpack.c.b16 %v2054_v45, %v2054_v45  ;;  %v7138_v50 = vld [vmem:[#allocation59_spill] sm:$0xff]  ;;  %v2188_v5 = vld [vmem:[%s6068_s8 + $0x50] sm:$0xff]  ;;  %v7146_v4 = vld [vmem:[#allocation120_spill] sm:$0xff] }
 0x1e4   :  { %v1798_v51 = vpack.c.bf16 %v1759_v56, %v1758_v38  ;;  %v5314_v52 = vpack.c.b16 %v2052_v10, %v2052_v10  ;;  %v2247_v57 = vpack.c.bf16 %v2192_v48, %v2192_v48  ;;  %v2248_v17 = vpack.c.bf16 %v2193_v18, %v2193_v18  ;;  %v7140_v28 = vld [vmem:[#allocation71_spill] sm:$0xff]  ;;  %v5353_v0 = vpop.f32.mrf.mxu0  ;;  %v2204_v56 = vld [vmem:[%s6068_s8 + $0xd0] sm:$0xff]  ;;  %v7147_v21 = vld [vmem:[#allocation122_spill] sm:$0xff] }
 0x1e5   :  { %2070 = vmatpush.bf16.msrb.mxu0 %v1775_v16  ;;  %2083 = vmatpush.bf16.msrb.mxu1 %v1783_v35  ;;  %v5316_v62 = vpack.c.b16 %v2055_v2, %v2055_v2  ;;  %v5318_v43 = vpack.c.b16 %v2053_v39, %v2053_v39  ;;  %v2208_v16 = vld [vmem:[%s6068_s8 + $0xf0] sm:$0xff]  ;;  %v2264_v30 = vpack.c.bf16 %v2209_v60, %v2209_v60  ;;  %v2190_v29 = vld [vmem:[%s6068_s8 + $0x60] sm:$0xff]  ;;  %v2191_v35 = vld [vmem:[%s6068_s8 + $0x68] sm:$0xff]  ;;  %v5360_v20 = vpop.f32.mrf.mxu1 }
 0x1e6   :  { %2096 = vmatpush.bf16.msrb.mxu2 %v1791_v31  ;;  %2109 = vmatpush.bf16.msrb.mxu3 %v1799_v40  ;;  %v2263_v8 = vpack.c.bf16 %v2208_v16, %v2208_v16  ;;  %v2279_v31 = vunpack.c.l.bf16 %v2247_v57  ;;  %v2280_v23 = vunpack.c.l.bf16 %v2248_v17  ;;  %v2206_v25 = vld [vmem:[%s6068_s8 + $0xe0] sm:$0xff]  ;;  %v5362_v15 = vpack.c.bf16 %v2190_v29, %v2190_v29  ;;  %v7148_v39 = vld [vmem:[#allocation116_spill] sm:$0xff] }
 0x1e7   :  { %v2296_v42 = vunpack.c.l.bf16 %v2264_v30  ;;  %v5364_v22 = vpack.c.bf16 %v2191_v35, %v2191_v35  ;;  %v7143_v53 = vld [vmem:[#allocation91_spill] sm:$0xff]  ;;  %v2391_v44 = vunpack.c.l.b16 %v2247_v57  ;;  %v2392_v32 = vunpack.c.l.b16 %v2248_v17 }
 0x1e8   :  { %v2295_v11 = vunpack.c.l.bf16 %v2263_v8  ;;  %v7144_v63 = vld [vmem:[#allocation107_spill] sm:$0xff]  ;;  %v2407_v40 = vunpack.c.l.b16 %v2263_v8  ;;  %v5368_v61 = vpack.c.bf16 %v2206_v25, %v2206_v25  ;;  %v2408_v6 = vunpack.c.l.b16 %v2264_v30 }
 0x1e9   :  { %2071 = vmatpush.bf16.msrb.mxu0 %v1774_v9  ;;  %2084 = vmatpush.bf16.msrb.mxu1 %v1782_v47  ;;  %v5376_v24 = vsub.f32 %v2192_v48, %v2279_v31  ;;  %v5378_v38 = vsub.f32 %v2193_v18, %v2280_v23  ;;  %v5380_v13 = vpack.c.bf16 %v2207_v54, %v2207_v54  ;;  %v2205_v9 = vld [vmem:[%s6068_s8 + $0xd8] sm:$0xff]  ;;  %v7145_v45 = vld [vmem:[#allocation111_spill] sm:$0xff]  ;;  %v2277_v10 = vunpack.c.l.bf16 %v5362_v15 }
 0x1ea   :  { %2097 = vmatpush.bf16.msrb.mxu2 %v1790_v14  ;;  %2110 = vmatpush.bf16.msrb.mxu3 %v1798_v51  ;;  %v5388_v47 = vsub.f32 %v2208_v16, %v2295_v11  ;;  %v5390_v12 = vsub.f32 %v2209_v60, %v2296_v42  ;;  %v2278_v14 = vunpack.c.l.bf16 %v5364_v22  ;;  %v2243_v51 = vpack.c.bf16 %v2188_v5, %v2188_v5  ;;  %v5403_v16 = vpop.f32.mrf.mxu3  ;;  %v7150_v31 = vld [vmem:[#allocation130_spill] sm:$0xff] }
 0x1eb   :  { %v2244_v2 = vpack.c.bf16 %v2189_v26, %v2189_v26  ;;  %v5398_v55 = vpop.f32.mrf.mxu2  ;;  %v5400_v48 = vpack.c.b16 %v2392_v32, %v2391_v44  ;;  %v2293_v18 = vunpack.c.l.bf16 %v5368_v61  ;;  %v5405_v60 = vpack.c.b16 %v2408_v6, %v2407_v40 }
 0x1ec   :  { %2072 = vmatmul.bf16.vlgmr.msrb.gmra.mxu0 %v5314_v52  ;;  %2085 = vmatmul.bf16.vlgmr.msrb.gmra.mxu1 %v5318_v43  ;;  %v2294_v57 = vunpack.c.l.bf16 %v5380_v13  ;;  %v2390_v8 = vunpack.c.l.b16 %v5364_v22  ;;  %v2405_v30 = vunpack.c.l.b16 %v5368_v61  ;;  %v5423_v23 = vsub.f32 %v2190_v29, %v2277_v10  ;;  %v5440_v22 = vld [vmem:[%s6068_s8 + $0xc8] sm:$0xff] }
 0x1ed   :  { %2116 = vmatpush.bf16.msra.mxu0 %v7133_v59  ;;  %2129 = vmatpush.bf16.msra.mxu1 %v7134_v27  ;;  %v2259_v59 = vpack.c.bf16 %v2204_v56, %v2204_v56  ;;  %v2260_v27 = vpack.c.bf16 %v2205_v9, %v2205_v9  ;;  %v5425_v11 = vsub.f32 %v2191_v35, %v2278_v14  ;;  %v2275_v42 = vunpack.c.l.bf16 %v2243_v51  ;;  %v1336_v29 = vpop.f32.mrf.mxu1  ;;  %v7151_v35 = vld [vmem:[#allocation146_spill] sm:$0xff] }
 0x1ee   :  { %2142 = vmatpush.bf16.msra.mxu2 %v7135_v46  ;;  %2155 = vmatpush.bf16.msra.mxu3 %v7136_v19  ;;  %v2336_v46 = vpack.c.bf16 %v5378_v38, %v5376_v24  ;;  %v2389_v19 = vunpack.c.l.b16 %v5362_v15  ;;  %v5435_v15 = vld [vmem:[%s6068_s8 + $0xc0] sm:$0xff]  ;;  %v2387_v44 = vunpack.c.l.b16 %v2243_v51  ;;  %v5446_v61 = vsub.f32 %v2207_v54, %v2294_v57  ;;  %v7153_v51 = vld [vmem:[#allocation142_spill] sm:$0xff] }
 0x1ef   :  { %2098 = vmatmul.bf16.vlgmr.msrb.gmra.mxu2 %v5312_v34  ;;  %2111 = vmatmul.bf16.vlgmr.msrb.gmra.mxu3 %v5316_v62  ;;  %v2291_v32 = vunpack.c.l.bf16 %v2259_v59  ;;  %v2292_v40 = vunpack.c.l.bf16 %v2260_v27  ;;  %v2388_v6 = vunpack.c.l.b16 %v2244_v2  ;;  %v5462_v14 = vpack.c.bf16 %v5440_v22, %v5440_v22  ;;  %v5467_v54 = vld [vmem:[%s6062_s2] sm:$0xf] }
 0x1f0   :  { %2211 = vst [vmem:[#allocation1] ss:$4 sm:$0xff] %v5467_v54 }
 0x1f1   :  { %2117 = vmatpush.bf16.msra.mxu0 %v7137_v58  ;;  %2130 = vmatpush.bf16.msra.mxu1 %v7138_v50  ;;  %v2406_v58 = vunpack.c.l.b16 %v5380_v13  ;;  %v5419_v50 = vld [vmem:[%s6068_s8 + $0x40] sm:$0xff]  ;;  %v2403_v13 = vunpack.c.l.b16 %v2259_v59  ;;  %v7155_v59 = vld [vmem:[#allocation156_spill] sm:$0xff]  ;;  %v2290_v29 = vunpack.c.l.bf16 %v5462_v14 }
 0x1f2   :  { %2143 = vmatpush.bf16.msra.mxu2 %v7139_v41  ;;  %2156 = vmatpush.bf16.msra.mxu3 %v7140_v28  ;;  %v1323_v41 = vpop.f32.mrf.mxu0  ;;  %v7149_v28 = vld [vmem:[#allocation134_spill] sm:$0xff] }
 0x1f3   :  { %v5480_v57 = vpack.c.b16 %v2406_v58, %v2405_v30  ;;  %v5482_v41 = vsub.f32 %v2204_v56, %v2291_v32  ;;  %v5496_v30 = vpack.c.b16 %v2388_v6, %v2387_v44  ;;  %v7157_v44 = vld [vmem:[#allocation183_spill] sm:$0xff]  ;;  %v7158_v32 = vld [vmem:[#allocation177_spill] sm:$0xff] }
 0x1f5   :  { %2118 = vmatpush.bf16.msra.mxu0 %v7141_v1  ;;  %2131 = vmatpush.bf16.msra.mxu1 %v7142_v49  ;;  %v2276_v1 = vunpack.c.l.bf16 %v2244_v2  ;;  %v5430_v49 = vld [vmem:[%s6068_s8 + $0x48] sm:$0xff]  ;;  %v7154_v2 = vld [vmem:[#allocation159_spill] sm:$0xff] }
 0x1f6   :  { %2144 = vmatpush.bf16.msra.mxu2 %v7143_v53  ;;  %2157 = vmatpush.bf16.msra.mxu3 %v7144_v63  ;;  %v7152_v53 = vld [vmem:[#allocation140_spill] sm:$0xff]  ;;  %v5444_v63 = vsub.f32 %v2206_v25, %v2293_v18  ;;  %v5454_v10 = vpack.c.bf16 %v5430_v49, %v5430_v49  ;;  %v5458_v25 = vpack.c.bf16 %v5435_v15, %v5435_v15 }
 0x1f7   :  { %v5475_v18 = vsub.f32 %v2189_v26, %v2276_v1  ;;  %v2185_v26 = vld [vmem:[%s6068_s8 + $0x38] sm:$0xff] }
 0x1f8   :  { %v2289_v1 = vunpack.c.l.bf16 %v5458_v25 }
 0x1f9   :  { %2119 = vmatpush.bf16.msra.mxu0 %v7145_v45  ;;  %2132 = vmatpush.bf16.msra.mxu1 %v7146_v4  ;;  %v5450_v45 = vpack.c.bf16 %v5419_v50, %v5419_v50  ;;  %v2404_v4 = vunpack.c.l.b16 %v2260_v27  ;;  %v7156_v27 = vld [vmem:[#allocation174_spill] sm:$0xff] }
 0x1fa   :  { %2145 = vmatpush.bf16.msra.mxu2 %v7147_v21  ;;  %2158 = vmatpush.bf16.msra.mxu3 %v7148_v39  ;;  %v5471_v21 = vpack.c.b16 %v2390_v8, %v2389_v19  ;;  %v5473_v39 = vsub.f32 %v2188_v5, %v2275_v42  ;;  %v2184_v5 = vld [vmem:[%s6068_s8 + $0x30] sm:$0xff]  ;;  %v2274_v42 = vunpack.c.l.bf16 %v5454_v10 }
 0x1fb   :  { %v2273_v56 = vunpack.c.l.bf16 %v5450_v45  ;;  %v5499_v58 = vpack.c.b16 %v2404_v4, %v2403_v13  ;;  %v2239_v6 = vpack.c.bf16 %v2184_v5, %v2184_v5  ;;  %v2240_v13 = vpack.c.bf16 %v2185_v26, %v2185_v26  ;;  %v7159_v4 = vld [vmem:[#allocation179_spill] sm:$0xff] }
 0x1fd   :  { %2120 = vmatpush.bf16.msra.mxu0 %v7149_v28  ;;  %2133 = vmatpush.bf16.msra.mxu1 %v7150_v31  ;;  %v5484_v28 = vsub.f32 %v2205_v9, %v2292_v40  ;;  %v1349_v31 = vpop.f32.mrf.mxu2  ;;  %v1362_v9 = vpop.f32.mrf.mxu3  ;;  %v2384_v40 = vunpack.c.l.b16 %v2240_v13  ;;  %v2271_v8 = vunpack.c.l.bf16 %v2239_v6  ;;  %v2272_v19 = vunpack.c.l.bf16 %v2240_v13 }
 0x1fe   :  { %2146 = vmatpush.bf16.msra.mxu2 %v7151_v35  ;;  %2159 = vmatpush.bf16.msra.mxu3 %v7152_v53  ;;  %v5507_v35 = vld [vmem:[%s6068_s8 + $0xb0] sm:$0xff]  ;;  %v5512_v53 = vld [vmem:[%s6068_s8 + $0xb8] sm:$0xff]  ;;  %v2401_v31 = vunpack.c.l.b16 %v5458_v25  ;;  %v5528_v9 = vld [vmem:[%s6068_s8 + $0x20] sm:$0xff] }
 0x1ff   :  { %v2198_v25 = vld [vmem:[%s6068_s8 + $0xa0] sm:$0xff]  ;;  %v2237_v17 = vpack.c.bf16 %v5528_v9, %v5528_v9  ;;  %v5586_v24 = vsub.f32 %v2184_v5, %v2271_v8  ;;  %v5588_v38 = vsub.f32 %v2185_v26, %v2272_v19  ;;  %v2196_v26 = vld [vmem:[%s6068_s8 + $0x90] sm:$0xff] }
 0x201   :  { %2121 = vmatpush.bf16.msra.mxu0 %v7153_v51  ;;  %2134 = vmatpush.bf16.msra.mxu1 %v7154_v2  ;;  %v7160_v51 = vld [vmem:[#allocation181_spill] sm:$0xff]  ;;  %v2383_v2 = vunpack.c.l.b16 %v2239_v6 }
 0x202   :  { %2147 = vmatpush.bf16.msra.mxu2 %v7155_v59  ;;  %2160 = vmatpush.bf16.msra.mxu3 %v7156_v27  ;;  %v2385_v59 = vunpack.c.l.b16 %v5450_v45  ;;  %v2386_v27 = vunpack.c.l.b16 %v5454_v10  ;;  %v2256_v45 = vpack.c.bf16 %v5512_v53, %v5512_v53  ;;  %v2183_v10 = vld [vmem:[%s6068_s8 + $0x28] sm:$0xff] }
 0x204   :  { %v2400_v13 = vunpack.c.l.b16 %v2256_v45 }
 0x205   :  { %2122 = vmatpush.bf16.msra.mxu0 %v7157_v44  ;;  %2135 = vmatpush.bf16.msra.mxu1 %v7158_v32  ;;  %v2402_v44 = vunpack.c.l.b16 %v5462_v14  ;;  %v5532_v32 = vsub.f32 %v5419_v50, %v2273_v56  ;;  %v2199_v14 = vld [vmem:[%s6068_s8 + $0xa8] sm:$0xff]  ;;  %v5548_v50 = vsub.f32 %v5430_v49, %v2274_v42  ;;  %v5551_v56 = vsub.f32 %v5435_v15, %v2289_v1 }
 0x206   :  { %2148 = vmatpush.bf16.msra.mxu2 %v7159_v4  ;;  %2161 = vmatpush.bf16.msra.mxu3 %v7160_v51  ;;  %v2255_v4 = vpack.c.bf16 %v5507_v35, %v5507_v35  ;;  %v5554_v51 = vsub.f32 %v5440_v22, %v2290_v29  ;;  %v2238_v49 = vpack.c.bf16 %v2183_v10, %v2183_v10  ;;  %v2288_v1 = vunpack.c.l.bf16 %v2256_v45 }
 0x207   :  { %v5562_v15 = vpack.c.bf16 %v2198_v25, %v2198_v25  ;;  %v5564_v22 = vpack.c.bf16 %v2199_v14, %v2199_v14 }
 0x208   :  { %v2287_v42 = vunpack.c.l.bf16 %v2255_v4  ;;  %v2341_v29 = vpack.c.bf16 %v5554_v51, %v5551_v56  ;;  %v2399_v6 = vunpack.c.l.b16 %v2255_v4  ;;  %v2382_v8 = vunpack.c.l.b16 %v2238_v49  ;;  %v5736_v56 = vpop.f32.mrf.mxu3  ;;  %v5741_v51 = vld [vmem:[%s6069_s9 + $0x60] sm:$0xff] }
 0x209   :  { %2123 = vmatpush.bf16.msra.mxu0 %v4978_v7  ;;  %2136 = vmatpush.bf16.msra.mxu1 %v4990_v37  ;;  %v5568_v37 = vpack.c.b16 %v2386_v27, %v2385_v59  ;;  %v5570_v7 = vpack.c.b16 %v2402_v44, %v2401_v31  ;;  %v5584_v59 = vpack.c.b16 %v2384_v40, %v2383_v2  ;;  %v2286_v5 = vunpack.c.l.bf16 %v5564_v22 }
 0x20a   :  { %2149 = vmatpush.bf16.msra.mxu2 %v4992_v36  ;;  %2162 = vmatpush.bf16.msra.mxu3 %v5016_v33  ;;  %v7161_v36 = vpack.c.bf16 %v5390_v12, %v5388_v47  ;;  %v2333_v33 = vpack.c.bf16 %v5548_v50, %v5532_v32  ;;  %v5593_v47 = vld [vmem:[%s6068_s8 + $0x10] sm:$0xff]  ;;  %v5598_v12 = vld [vmem:[%s6068_s8 + $0x18] sm:$0xff]  ;;  %v5610_v19 = vsub.f32 %v5507_v35, %v2287_v42  ;;  %v5650_v42 = vld [vmem:[%s6068_s8] sm:$0xff] }
 0x20b   :  { %v7162_v40 = vpack.c.bf16 %v5425_v11, %v5423_v23  ;;  %v7163_v2 = vpack.c.bf16 %v5446_v61, %v5444_v63  ;;  %v5621_v27 = vpack.c.b16 %v2400_v13, %v2399_v6  ;;  %v2235_v31 = vpack.c.bf16 %v5593_v47, %v5593_v47 }
 0x20c   :  { %2124 = vmatmul.bf16.vlgmr.msra.gmra.mxu0 %v5314_v52  ;;  %2137 = vmatmul.bf16.vlgmr.msra.gmra.mxu1 %v5318_v43  ;;  %v5613_v52 = vsub.f32 %v5512_v53, %v2288_v1  ;;  %v2381_v43 = vunpack.c.l.b16 %v2237_v17  ;;  %v2236_v35 = vpack.c.bf16 %v5598_v12, %v5598_v12  ;;  %v2332_v23 = vpack.c.bf16 %v5588_v38, %v5586_v24  ;;  %v5675_v1 = vld [vmem:[%s6068_s8 + $0x88] sm:$0xff] }
 0x20d   :  { %2441 = vmatpush.bf16.msrb.mxu0 %v5400_v48  ;;  %2454 = vmatpush.bf16.msrb.mxu1 %v5405_v60  ;;  %v2397_v11 = vunpack.c.l.b16 %v5562_v15  ;;  %v2398_v63 = vunpack.c.l.b16 %v5564_v22  ;;  %v2251_v61 = vpack.c.bf16 %v2196_v26, %v2196_v26  ;;  %v5643_v45 = vsub.f32 %v2199_v14, %v2286_v5  ;;  %v5665_v14 = vpop.f32.mrf.mxu1  ;;  %v5670_v22 = vld [vmem:[%s6068_s8 + $0x80] sm:$0xff] }
 0x20e   :  { %2474 = vmatpush.bf16.msrb.mxu2 %v2336_v46  ;;  %2487 = vmatpush.bf16.msrb.mxu3 %v7161_v36  ;;  %v2285_v46 = vunpack.c.l.bf16 %v5562_v15  ;;  %v5655_v15 = vld [vmem:[%s6068_s8 + $0x8] sm:$0xff]  ;;  %v7164_v36 = vpack.c.bf16 %v5475_v18, %v5473_v39  ;;  %v7165_v6 = vpack.c.bf16 %v5484_v28, %v5482_v41  ;;  %v2379_v13 = vunpack.c.l.b16 %v2235_v31  ;;  %v2212_v5 = vld.sshfl [vmem:[#allocation1] sm:$0xff pattern:$0x73625140] }
 0x20f   :  { %2150 = vmatmul.bf16.vlgmr.msra.gmra.mxu2 %v5312_v34  ;;  %2163 = vmatmul.bf16.vlgmr.msra.gmra.mxu3 %v5316_v62  ;;  %v2269_v34 = vunpack.c.l.bf16 %v2237_v17  ;;  %v2270_v62 = vunpack.c.l.bf16 %v2238_v49  ;;  %v5630_v17 = vld [vmem:[%s6068_s8 + $0x98] sm:$0xff]  ;;  %v5645_v49 = vpop.f32.mrf.mxu0  ;;  %v5691_v39 = vpack.c.bf16 %v5655_v15, %v5655_v15  ;;  %v2395_v28 = vunpack.c.l.b16 %v2251_v61 }
 0x210   :  { %v5641_v4 = vsub.f32 %v2198_v25, %v2285_v46  ;;  %v2252_v25 = vpack.c.bf16 %v5630_v17, %v5630_v17  ;;  %v2268_v46 = vunpack.c.l.bf16 %v2236_v35 }
 0x211   :  { %2442 = vmatpush.bf16.msrb.mxu0 %v5471_v21  ;;  %2455 = vmatpush.bf16.msrb.mxu1 %v5480_v57  ;;  %v5637_v53 = vsub.f32 %v5528_v9, %v2269_v34  ;;  %v5639_v44 = vsub.f32 %v2183_v10, %v2270_v62  ;;  %v2340_v9 = vpack.c.bf16 %v5613_v52, %v5610_v19  ;;  %v2380_v34 = vunpack.c.l.b16 %v2236_v35  ;;  %v2213_v19 = vld.sshfl [vmem:[#allocation1 + $0x8] sm:$0xff pattern:$0x73625140] }
 0x212   :  { %2475 = vmatpush.bf16.msrb.mxu2 %v7162_v40  ;;  %2488 = vmatpush.bf16.msrb.mxu3 %v7163_v2  ;;  %v5661_v10 = vpack.c.b16 %v2382_v8, %v2381_v43  ;;  %v2267_v62 = vunpack.c.l.bf16 %v2235_v31  ;;  %v5683_v52 = vpack.c.b16 %v2398_v63, %v2397_v11  ;;  %v2283_v43 = vunpack.c.l.bf16 %v2251_v61  ;;  %v5706_v11 = vld [vmem:[%s6069_s9 + $0x70] sm:$0xff]  ;;  %v5711_v63 = vld [vmem:[%s6069_s9 + $0x78] sm:$0xff] }
 0x213   :  { %v5687_v8 = vpack.c.bf16 %v5650_v42, %v5650_v42  ;;  %v2331_v18 = vpack.c.bf16 %v5639_v44, %v5637_v53  ;;  %v2339_v41 = vpack.c.bf16 %v5643_v45, %v5641_v4  ;;  %v2396_v40 = vunpack.c.l.b16 %v2252_v25  ;;  %v5729_v45 = vpop.f32.mrf.mxu2 }
 0x214   :  { %v2284_v2 = vunpack.c.l.bf16 %v2252_v25  ;;  %v2249_v31 = vpack.c.bf16 %v5670_v22, %v5670_v22  ;;  %v2250_v35 = vpack.c.bf16 %v5675_v1, %v5675_v1  ;;  %v5713_v61 = vpack.c.bf16 %v2213_v19, %v2212_v5 }
 0x215   :  { %2443 = vmatpush.bf16.msrb.mxu0 %v5496_v30  ;;  %2456 = vmatpush.bf16.msrb.mxu1 %v5499_v58  ;;  %v5721_v53 = vpack.c.b16 %v2380_v34, %v2379_v13  ;;  %v5724_v44 = vsub.f32 %v5593_v47, %v2267_v62  ;;  %v5727_v4 = vsub.f32 %v5598_v12, %v2268_v46  ;;  %v2265_v32 = vunpack.c.l.bf16 %v5687_v8  ;;  %v1388_v5 = vpop.f32.mrf.mxu1 }
 0x216   :  { %2476 = vmatpush.bf16.msrb.mxu2 %v7164_v36  ;;  %2489 = vmatpush.bf16.msrb.mxu3 %v7165_v6  ;;  %v5731_v25 = vsub.f32 %v2196_v26, %v2283_v43  ;;  %v2377_v36 = vunpack.c.l.b16 %v5687_v8  ;;  %v2266_v50 = vunpack.c.l.bf16 %v5691_v39  ;;  %v5754_v47 = vpack.c.bf16 %v5711_v63, %v5711_v63 }
 0x217   :  { %v1375_v12 = vpop.f32.mrf.mxu0  ;;  %v2217_v26 = vunpack.c.l.bf16 %v5713_v61  ;;  %v2218_v6 = vunpack.c.h.bf16 %v5713_v61  ;;  %v5760_v13 = vpack.c.b16 %v2396_v40, %v2395_v28  ;;  %v2316_v34 = vsub.f32 %v5630_v17, %v2284_v2 }
 0x218   :  { %v2281_v62 = vunpack.c.l.bf16 %v2249_v31  ;;  %v2282_v46 = vunpack.c.l.bf16 %v2250_v35  ;;  %v2378_v19 = vunpack.c.l.b16 %v5691_v39  ;;  %v5769_v43 = vpack.c.bf16 %v5741_v51, %v5741_v51  ;;  %v2546_v12 = vld [vmem:[%s6069_s9 + $0x50] sm:$0xff] }
 0x219   :  { %2444 = vmatpush.bf16.msrb.mxu0 %v5568_v37  ;;  %2457 = vmatpush.bf16.msrb.mxu1 %v5570_v7  ;;  %v2221_v28 = vrot.slane %v2218_v6, 6  ;;  %v2330_v17 = vpack.c.bf16 %v5727_v4, %v5724_v44  ;;  %v2393_v40 = vunpack.c.l.b16 %v2249_v31  ;;  %v2394_v2 = vunpack.c.l.b16 %v2250_v35  ;;  %v5793_v35 = vld [vmem:[%s6069_s9 + $0x58] sm:$0xff] }
 0x21a   :  { %2477 = vmatpush.bf16.msrb.mxu2 %v2333_v33  ;;  %2490 = vmatpush.bf16.msrb.mxu3 %v2341_v29  ;;  %v5746_v33 = vld [vmem:[%s6069_s9 + $0x68] sm:$0xff]  ;;  %v5750_v29 = vpack.c.bf16 %v5706_v11, %v5706_v11  ;;  %v2297_v24 = vsub.f32 %v5650_v42, %v2265_v32  ;;  %v2298_v38 = vsub.f32 %v5655_v15, %v2266_v50  ;;  %v2584_v32 = vunpack.c.l.bf16 %v5769_v43 }
 0x21b   :  { %v5773_v8 = vpack.c.bf16 %v5746_v33, %v5746_v33  ;;  %v2222_v39 = vsel %vm254_vm0, %v2217_v26, %v2221_v28  ;;  %v2313_v31 = vsub.f32 %v5670_v22, %v2281_v62  ;;  %v2314_v42 = vsub.f32 %v5675_v1, %v2282_v46  ;;  %v1401_v22 = vpop.f32.mrf.mxu2 }
 0x21c   :  { %v2224_v15 = vsub.f32 %v5467_v54, %v2222_v39  ;;  %v2338_v44 = vpack.c.bf16 %v2316_v34, %v5731_v25  ;;  %v5796_v4 = vpack.c.b16 %v2378_v19, %v2377_v36  ;;  %v1387_v1 = vadd.f32 %v5665_v14, %v5645_v49  ;;  %v2544_v49 = vld [vmem:[%s6069_s9 + $0x40] sm:$0xff] }
 0x21d   :  { %2445 = vmatpush.bf16.msrb.mxu0 %v5584_v59  ;;  %2458 = vmatpush.bf16.msrb.mxu1 %v5621_v27  ;;  %v2585_v50 = vunpack.c.l.bf16 %v5773_v8  ;;  %v5802_v54 = vpack.c.b16 %v2394_v2, %v2393_v40  ;;  %v2642_v26 = vunpack.c.l.b16 %v5750_v29  ;;  %v5805_v6 = vpack.c.bf16 %v2546_v12, %v2546_v12  ;;  %v2540_v22 = vld [vmem:[%s6069_s9 + $0x20] sm:$0xff] }
 0x21e   :  { %2478 = vmatpush.bf16.msrb.mxu2 %v2332_v23  ;;  %2491 = vmatpush.bf16.msrb.mxu3 %v2340_v9  ;;  %v2586_v23 = vunpack.c.l.bf16 %v5750_v29  ;;  %v2587_v9 = vunpack.c.l.bf16 %v5754_v47  ;;  %2226 = vst [vmem:[#allocation1] ss:$4 sm:$0xff] %v2224_v15  ;;  %v2567_v34 = vpack.c.bf16 %v5793_v35, %v5793_v35  ;;  %v2329_v14 = vpack.c.bf16 %v2298_v38, %v2297_v24 }
 0x21f   :  { %v2337_v29 = vpack.c.bf16 %v2314_v42, %v2313_v31  ;;  %v2468_v62 = vunpack.c.l.b16 %v5713_v61  ;;  %v2641_v46 = vunpack.c.l.b16 %v5773_v8  ;;  %v2600_v5 = vsub.f32 %v5741_v51, %v2584_v32 }
 0x220   :  { %v2602_v25 = vsub.f32 %v5706_v11, %v2586_v23  ;;  %v2603_v36 = vsub.f32 %v5711_v63, %v2587_v9  ;;  %v2545_v11 = vld [vmem:[%s6069_s9 + $0x48] sm:$0xff]  ;;  %v2640_v63 = vunpack.c.l.b16 %v5769_v43  ;;  %v2601_v19 = vsub.f32 %v5746_v33, %v2585_v50  ;;  %v2542_v33 = vld [vmem:[%s6069_s9 + $0x30] sm:$0xff] }
 0x221   :  { %2446 = vmatpush.bf16.msrb.mxu0 %v5661_v10  ;;  %2459 = vmatpush.bf16.msrb.mxu1 %v5683_v52  ;;  %v2582_v28 = vunpack.c.l.bf16 %v5805_v6  ;;  %v5827_v40 = vpack.c.bf16 %v2544_v49, %v2544_v49  ;;  %v2583_v24 = vunpack.c.l.bf16 %v2567_v34  ;;  %v2565_v38 = vpack.c.bf16 %v2545_v11, %v2545_v11 }
 0x222   :  { %2479 = vmatpush.bf16.msrb.mxu2 %v2331_v18  ;;  %2492 = vmatpush.bf16.msrb.mxu3 %v2339_v41  ;;  %v1414_v18 = vpop.f32.mrf.mxu3  ;;  %v2643_v41 = vunpack.c.l.b16 %v5754_v47  ;;  %v2469_v47 = vunpack.c.h.b16 %v5713_v61  ;;  %v2611_v61 = vpack.c.bf16 %v2603_v36, %v2602_v25  ;;  %v1400_v43 = vadd.f32 %v5729_v45, %v1387_v1  ;;  %v2541_v1 = vld [vmem:[%s6069_s9 + $0x28] sm:$0xff] }
 0x223   :  { %v5834_v8 = vpack.c.b16 %v2468_v62, %v2468_v62  ;;  %v5844_v23 = vpack.c.b16 %v2641_v46, %v2640_v63  ;;  %v2610_v9 = vpack.c.bf16 %v2601_v19, %v2600_v5  ;;  %v2638_v39 = vunpack.c.l.b16 %v5805_v6 }
 0x224   :  { %v5829_v2 = vpack.c.b16 %v2643_v41, %v2642_v26  ;;  %v5836_v51 = vpack.c.b16 %v2469_v47, %v2469_v47  ;;  %v2639_v45 = vunpack.c.l.b16 %v2567_v34  ;;  %v2598_v15 = vsub.f32 %v2546_v12, %v2582_v28  ;;  %v1425_v47 = vpop.f32.mrf.mxu0 }
 0x225   :  { %2447 = vmatpush.bf16.msrb.mxu0 %v5721_v53  ;;  %2460 = vmatpush.bf16.msrb.mxu1 %v5760_v13  ;;  %v2228_v31 = vld.sshfl [vmem:[#allocation1 + $0x8] sm:$0xff pattern:$0x73625140]  ;;  %v2227_v42 = vld.sshfl [vmem:[#allocation1] sm:$0xff pattern:$0x73625140]  ;;  %v2581_v26 = vunpack.c.l.bf16 %v2565_v38  ;;  %v1322_v6 = vadd.f32 %v5353_v0, %v5299_v3  ;;  %v1413_v18 = vadd.f32 %v5736_v56, %v1400_v43  ;;  %v2560_v41 = vpack.c.bf16 %v2540_v22, %v2540_v22 }
 0x226   :  { %2480 = vmatpush.bf16.msrb.mxu2 %v2330_v17  ;;  %2493 = vmatpush.bf16.msrb.mxu3 %v2338_v44  ;;  %v2543_v17 = vld [vmem:[%s6069_s9 + $0x38] sm:$0xff]  ;;  %v2580_v44 = vunpack.c.l.bf16 %v5827_v40  ;;  %v2232_v32 = vpack.c.bf16 %v2228_v31, %v2228_v31  ;;  %v2231_v50 = vpack.c.bf16 %v2227_v42, %v2227_v42  ;;  %v2561_v25 = vpack.c.bf16 %v2541_v1, %v2541_v1  ;;  %v2538_v0 = vld [vmem:[%s6069_s9 + $0x10] sm:$0xff]  ;;  %v2536_v43 = vld [vmem:[%s6069_s9] sm:$0xff] }
 0x227   :  { %v2563_v12 = vpack.c.bf16 %v2543_v17, %v2543_v17  ;;  %v2636_v36 = vunpack.c.l.b16 %v5827_v40  ;;  %v2637_v34 = vunpack.c.l.b16 %v2565_v38  ;;  %v2539_v56 = vld [vmem:[%s6069_s9 + $0x18] sm:$0xff]  ;;  %v1335_v62 = vadd.f32 %v5360_v20, %v1322_v6  ;;  %v1438_v40 = vpop.f32.mrf.mxu1  ;;  %v2715_v31 = vld [vmem:[%s6070_s10 + $0x30] sm:$0xff] }
 0x228   :  { %v2596_v3 = vsub.f32 %v2544_v49, %v2580_v44  ;;  %v2576_v63 = vunpack.c.l.bf16 %v2560_v41  ;;  %v2577_v49 = vunpack.c.l.bf16 %v2561_v25  ;;  %v5876_v46 = vpack.c.bf16 %v2538_v0, %v2538_v0 }
 0x229   :  { %2448 = vmatpush.bf16.msrb.mxu0 %v5796_v4  ;;  %2461 = vmatpush.bf16.msrb.mxu1 %v5802_v54  ;;  %v5878_v5 = vpack.c.bf16 %v2539_v56, %v2539_v56  ;;  %v5882_v19 = vpack.c.b16 %v2637_v34, %v2636_v36  ;;  %v1426_v28 = vadd.f32 %v1425_v47, %v1413_v18 }
 0x22a   :  { %2481 = vmatpush.bf16.msrb.mxu2 %v2329_v14  ;;  %2494 = vmatpush.bf16.msrb.mxu3 %v2337_v29  ;;  %v2597_v14 = vsub.f32 %v2545_v11, %v2581_v26  ;;  %v2579_v29 = vunpack.c.l.bf16 %v2563_v12  ;;  %v2593_v42 = vsub.f32 %v2541_v1, %v2577_v49  ;;  %v2535_v1 = vld [vmem:[%s6063_s3] sm:$0x3]  ;;  %v5912_v26 = vpack.c.bf16 %v2715_v31, %v2715_v31 }
 0x22b   :  { %v2575_v44 = vunpack.c.l.bf16 %v5878_v5  ;;  %v2630_v18 = vunpack.c.l.b16 %v5876_v46  ;;  %v2631_v34 = vunpack.c.l.b16 %v5878_v5  ;;  %v5934_v47 = vpack.c.bf16 %v2535_v1, %v2535_v1 }
 0x22c   :  { %2462 = vmatmul.bf16.vlgmr.msrb.gmra.mxu1 %v2232_v32  ;;  %2449 = vmatmul.bf16.vlgmr.msrb.gmra.mxu0 %v2231_v50  ;;  %v2608_v20 = vpack.c.bf16 %v2597_v14, %v2596_v3  ;;  %v2595_v38 = vsub.f32 %v2543_v17, %v2579_v29  ;;  %v2592_v17 = vsub.f32 %v2540_v22, %v2576_v63  ;;  %v1451_v22 = vpop.f32.mrf.mxu2 }
 0x22d   :  { %2500 = vmatpush.bf16.msra.mxu0 %v5400_v48  ;;  %2513 = vmatpush.bf16.msra.mxu1 %v5405_v60  ;;  %v2599_v48 = vsub.f32 %v5793_v35, %v2583_v24  ;;  %v2562_v60 = vpack.c.bf16 %v2542_v33, %v2542_v33  ;;  %v5865_v35 = vpack.c.b16 %v2639_v45, %v2638_v39  ;;  %v2632_v39 = vunpack.c.l.b16 %v2560_v41  ;;  %v2713_v41 = vld [vmem:[%s6070_s10 + $0x20] sm:$0xff] }
 0x22e   :  { %2660 = vmatpush.bf16.msra.mxu2 %v5829_v2  ;;  %2673 = vmatpush.bf16.msra.mxu3 %v2611_v61  ;;  %v2635_v61 = vunpack.c.l.b16 %v2563_v12  ;;  %v2633_v45 = vunpack.c.l.b16 %v2561_v25  ;;  %v5904_v32 = vpack.c.bf16 %v2536_v43, %v2536_v43  ;;  %v1464_v12 = vpop.f32.mrf.mxu3  ;;  %v2714_v25 = vld [vmem:[%s6070_s10 + $0x28] sm:$0xff]  ;;  %v2606_v36 = vpack.c.bf16 %v2593_v42, %v2592_v17 }
 0x22f   :  { %2482 = vmatmul.bf16.vlgmr.msrb.gmra.mxu2 %v5834_v8  ;;  %2495 = vmatmul.bf16.vlgmr.msrb.gmra.mxu3 %v5836_v51  ;;  %v2634_v11 = vunpack.c.l.b16 %v2562_v60  ;;  %v1440_v63 = vpop.f32.mrf.mxu1 }
 0x230   :  { %v5917_v6 = vpack.c.b16 %v2633_v45, %v2632_v39  ;;  %v2572_v29 = vunpack.c.l.bf16 %v5904_v32 }
 0x231   :  { %2501 = vmatpush.bf16.msra.mxu0 %v5471_v21  ;;  %2514 = vmatpush.bf16.msra.mxu1 %v5480_v57  ;;  %v2609_v21 = vpack.c.bf16 %v2599_v48, %v2598_v15  ;;  %v2578_v57 = vunpack.c.l.bf16 %v2562_v60  ;;  %v2574_v15 = vunpack.c.l.bf16 %v5876_v46  ;;  %v5943_v46 = vpack.c.b16 %v2631_v34, %v2630_v18 }
 0x232   :  { %2661 = vmatpush.bf16.msra.mxu2 %v5844_v23  ;;  %2674 = vmatpush.bf16.msra.mxu3 %v2610_v9  ;;  %v1439_v9 = vadd.f32 %v1438_v40, %v1426_v28  ;;  %v2628_v28 = vunpack.c.l.b16 %v5904_v32  ;;  %v2763_v32 = vunpack.c.l.b16 %v5912_v26 }
 0x233   :  { %v2594_v24 = vsub.f32 %v2542_v33, %v2578_v57  ;;  %v2716_v33 = vld [vmem:[%s6070_s10 + $0x38] sm:$0xff]  ;;  %v2590_v3 = vsub.f32 %v2538_v0, %v2574_v15  ;;  %v2944_v57 = vld [vmem:[%s6072_s12] ss:$0 sm:$0xff]  ;;  %v2735_v0 = vunpack.c.l.bf16 %v5912_v26 }
 0x234   :  { %v1452_v60 = vadd.f32 %v1451_v22, %v1439_v9  ;;  %v1453_v42 = vpop.f32.mrf.mxu2 }
 0x235   :  { %2502 = vmatpush.bf16.msra.mxu0 %v5496_v30  ;;  %2515 = vmatpush.bf16.msra.mxu1 %v5499_v58  ;;  %v2537_v30 = vld [vmem:[%s6069_s9 + $0x8] sm:$0xff]  ;;  %v1348_v58 = vadd.f32 %v5398_v55, %v1335_v62  ;;  %v5902_v55 = vpack.c.b16 %v2635_v61, %v2634_v11  ;;  %v2607_v48 = vpack.c.bf16 %v2595_v38, %v2594_v24  ;;  %v2711_v11 = vld [vmem:[%s6070_s10 + $0x10] sm:$0xff]  ;;  %v2712_v61 = vld [vmem:[%s6070_s10 + $0x18] sm:$0xff] }
 0x236   :  { %2662 = vmatpush.bf16.msra.mxu2 %v5865_v35  ;;  %2675 = vmatpush.bf16.msra.mxu3 %v2609_v21  ;;  %v5906_v50 = vpack.c.bf16 %v2537_v30, %v2537_v30  ;;  %v2591_v21 = vsub.f32 %v2539_v56, %v2575_v44  ;;  %v1465_v14 = vadd.f32 %v1464_v12, %v1452_v60 }
 0x237   :  { %v5941_v56 = vpack.c.bf16 %v2714_v25, %v2714_v25  ;;  %v2588_v24 = vsub.f32 %v2536_v43, %v2572_v29  ;;  %v2743_v9 = vsub.f32 %v2715_v31, %v2735_v0  ;;  %v1466_v43 = vpop.f32.mrf.mxu3  ;;  %v2710_v31 = vld [vmem:[%s6070_s10 + $0x8] sm:$0xff] }
 0x238   :  { %v2573_v62 = vunpack.c.l.bf16 %v5906_v50  ;;  %v2605_v5 = vpack.c.bf16 %v2591_v21, %v2590_v3  ;;  %v2629_v40 = vunpack.c.l.b16 %v5906_v50  ;;  %v2831_v50 = vld [vmem:[%s6071_s11 + $0x10] sm:$0xff]  ;;  %v2722_v12 = vpack.c.bf16 %v2710_v31, %v2710_v31 }
 0x239   :  { %2503 = vmatpush.bf16.msra.mxu0 %v5568_v37  ;;  %2516 = vmatpush.bf16.msra.mxu1 %v5570_v7  ;;  %v5914_v37 = vpack.c.bf16 %v2716_v33, %v2716_v33  ;;  %v1361_v7 = vadd.f32 %v5403_v16, %v1348_v58  ;;  %v1427_v16 = vpop.f32.mrf.mxu0  ;;  %v2553_v58 = vunpack.c.l.bf16 %v5934_v47  ;;  %v2734_v17 = vunpack.c.l.bf16 %v5941_v56 }
 0x23a   :  { %2663 = vmatpush.bf16.msra.mxu2 %v5882_v19  ;;  %2676 = vmatpush.bf16.msra.mxu3 %v2608_v20  ;;  %v2589_v38 = vsub.f32 %v2537_v30, %v2573_v62  ;;  %v2709_v30 = vld [vmem:[%s6070_s10] sm:$0xff]  ;;  %v5989_v18 = vpack.c.bf16 %v2831_v50, %v2831_v50  ;;  %v2730_v29 = vunpack.c.l.bf16 %v2722_v12 }
 0x23b   :  { %v1468_v49 = vadd.f32 %v1465_v14, %v1361_v7  ;;  %v2554_v44 = vsub.f32 %v2535_v1, %v2553_v58  ;;  %v2742_v7 = vsub.f32 %v2714_v25, %v2734_v17  ;;  %v5987_v60 = vpack.c.bf16 %v2709_v30, %v2709_v30 }
 0x23c   :  { %v2604_v15 = vpack.c.bf16 %v2589_v38, %v2588_v24  ;;  %v2843_v62 = vunpack.c.l.bf16 %v5989_v18  ;;  %v2758_v58 = vunpack.c.l.b16 %v2722_v12 }
 0x23d   :  { %2504 = vmatpush.bf16.msra.mxu0 %v5584_v59  ;;  %2517 = vmatpush.bf16.msra.mxu1 %v5621_v27  ;;  %v2736_v59 = vunpack.c.l.bf16 %v5914_v37  ;;  %v5939_v27 = vpack.c.bf16 %v2713_v41, %v2713_v41  ;;  %v1473_v20 = vadd.f32 %v2944_v57, %v1468_v49  ;;  %v2555_v34 = vpack.c.bf16 %v2554_v44, %v2554_v44  ;;  %v2828_v44 = vld [vmem:[%s6065_s5] sm:$0x3] }
 0x23e   :  { %2664 = vmatpush.bf16.msra.mxu2 %v5902_v55  ;;  %2677 = vmatpush.bf16.msra.mxu3 %v2607_v48  ;;  %v2832_v48 = vld [vmem:[%s6071_s11 + $0x18] sm:$0xff]  ;;  %v2729_v57 = vunpack.c.l.bf16 %v5987_v60  ;;  %v2757_v38 = vunpack.c.l.b16 %v5987_v60 }
 0x23f   :  { %v2744_v39 = vsub.f32 %v2716_v33, %v2736_v59  ;;  %v2733_v45 = vunpack.c.l.bf16 %v5939_v27  ;;  %1474 = vst [vmem:[%s6073_s13] sm:$0x3] %v1473_v20  ;;  %v5974_v33 = vpack.c.b16 %v2629_v40, %v2628_v28  ;;  %v2761_v21 = vunpack.c.l.b16 %v5939_v27 }
 0x240   :  { %v2847_v28 = vsub.f32 %v2831_v50, %v2843_v62  ;;  %v2833_v50 = vpack.c.bf16 %v2828_v44, %v2828_v44 }
 0x241   :  { %2505 = vmatpush.bf16.msra.mxu0 %v5661_v10  ;;  %2518 = vmatpush.bf16.msra.mxu1 %v5683_v52  ;;  %v5962_v10 = vpack.c.bf16 %v2711_v11, %v2711_v11  ;;  %v5964_v52 = vpack.c.bf16 %v2712_v61, %v2712_v61  ;;  %v2741_v22 = vsub.f32 %v2713_v41, %v2733_v45  ;;  %v2830_v41 = vld [vmem:[%s6071_s11 + $0x8] sm:$0xff] }
 0x242   :  { %2665 = vmatpush.bf16.msra.mxu2 %v5917_v6  ;;  %2678 = vmatpush.bf16.msra.mxu3 %v2606_v36  ;;  %v5991_v36 = vpack.c.bf16 %v2832_v48, %v2832_v48  ;;  %v2838_v59 = vpack.c.bf16 %v2830_v41, %v2830_v41 }
 0x243   :  { %v2731_v1 = vunpack.c.l.bf16 %v5962_v10  ;;  %v2732_v26 = vunpack.c.l.bf16 %v5964_v52  ;;  %v2747_v3 = vpack.c.bf16 %v2742_v7, %v2741_v22  ;;  %v2760_v49 = vunpack.c.l.b16 %v5964_v52 }
 0x244   :  { %v2844_v63 = vunpack.c.l.bf16 %v5991_v36  ;;  %v2765_v52 = vpack.c.b16 %v2758_v58, %v2757_v38 }
 0x245   :  { %2506 = vmatpush.bf16.msra.mxu0 %v5721_v53  ;;  %2519 = vmatpush.bf16.msra.mxu1 %v5760_v13  ;;  %v2748_v53 = vpack.c.bf16 %v2744_v39, %v2743_v9  ;;  %v2764_v13 = vunpack.c.l.b16 %v5914_v37  ;;  %v2829_v37 = vld [vmem:[%s6071_s11] sm:$0xff]  ;;  %v2739_v16 = vsub.f32 %v2711_v11, %v2731_v1  ;;  %v2740_v14 = vsub.f32 %v2712_v61, %v2732_v26 }
 0x246   :  { %2666 = vmatpush.bf16.msra.mxu2 %v5943_v46  ;;  %2679 = vmatpush.bf16.msra.mxu3 %v2605_v5  ;;  %v2837_v0 = vpack.c.bf16 %v2829_v37, %v2829_v37  ;;  %v2738_v5 = vsub.f32 %v2710_v31, %v2730_v29  ;;  %v2848_v40 = vsub.f32 %v2832_v48, %v2844_v63  ;;  %v2842_v61 = vunpack.c.l.bf16 %v2838_v59 }
 0x247   :  { %v2768_v25 = vpack.c.b16 %v2764_v13, %v2763_v32  ;;  %v2858_v39 = vunpack.c.l.b16 %v5991_v36  ;;  %v2856_v31 = vunpack.c.l.b16 %v2838_v59  ;;  %v2834_v13 = vunpack.c.l.bf16 %v2833_v50 }
 0x248   :  { %v2841_v11 = vunpack.c.l.bf16 %v2837_v0  ;;  %v2850_v45 = vpack.c.bf16 %v2848_v40, %v2847_v28  ;;  %v2846_v42 = vsub.f32 %v2830_v41, %v2842_v61 }
 0x249   :  { %2507 = vmatpush.bf16.msra.mxu0 %v5796_v4  ;;  %2520 = vmatpush.bf16.msra.mxu1 %v5802_v54  ;;  %v2762_v4 = vunpack.c.l.b16 %v5941_v56  ;;  %v2708_v54 = vld [vmem:[%s6064_s4] sm:$0x3]  ;;  %v2759_v56 = vunpack.c.l.b16 %v5962_v10  ;;  %v2835_v7 = vsub.f32 %v2828_v44, %v2834_v13  ;;  %v2947_v13 = vld [vmem:[%s6072_s12 + $0x4] ss:$0 sm:$0xff] }
 0x24a   :  { %2667 = vmatpush.bf16.msra.mxu2 %v5974_v33  ;;  %2680 = vmatpush.bf16.msra.mxu3 %v2604_v15  ;;  %v2845_v17 = vsub.f32 %v2829_v37, %v2841_v11 }
 0x24b   :  { %v2767_v27 = vpack.c.b16 %v2762_v4, %v2761_v21  ;;  %v2766_v24 = vpack.c.b16 %v2760_v49, %v2759_v56  ;;  %v2836_v60 = vpack.c.bf16 %v2835_v7, %v2835_v7 }
 0x24c   :  { %2508 = vmatmul.bf16.vlgmr.msra.gmra.mxu0 %v5834_v8  ;;  %2521 = vmatmul.bf16.vlgmr.msra.gmra.mxu1 %v5836_v51  ;;  %v2746_v8 = vpack.c.bf16 %v2740_v14, %v2739_v16  ;;  %v2737_v51 = vsub.f32 %v2709_v30, %v2729_v57  ;;  %v2855_v30 = vunpack.c.l.b16 %v2837_v0 }
 0x24d   :  { %2686 = vmatpush.bf16.msrb.mxu0 %v5829_v2  ;;  %2668 = vmatmul.bf16.vlgmr.msra.gmra.mxu2 %v2555_v34  ;;  %v2717_v2 = vpack.c.bf16 %v2708_v54, %v2708_v54 }
 0x24e   :  { %2797 = vmatpush.bf16.msrb.mxu2 %v2748_v53  ;;  %2681 = vmatmul.bf16.vlgmr.msra.gmra.mxu3 %v5934_v47  ;;  %v2745_v9 = vpack.c.bf16 %v2738_v5, %v2737_v51  ;;  %v2859_v32 = vpack.c.b16 %v2856_v31, %v2855_v30 }
 0x24f   :  { %2810 = vmatpush.bf16.msrb.mxu3 %v2768_v25  ;;  %2781 = vmatpush.bf16.msrb.mxu1 %v2768_v25  ;;  %v2718_v20 = vunpack.c.l.bf16 %v2717_v2 }
 0x251   :  { %2687 = vmatpush.bf16.msrb.mxu0 %v5844_v23  ;;  %v2857_v23 = vunpack.c.l.b16 %v5989_v18  ;;  %v2719_v10 = vsub.f32 %v2708_v54, %v2718_v20 }
 0x252   :  { %2798 = vmatpush.bf16.msrb.mxu2 %v2747_v3 }
 0x253   :  { %2811 = vmatpush.bf16.msrb.mxu3 %v2767_v27  ;;  %2782 = vmatpush.bf16.msrb.mxu1 %v2767_v27  ;;  %v2860_v43 = vpack.c.b16 %v2858_v39, %v2857_v23  ;;  %v2720_v15 = vpack.c.bf16 %v2719_v10, %v2719_v10  ;;  %v2946_v10 = vld [vmem:[%s6072_s12 + $0x2] ss:$0 sm:$0xff] }
 0x255   :  { %2688 = vmatpush.bf16.msrb.mxu0 %v5865_v35  ;;  %v2849_v35 = vpack.c.bf16 %v2846_v42, %v2845_v17  ;;  %v2007_v48 = vpop.f32.mrf.mxu0 }
 0x256   :  { %2799 = vmatpush.bf16.msrb.mxu2 %v2746_v8 }
 0x257   :  { %2812 = vmatpush.bf16.msrb.mxu3 %v2766_v24  ;;  %2783 = vmatpush.bf16.msrb.mxu1 %v2766_v24 }
 0x258   :  { %v2020_v53 = vpop.f32.mrf.mxu1 }
 0x259   :  { %2689 = vmatpush.bf16.msrb.mxu0 %v5882_v19  ;;  %v2033_v19 = vpop.f32.mrf.mxu2  ;;  %v2021_v25 = vadd.f32 %v2020_v53, %v2007_v48 }
 0x25a   :  { %2800 = vmatpush.bf16.msrb.mxu2 %v2745_v9 }
 0x25b   :  { %2813 = vmatpush.bf16.msrb.mxu3 %v2765_v52  ;;  %2784 = vmatpush.bf16.msrb.mxu1 %v2765_v52  ;;  %v2034_v21 = vadd.f32 %v2033_v19, %v2021_v25 }
 0x25d   :  { %2690 = vmatpush.bf16.msrb.mxu0 %v5902_v55  ;;  %2931 = vmatmul.msk.bf16.vlgmr.msrb.gmra.mxu2 %vm2773_vm3, %v2717_v2  ;;  %v2009_v1 = vpop.f32.mrf.mxu0 }
 0x25e   :  { %2889 = vmatpush.bf16.msra.mxu2 %v2850_v45  ;;  %2930 = vmatmul.msk.bf16.vlgmr.msrb.gmra.mxu1 %vm2773_vm3, %v2720_v15  ;;  %v2046_v22 = vpop.f32.mrf.mxu3 }
 0x25f   :  { %2902 = vmatpush.bf16.msra.mxu3 %v2860_v43  ;;  %2873 = vmatpush.bf16.msra.mxu1 %v2860_v43 }
 0x260   :  { %2932 = vmatmul.msk.bf16.vlgmr.msrb.gmra.mxu3 %vm2773_vm3, %v2717_v2  ;;  %v2022_v26 = vpop.f32.mrf.mxu1  ;;  %v2945_v2 = vld [vmem:[%s6072_s12 + $0x1] ss:$0 sm:$0xff] }
 0x261   :  { %2691 = vmatpush.bf16.msrb.mxu0 %v5917_v6  ;;  %v2035_v55 = vpop.f32.mrf.mxu2  ;;  %v2948_v26 = vld [vmem:[%s6072_s12 + $0x3] ss:$0 sm:$0xff] }
 0x262   :  { %2890 = vmatpush.bf16.msra.mxu2 %v2849_v35 }
 0x263   :  { %2903 = vmatpush.bf16.msra.mxu3 %v2859_v32  ;;  %2874 = vmatpush.bf16.msra.mxu1 %v2859_v32 }
 0x265   :  { %2692 = vmatpush.bf16.msrb.mxu0 %v5943_v46 }
 0x266   :  { %v2048_v12 = vpop.f32.mrf.mxu3 }
 0x269   :  { %2693 = vmatpush.bf16.msrb.mxu0 %v5974_v33  ;;  %v2073_v6 = vpop.f32.mrf.mxu0  ;;  %v2086_v18 = vpop.f32.mrf.mxu1  ;;  %v2047_v33 = vadd.f32 %v2046_v22, %v2034_v21 }
 0x26b   :  { %v2074_v4 = vadd.f32 %v2073_v6, %v2047_v33 }
 0x26c   :  { %2694 = vmatmul.bf16.vlgmr.msrb.gmra.mxu0 %v5934_v47 }
 0x26d   :  { %2936 = vmatmul.msk.bf16.vlgmr.msra.gmra.mxu2 %vm2863_vm4, %v2833_v50  ;;  %v2087_v54 = vadd.f32 %v2086_v18, %v2074_v4 }
 0x26e   :  { %2935 = vmatmul.msk.bf16.vlgmr.msra.gmra.mxu1 %vm2863_vm4, %v2836_v60 }
 0x270   :  { %2937 = vmatmul.msk.bf16.vlgmr.msra.gmra.mxu3 %vm2863_vm4, %v2833_v50 }
 0x271   :  { %v2075_v46 = vpop.f32.mrf.mxu0  ;;  %v2088_v37 = vpop.f32.mrf.mxu1 }
 0x272   :  { %v2099_v36 = vpop.f32.mrf.mxu2  ;;  %v2112_v34 = vpop.f32.mrf.mxu3 }
 0x273   :  { %v2100_v57 = vadd.f32 %v2099_v36, %v2087_v54 }
 0x275   :  { %v2113_v0 = vadd.f32 %v2112_v34, %v2100_v57 }
 0x27a   :  { %v2101_v41 = vpop.f32.mrf.mxu2  ;;  %v2114_v3 = vpop.f32.mrf.mxu3 }
 0x27b   :  { %v2949_v3 = vld [vmem:[%s6072_s12 + $0x5] ss:$0 sm:$0xff] }
 0x289   :  { %v2125_v16 = vpop.f32.mrf.mxu0  ;;  %v2138_v47 = vpop.f32.mrf.mxu1 }
 0x28a   :  { %v2139_v14 = vadd.f32 %v2138_v47, %v2125_v16 }
 0x291   :  { %v2140_v27 = vpop.f32.mrf.mxu1  ;;  %v2127_v56 = vpop.f32.mrf.mxu0 }
 0x292   :  { %v2151_v29 = vpop.f32.mrf.mxu2  ;;  %v2164_v62 = vpop.f32.mrf.mxu3 }
 0x293   :  { %v2152_v63 = vadd.f32 %v2151_v29, %v2139_v14 }
 0x295   :  { %v2165_v59 = vadd.f32 %v2164_v62, %v2152_v63 }
 0x297   :  { %v2168_v49 = vadd.f32 %v2165_v59, %v2113_v0 }
 0x299   :  { %v2174_v8 = vadd.f32 %v2945_v2, %v2168_v49 }
 0x29a   :  { %v2153_v51 = vpop.f32.mrf.mxu2  ;;  %v2166_v5 = vpop.f32.mrf.mxu3 }
 0x29b   :  { %2925 = vst [vmem:[%s6073_s13 + $0x2] sm:$0x3] %v2174_v8 }
 0x2a9   :  { %v2463_v28 = vpop.f32.mrf.mxu1  ;;  %v2450_v40 = vpop.f32.mrf.mxu0 }
 0x2aa   :  { %v2464_v9 = vadd.f32 %v2463_v28, %v2450_v40 }
 0x2b1   :  { %v2465_v20 = vpop.f32.mrf.mxu1  ;;  %v2452_v24 = vpop.f32.mrf.mxu0 }
 0x2b2   :  { %v2483_v11 = vpop.f32.mrf.mxu2  ;;  %v2496_v61 = vpop.f32.mrf.mxu3 }
 0x2b3   :  { %v2484_v23 = vadd.f32 %v2483_v11, %v2464_v9 }
 0x2b5   :  { %v2497_v17 = vadd.f32 %v2496_v61, %v2484_v23 }
 0x2ba   :  { %v2485_v38 = vpop.f32.mrf.mxu2  ;;  %v2498_v58 = vpop.f32.mrf.mxu3 }
 0x2c9   :  { %v2509_v39 = vpop.f32.mrf.mxu0  ;;  %v2522_v45 = vpop.f32.mrf.mxu1 }
 0x2ca   :  { %v2523_v42 = vadd.f32 %v2522_v45, %v2509_v39 }
 0x2cc   :  { %v2526_v52 = vadd.f32 %v2523_v42, %v2497_v17 }
 0x2ce   :  { %v2532_v43 = vadd.f32 %v2946_v10, %v2526_v52 }
 0x2d0   :  { %2927 = vst [vmem:[%s6073_s13 + $0x4] sm:$0x3] %v2532_v43  ;;  %v2669_v30 = vpop.f32.mrf.mxu2 }
 0x2d1   :  { %v2682_v31 = vpop.f32.mrf.mxu3  ;;  %v2524_v35 = vpop.f32.mrf.mxu1 }
 0x2d2   :  { %v2511_v15 = vpop.f32.mrf.mxu0  ;;  %v2683_v1 = vadd.f32 %v2682_v31, %v2669_v30 }
 0x2d8   :  { %v2671_v44 = vpop.f32.mrf.mxu2 }
 0x2d9   :  { %v2684_v32 = vpop.f32.mrf.mxu3 }
 0x2db   :  { %v2786_v19 = vpop.f32.mrf.mxu1 }
 0x2e0   :  { %v2802_v50 = vpop.f32.mrf.mxu2 }
 0x2e1   :  { %v2803_v48 = vadd.f32 %v2802_v50, %v2786_v19 }
 0x2e3   :  { %v2815_v53 = vpop.f32.mrf.mxu3  ;;  %v2788_v22 = vpop.f32.mrf.mxu1 }
 0x2e4   :  { %v2819_v55 = vadd.f32 %v2815_v53, %v2803_v48 }
 0x2e6   :  { %v2825_v7 = vadd.f32 %v2947_v13, %v2819_v55 }
 0x2e8   :  { %2934 = vst [vmem:[%s6073_s13 + $0x8] sm:$0x3] %v2825_v7  ;;  %v2804_v6 = vpop.f32.mrf.mxu2 }
 0x2e9   :  { %v2695_v60 = vpop.f32.mrf.mxu0 }
 0x2ea   :  { %v2699_v12 = vadd.f32 %v2695_v60, %v2683_v1 }
 0x2eb   :  { %v2817_v18 = vpop.f32.mrf.mxu3  ;;  %v2876_v34 = vpop.f32.mrf.mxu1 }
 0x2ec   :  { %v2705_v36 = vadd.f32 %v2948_v26, %v2699_v12 }
 0x2ee   :  { %2929 = vst [vmem:[%s6073_s13 + $0x6] sm:$0x3] %v2705_v36 }
 0x2f0   :  { %v2892_v37 = vpop.f32.mrf.mxu2 }
 0x2f1   :  { %v2697_v46 = vpop.f32.mrf.mxu0  ;;  %v2893_v41 = vadd.f32 %v2892_v37, %v2876_v34 }
 0x2f3   :  { %v2905_v25 = vpop.f32.mrf.mxu3  ;;  %v2878_v21 = vpop.f32.mrf.mxu1 }
 0x2f4   :  { %v2909_v33 = vadd.f32 %v2905_v25, %v2893_v41 }
 0x2f6   :  { %v2915_v4 = vadd.f32 %v2949_v3, %v2909_v33 }
 0x2f8   :  { %2939 = vst [vmem:[%s6073_s13 + $0xa] sm:$0x3] %v2915_v4  ;;  %v2894_v54 = vpop.f32.mrf.mxu2 }
 0x2fb   :  { %v2907_v16 = vpop.f32.mrf.mxu3 }
 0x2fc   :  { %2922 = vsyncpa [#allocation3], 1 }
 0x2fd   :  { %2923 = vsyncpa [#allocation5], 1 }

</bundles_post_ra>
